<compile_context>
chip_gen: v7x
topology: tpu7x:2x2x1
jax: 0.10.0
libtpu: 0.0.40
codegen_flags: <defaults>
</compile_context>

<pallas_src>
import functools

import jax
import jax.numpy as jnp
from jax import lax
from jax.experimental import pallas as pl
from jax.experimental.pallas import tpu as pltpu


def _gru_stack_kernel(T_CHUNK, H, num_layers, use_abs,
                      x_ref, len_ref, *rest):
    """All GRU layers fused. Grid = (num_time_chunks,), sequential."""
    w_refs = rest[:4 * num_layers]
    out_last_ref = rest[4 * num_layers]
    scratch = rest[4 * num_layers + 1:]
    h_scs = scratch[:num_layers]                      # per-layer (B,H) f32 carry
    gx_sc = scratch[num_layers]                       # (T_CHUNK,B,3H) f32 chunk pre-acts
    seq_sc = scratch[num_layers + 1] if num_layers > 1 else None  # (T_CHUNK,B,H) bf16

    c = pl.program_id(0)
    nc = pl.num_programs(0)
    B = h_scs[0].shape[0]
    t0 = c * T_CHUNK
    len_col = len_ref[...]                            # (B,1) int32, once per chunk

    @pl.when(c == 0)
    def _():
        for h_sc in h_scs:
            h_sc[...] = jnp.zeros_like(h_sc)
        out_last_ref[...] = jnp.zeros_like(out_last_ref)

    x_in = x_ref[...]                                 # (T_CHUNK*B, D0) bf16
    for li in range(num_layers):
        wih = w_refs[4 * li][...]                     # (D, 3H)  bf16
        whh = w_refs[4 * li + 1][...]                 # (H, 3H)  bf16
        bih = w_refs[4 * li + 2][...]                 # (1, 3H)  f32  (b_ih + b_hh[r,z])
        bhh_n = w_refs[4 * li + 3][...]               # (1, H)   f32  (b_hh[n])
        h_sc = h_scs[li]
        last_layer = (li == num_layers - 1)

        # ---- Phase 1: hoisted input projection for the whole chunk ----------
        gx2d = jnp.dot(x_in, wih, preferred_element_type=jnp.float32) + bih
        gx_sc[...] = gx2d.reshape(T_CHUNK, B, 3 * H)

        # ---- Phase 2: sequential recurrence over the chunk -------------------
        def step(t, h, _whh=whh, _bhh_n=bhh_n, _last=last_layer):
            gx = gx_sc[t]                             # (B, 3H) f32
            gh = jnp.dot(h.astype(jnp.bfloat16), _whh,
                         preferred_element_type=jnp.float32)
            r = jax.nn.sigmoid(gx[:, 0:H] + gh[:, 0:H])
            z = jax.nn.sigmoid(gx[:, H:2 * H] + gh[:, H:2 * H])
            n = jnp.tanh(gx[:, 2 * H:3 * H] + r * (gh[:, 2 * H:3 * H] + _bhh_n))
            h_new = (1.0 - z) * n + z * h
            # packed-sequence semantics: freeze rows once t >= length
            h_new = jnp.where(t0 + t < len_col, h_new, h)
            if not _last:
                seq_sc[t] = h_new.astype(seq_sc.dtype)
            return h_new

        h_final = lax.fori_loop(0, T_CHUNK, step, h_sc[...], unroll=True)
        h_sc[...] = h_final

        if not last_layer:                            # hand off inside VMEM
            x_in = seq_sc[...].reshape(T_CHUNK * B, H)

    @pl.when(c == nc - 1)
    def _():
        o = h_scs[-1][...]
        norm = jnp.sqrt(jnp.sum(o * o, axis=1, keepdims=True))
        o = o / jnp.maximum(norm, 1e-12)              # eps-guarded l2norm
        if use_abs:
            o = jnp.abs(o)
        out_last_ref[...] = o


def gru_stack(x2d, len_col, T, layer_ws, *, t_chunk, use_abs):
    """x2d: (T*B, D0) bf16 time-major-flattened.  Returns (B, H) f32."""
    B = len_col.shape[0]
    D0 = x2d.shape[1]
    H = layer_ws[0][1].shape[0]
    num_layers = len(layer_ws)
    assert T % t_chunk == 0 and x2d.shape[0] == T * B
    num_chunks = T // t_chunk

    kernel = functools.partial(_gru_stack_kernel, t_chunk, H, num_layers, use_abs)

    in_specs = [
        pl.BlockSpec((t_chunk * B, D0), lambda c: (c, 0)),   # x chunk (bf16)
        pl.BlockSpec((B, 1), lambda c: (0, 0)),              # lengths (resident)
    ]
    flat_ws = []
    for wih_t, whh_t, bih_eff, bhh_n in layer_ws:
        in_specs += [
            pl.BlockSpec(wih_t.shape, lambda c: (0, 0)),     # W_ih^T (bf16, resident)
            pl.BlockSpec(whh_t.shape, lambda c: (0, 0)),     # W_hh^T (bf16, resident)
            pl.BlockSpec(bih_eff.shape, lambda c: (0, 0)),   # b_ih + b_hh[r,z] (f32)
            pl.BlockSpec(bhh_n.shape, lambda c: (0, 0)),     # b_hh[n] (f32)
        ]
        flat_ws += [wih_t, whh_t, bih_eff, bhh_n]

    scratch_shapes = (
        [pltpu.VMEM((B, H), jnp.float32)] * num_layers          # hidden carries
        + [pltpu.VMEM((t_chunk, B, 3 * H), jnp.float32)]        # chunk gate pre-acts
        + ([pltpu.VMEM((t_chunk, B, H), jnp.bfloat16)]          # inter-layer sequence
           if num_layers > 1 else [])
    )

    out = pl.pallas_call(
        kernel,
        out_shape=jax.ShapeDtypeStruct((B, H), jnp.float32),
        grid_spec=pltpu.PrefetchScalarGridSpec(
            num_scalar_prefetch=0,
            grid=(num_chunks,),
            in_specs=in_specs,
            out_specs=pl.BlockSpec((B, H), lambda c: (0, 0)),
            scratch_shapes=scratch_shapes,
        ),
        compiler_params=pltpu.CompilerParams(
            dimension_semantics=("arbitrary",)),
    )(x2d, len_col, *flat_ws)
    return out


def encoder_text_forward(tokens, lengths, params, *, use_abs, t_chunk=8):
    """tokens: (B, T) int32; lengths: (B,) int32 (PyTorch-style, sorted desc)."""
    embed_w = params["embed"]
    B0, T0 = tokens.shape
    D = embed_w.shape[1]

    # Embedding gather directly in time-major layout (no separate transpose pass);
    # matmul inputs cast to bf16 (accumulation stays f32 inside the kernel).
    x = embed_w[tokens.T].astype(jnp.bfloat16)          # (T0, B0, D)

    # Pad batch to a multiple of 8 (sublane) and time to a multiple of t_chunk.
    Bp = -(-B0 // 8) * 8
    Tp = -(-T0 // t_chunk) * t_chunk
    if (Tp, Bp) != (T0, B0):
        x = jnp.pad(x, ((0, Tp - T0), (0, Bp - B0), (0, 0)))
    lens = jnp.pad(lengths.astype(jnp.int32), (0, Bp - B0), constant_values=1)
    len_col = lens.reshape(Bp, 1)
    x2d = x.reshape(Tp * Bp, D)

    # Prepare per-layer weights: transpose for (x @ W^T) layout, bf16 for MXU,
    # fold b_hh[r,z] into b_ih so the serial path only adds the n-gate bias.
    layer_ws = []
    for wih, whh, bih, bhh in params["gru"]:
        H = whh.shape[1]
        bih_eff = (bih + jnp.concatenate([bhh[:2 * H], jnp.zeros((H,), bhh.dtype)]))
        layer_ws.append((
            wih.T.astype(jnp.bfloat16),
            whh.T.astype(jnp.bfloat16),
            bih_eff.reshape(1, -1).astype(jnp.float32),
            bhh[2 * H:].reshape(1, -1).astype(jnp.float32),
        ))

    out_last = gru_stack(x2d, len_col, Tp, layer_ws,
                         t_chunk=t_chunk, use_abs=use_abs)
    return out_last[:B0]                                 # drop batch padding


def make_params(key, vocab_size, word_dim, embed_size, num_layers):
    keys = jax.random.split(key, 1 + 4 * num_layers)
    embed_w = jax.random.uniform(keys[0], (vocab_size, word_dim),
                                 jnp.float32, -0.1, 0.1)
    k = 1.0 / jnp.sqrt(embed_size)
    gru = []
    for li in range(num_layers):
        in_dim = word_dim if li == 0 else embed_size
        kk = keys[1 + 4 * li: 1 + 4 * (li + 1)]
        wih = jax.random.uniform(kk[0], (3 * embed_size, in_dim), jnp.float32, -k, k)
        whh = jax.random.uniform(kk[1], (3 * embed_size, embed_size), jnp.float32, -k, k)
        bih = jax.random.uniform(kk[2], (3 * embed_size,), jnp.float32, -k, k)
        bhh = jax.random.uniform(kk[3], (3 * embed_size,), jnp.float32, -k, k)
        gru.append((wih, whh, bih, bhh))
    return {"embed": embed_w, "gru": gru}


# ---------------- pure-JAX reference (same arithmetic: bf16 matmul in, f32 acc) ---
def _ref_forward(tokens, lengths, params, *, use_abs):
    x_seq = jnp.transpose(params["embed"][tokens], (1, 0, 2)).astype(jnp.bfloat16)
    B = tokens.shape[0]
    lens = lengths.reshape(-1, 1).astype(jnp.int32)
    h_last = None
    for wih, whh, bih, bhh in params["gru"]:
        H = whh.shape[1]
        wih_t = wih.T.astype(jnp.bfloat16)
        whh_t = whh.T.astype(jnp.bfloat16)

        def step(carry, x_t):
            h, t = carry
            gx = jnp.dot(x_t, wih_t, preferred_element_type=jnp.float32) + bih
            gh = jnp.dot(h.astype(jnp.bfloat16), whh_t,
                         preferred_element_type=jnp.float32) + bhh
            r = jax.nn.sigmoid(gx[:, :H] + gh[:, :H])
            z = jax.nn.sigmoid(gx[:, H:2 * H] + gh[:, H:2 * H])
            n = jnp.tanh(gx[:, 2 * H:] + r * gh[:, 2 * H:])
            h_new = (1.0 - z) * n + z * h
            h_new = jnp.where(t < lens, h_new, h)     # packed-seq: freeze past length
            return (h_new, t + 1), h_new

        h0 = jnp.zeros((B, H), jnp.float32)
        (h_last, _), hs = lax.scan(step, (h0, 0), x_seq)
        x_seq = hs.astype(jnp.bfloat16)
    out = h_last
    norm = jnp.sqrt(jnp.sum(out * out, axis=1, keepdims=True))
    out = out / jnp.maximum(norm, 1e-12)
    if use_abs:
        out = jnp.abs(out)
    return out


if __name__ == "__main__":
    # small opt: vocab_size=50, word_dim=64, embed_size=128, num_layers=2,
    #            batch=6, seq_len=13, use_abs=True
    VOCAB, WORD_DIM, EMBED_SIZE, NUM_LAYERS = 50, 64, 128, 2
    B, T = 6, 13
    USE_ABS = True

    key = jax.random.PRNGKey(0)
    kp, kt = jax.random.split(key)
    params = make_params(kp, VOCAB, WORD_DIM, EMBED_SIZE, NUM_LAYERS)
    tokens = jax.random.randint(kt, (B, T), 0, VOCAB, dtype=jnp.int32)
    lengths = jnp.array([13, 11, 9, 7, 4, 2], dtype=jnp.int32)   # sorted descending

    out = encoder_text_forward(tokens, lengths, params, use_abs=USE_ABS, t_chunk=8)
    out = jax.block_until_ready(out)

    ref = _ref_forward(tokens, lengths, params, use_abs=USE_ABS)
    assert out.shape == (B, EMBED_SIZE)
    err = float(jnp.max(jnp.abs(out - ref)))
    assert jnp.allclose(out, ref, atol=2e-3, rtol=2e-3), f"mismatch vs reference, max|err|={err}"

    print("KERNEL_OK")
</pallas_src>

<mosaic_0001>
module attributes {stable_mosaic.version = 11 : i64} {
  func.func @_gru_stack_kernel(%arg0: i32, %arg1: memref<64x64xbf16, #tpu.memory_space<vmem>>, %arg2: memref<8x1xi32, #tpu.memory_space<vmem>>, %arg3: memref<64x384xbf16, #tpu.memory_space<vmem>>, %arg4: memref<128x384xbf16, #tpu.memory_space<vmem>>, %arg5: memref<1x384xf32, #tpu.memory_space<vmem>>, %arg6: memref<1x128xf32, #tpu.memory_space<vmem>>, %arg7: memref<128x384xbf16, #tpu.memory_space<vmem>>, %arg8: memref<128x384xbf16, #tpu.memory_space<vmem>>, %arg9: memref<1x384xf32, #tpu.memory_space<vmem>>, %arg10: memref<1x128xf32, #tpu.memory_space<vmem>>, %arg11: memref<8x128xf32, #tpu.memory_space<vmem>>, %arg12: memref<8x128xf32, #tpu.memory_space<vmem>>, %arg13: memref<8x128xf32, #tpu.memory_space<vmem>>, %arg14: memref<8x8x384xf32, #tpu.memory_space<vmem>>, %arg15: memref<8x8x128xbf16, #tpu.memory_space<vmem>>) attributes {dimension_semantics = [#tpu.dimension_semantics<arbitrary>], iteration_bounds = array<i64: 2>, scalar_prefetch = 0 : i64, scratch_operands = 4 : i64, tpu.core_type = #tpu.core_type<tc>, window_params = [{transform_indices = @transform_0, window_bounds = array<i64: 64, 64>}, {pipeline_mode = #tpu.pipeline_mode<synchronous>, transform_indices = @transform_1, window_bounds = array<i64: 8, 1>}, {pipeline_mode = #tpu.pipeline_mode<synchronous>, transform_indices = @transform_2, window_bounds = array<i64: 64, 384>}, {pipeline_mode = #tpu.pipeline_mode<synchronous>, transform_indices = @transform_3, window_bounds = array<i64: 128, 384>}, {pipeline_mode = #tpu.pipeline_mode<synchronous>, transform_indices = @transform_4, window_bounds = array<i64: 1, 384>}, {pipeline_mode = #tpu.pipeline_mode<synchronous>, transform_indices = @transform_5, window_bounds = array<i64: 1, 128>}, {pipeline_mode = #tpu.pipeline_mode<synchronous>, transform_indices = @transform_6, window_bounds = array<i64: 128, 384>}, {pipeline_mode = #tpu.pipeline_mode<synchronous>, transform_indices = @transform_7, window_bounds = array<i64: 128, 384>}, {pipeline_mode = #tpu.pipeline_mode<synchronous>, transform_indices = @transform_8, window_bounds = array<i64: 1, 384>}, {pipeline_mode = #tpu.pipeline_mode<synchronous>, transform_indices = @transform_9, window_bounds = array<i64: 1, 128>}, {pipeline_mode = #tpu.pipeline_mode<synchronous>, transform_indices = @transform_10, window_bounds = array<i64: 8, 128>}]} {
    %c8_i32 = arith.constant 8 : i32
    %0 = arith.muli %arg0, %c8_i32 : i32
    %c0 = arith.constant 0 : index
    %c0_0 = arith.constant 0 : index
    %1 = vector.load %arg2[%c0, %c0_0] : memref<8x1xi32, #tpu.memory_space<vmem>>, vector<8x1xi32>
    %c0_i32 = arith.constant 0 : i32
    %2 = arith.cmpi eq, %arg0, %c0_i32 : i32
    %3 = arith.extui %2 : i1 to i32
    %c0_i32_1 = arith.constant 0 : i32
    %4 = arith.cmpi ne, %3, %c0_i32_1 : i32
    scf.if %4 {
      %cst_163 = arith.constant 0.000000e+00 : f32
      %697 = vector.broadcast %cst_163 : f32 to vector<8x128xf32>
      %c0_164 = arith.constant 0 : index
      %c0_165 = arith.constant 0 : index
      %698 = vector.load %arg12[%c0_164, %c0_165] : memref<8x128xf32, #tpu.memory_space<vmem>>, vector<8x128xf32>
      tpu.vector_store %arg12[%c0_164, %c0_165], %697 {strides = array<i32>} : memref<8x128xf32, #tpu.memory_space<vmem>>, vector<8x128xf32>,
      %cst_166 = arith.constant 0.000000e+00 : f32
      %699 = vector.broadcast %cst_166 : f32 to vector<8x128xf32>
      %c0_167 = arith.constant 0 : index
      %c0_168 = arith.constant 0 : index
      %700 = vector.load %arg13[%c0_167, %c0_168] : memref<8x128xf32, #tpu.memory_space<vmem>>, vector<8x128xf32>
      tpu.vector_store %arg13[%c0_167, %c0_168], %699 {strides = array<i32>} : memref<8x128xf32, #tpu.memory_space<vmem>>, vector<8x128xf32>,
      %cst_169 = arith.constant 0.000000e+00 : f32
      %701 = vector.broadcast %cst_169 : f32 to vector<8x128xf32>
      %c0_170 = arith.constant 0 : index
      %c0_171 = arith.constant 0 : index
      %702 = vector.load %arg11[%c0_170, %c0_171] : memref<8x128xf32, #tpu.memory_space<vmem>>, vector<8x128xf32>
      tpu.vector_store %arg11[%c0_170, %c0_171], %701 {strides = array<i32>} : memref<8x128xf32, #tpu.memory_space<vmem>>, vector<8x128xf32>,
    } else {
    }
    %c0_2 = arith.constant 0 : index
    %c0_3 = arith.constant 0 : index
    %5 = vector.load %arg1[%c0_2, %c0_3] : memref<64x64xbf16, #tpu.memory_space<vmem>>, vector<64x64xbf16>
    %c0_4 = arith.constant 0 : index
    %c0_5 = arith.constant 0 : index
    %6 = vector.load %arg3[%c0_4, %c0_5] : memref<64x384xbf16, #tpu.memory_space<vmem>>, vector<64x384xbf16>
    %c0_6 = arith.constant 0 : index
    %c0_7 = arith.constant 0 : index
    %7 = vector.load %arg4[%c0_6, %c0_7] : memref<128x384xbf16, #tpu.memory_space<vmem>>, vector<128x384xbf16>
    %c0_8 = arith.constant 0 : index
    %c0_9 = arith.constant 0 : index
    %8 = vector.load %arg5[%c0_8, %c0_9] : memref<1x384xf32, #tpu.memory_space<vmem>>, vector<1x384xf32>
    %c0_10 = arith.constant 0 : index
    %c0_11 = arith.constant 0 : index
    %9 = vector.load %arg6[%c0_10, %c0_11] : memref<1x128xf32, #tpu.memory_space<vmem>>, vector<1x128xf32>
    %cst = arith.constant dense<0.000000e+00> : vector<64x384xf32>
    %10 = tpu.matmul %5, %6, %cst {dimension_numbers = #tpu.dot_dimension_numbers<[1], [0], [0], [1], [0, 0, 1, 1], [], []>} : vector<64x64xbf16>, vector<64x384xbf16>, vector<64x384xf32> -> vector<64x384xf32>
    %11 = vector.broadcast %8 : vector<1x384xf32> to vector<64x384xf32>
    %12 = arith.addf %10, %11 : vector<64x384xf32>
    %13 = vector.shape_cast %12 : vector<64x384xf32> to vector<8x8x384xf32>
    %c0_12 = arith.constant 0 : index
    %c0_13 = arith.constant 0 : index
    %c0_14 = arith.constant 0 : index
    %14 = vector.load %arg14[%c0_12, %c0_13, %c0_14] : memref<8x8x384xf32, #tpu.memory_space<vmem>>, vector<8x8x384xf32>
    tpu.vector_store %arg14[%c0_12, %c0_13, %c0_14], %13 {strides = array<i32>} : memref<8x8x384xf32, #tpu.memory_space<vmem>>, vector<8x8x384xf32>,
    %c0_15 = arith.constant 0 : index
    %c0_16 = arith.constant 0 : index
    %15 = vector.load %arg12[%c0_15, %c0_16] : memref<8x128xf32, #tpu.memory_space<vmem>>, vector<8x128xf32>
    %c0_i32_17 = arith.constant 0 : i32
    %16 = arith.index_cast %c0_i32_17 : i32 to index
    %c0_18 = arith.constant 0 : index
    %c0_19 = arith.constant 0 : index
    %17 = vector.load %arg14[%16, %c0_18, %c0_19] : memref<8x8x384xf32, #tpu.memory_space<vmem>>, vector<1x8x384xf32>
    %18 = vector.shape_cast %17 : vector<1x8x384xf32> to vector<8x384xf32>
    %19 = arith.truncf %15 : vector<8x128xf32> to vector<8x128xbf16>
    %cst_20 = arith.constant dense<0.000000e+00> : vector<8x384xf32>
    %20 = tpu.matmul %19, %7, %cst_20 {dimension_numbers = #tpu.dot_dimension_numbers<[1], [0], [0], [1], [0, 0, 1, 1], [], []>} : vector<8x128xbf16>, vector<128x384xbf16>, vector<8x384xf32> -> vector<8x384xf32>
    %21 = vector.extract_strided_slice %18 {offsets = [0, 0], sizes = [8, 128], strides = [1, 1]} : vector<8x384xf32> to vector<8x128xf32>
    %22 = vector.extract_strided_slice %20 {offsets = [0, 0], sizes = [8, 128], strides = [1, 1]} : vector<8x384xf32> to vector<8x128xf32>
    %23 = arith.addf %21, %22 : vector<8x128xf32>
    %24 = arith.negf %23 : vector<8x128xf32>
    %25 = math.exp %24 : vector<8x128xf32>
    %cst_21 = arith.constant 1.000000e+00 : f32
    %26 = vector.broadcast %cst_21 : f32 to vector<8x128xf32>
    %27 = arith.addf %26, %25 : vector<8x128xf32>
    %28 = arith.divf %26, %27 : vector<8x128xf32>
    %29 = vector.extract_strided_slice %18 {offsets = [0, 128], sizes = [8, 128], strides = [1, 1]} : vector<8x384xf32> to vector<8x128xf32>
    %30 = vector.extract_strided_slice %20 {offsets = [0, 128], sizes = [8, 128], strides = [1, 1]} : vector<8x384xf32> to vector<8x128xf32>
    %31 = arith.addf %29, %30 : vector<8x128xf32>
    %32 = arith.negf %31 : vector<8x128xf32>
    %33 = math.exp %32 : vector<8x128xf32>
    %cst_22 = arith.constant 1.000000e+00 : f32
    %34 = vector.broadcast %cst_22 : f32 to vector<8x128xf32>
    %35 = arith.addf %34, %33 : vector<8x128xf32>
    %36 = arith.divf %34, %35 : vector<8x128xf32>
    %37 = vector.extract_strided_slice %18 {offsets = [0, 256], sizes = [8, 128], strides = [1, 1]} : vector<8x384xf32> to vector<8x128xf32>
    %38 = vector.extract_strided_slice %20 {offsets = [0, 256], sizes = [8, 128], strides = [1, 1]} : vector<8x384xf32> to vector<8x128xf32>
    %39 = vector.broadcast %9 : vector<1x128xf32> to vector<8x128xf32>
    %40 = arith.addf %38, %39 : vector<8x128xf32>
    %41 = arith.mulf %28, %40 : vector<8x128xf32>
    %42 = arith.addf %37, %41 : vector<8x128xf32>
    %43 = math.tanh %42 : vector<8x128xf32>
    %cst_23 = arith.constant 1.000000e+00 : f32
    %44 = vector.broadcast %cst_23 : f32 to vector<8x128xf32>
    %45 = arith.subf %44, %36 : vector<8x128xf32>
    %46 = arith.mulf %45, %43 : vector<8x128xf32>
    %47 = arith.mulf %36, %15 : vector<8x128xf32>
    %48 = arith.addf %46, %47 : vector<8x128xf32>
    %49 = arith.addi %0, %c0_i32_17 : i32
    %50 = vector.broadcast %49 : i32 to vector<8x1xi32>
    %51 = arith.cmpi slt, %50, %1 : vector<8x1xi32>
    %52 = vector.shape_cast %51 : vector<8x1xi1> to vector<8x1xi1>
    %53 = vector.broadcast %52 : vector<8x1xi1> to vector<8x128xi1>
    %54 = arith.select %53, %48, %15 : vector<8x128xi1>, vector<8x128xf32>
    %55 = arith.truncf %54 : vector<8x128xf32> to vector<8x128xbf16>
    %56 = arith.index_cast %c0_i32_17 : i32 to index
    %c0_24 = arith.constant 0 : index
    %c0_25 = arith.constant 0 : index
    %57 = vector.load %arg15[%56, %c0_24, %c0_25] : memref<8x8x128xbf16, #tpu.memory_space<vmem>>, vector<1x8x128xbf16>
    %58 = vector.shape_cast %57 : vector<1x8x128xbf16> to vector<8x128xbf16>
    %59 = vector.shape_cast %55 : vector<8x128xbf16> to vector<1x8x128xbf16>
    tpu.vector_store %arg15[%56, %c0_24, %c0_25], %59 {strides = array<i32>} : memref<8x8x128xbf16, #tpu.memory_space<vmem>>, vector<1x8x128xbf16>,
    %c1_i32 = arith.constant 1 : i32
    %60 = arith.index_cast %c1_i32 : i32 to index
    %c0_26 = arith.constant 0 : index
    %c0_27 = arith.constant 0 : index
    %61 = vector.load %arg14[%60, %c0_26, %c0_27] : memref<8x8x384xf32, #tpu.memory_space<vmem>>, vector<1x8x384xf32>
    %62 = vector.shape_cast %61 : vector<1x8x384xf32> to vector<8x384xf32>
    %63 = arith.truncf %54 : vector<8x128xf32> to vector<8x128xbf16>
    %cst_28 = arith.constant dense<0.000000e+00> : vector<8x384xf32>
    %64 = tpu.matmul %63, %7, %cst_28 {dimension_numbers = #tpu.dot_dimension_numbers<[1], [0], [0], [1], [0, 0, 1, 1], [], []>} : vector<8x128xbf16>, vector<128x384xbf16>, vector<8x384xf32> -> vector<8x384xf32>
    %65 = vector.extract_strided_slice %62 {offsets = [0, 0], sizes = [8, 128], strides = [1, 1]} : vector<8x384xf32> to vector<8x128xf32>
    %66 = vector.extract_strided_slice %64 {offsets = [0, 0], sizes = [8, 128], strides = [1, 1]} : vector<8x384xf32> to vector<8x128xf32>
    %67 = arith.addf %65, %66 : vector<8x128xf32>
    %68 = arith.negf %67 : vector<8x128xf32>
    %69 = math.exp %68 : vector<8x128xf32>
    %cst_29 = arith.constant 1.000000e+00 : f32
    %70 = vector.broadcast %cst_29 : f32 to vector<8x128xf32>
    %71 = arith.addf %70, %69 : vector<8x128xf32>
    %72 = arith.divf %70, %71 : vector<8x128xf32>
    %73 = vector.extract_strided_slice %62 {offsets = [0, 128], sizes = [8, 128], strides = [1, 1]} : vector<8x384xf32> to vector<8x128xf32>
    %74 = vector.extract_strided_slice %64 {offsets = [0, 128], sizes = [8, 128], strides = [1, 1]} : vector<8x384xf32> to vector<8x128xf32>
    %75 = arith.addf %73, %74 : vector<8x128xf32>
    %76 = arith.negf %75 : vector<8x128xf32>
    %77 = math.exp %76 : vector<8x128xf32>
    %cst_30 = arith.constant 1.000000e+00 : f32
    %78 = vector.broadcast %cst_30 : f32 to vector<8x128xf32>
    %79 = arith.addf %78, %77 : vector<8x128xf32>
    %80 = arith.divf %78, %79 : vector<8x128xf32>
    %81 = vector.extract_strided_slice %62 {offsets = [0, 256], sizes = [8, 128], strides = [1, 1]} : vector<8x384xf32> to vector<8x128xf32>
    %82 = vector.extract_strided_slice %64 {offsets = [0, 256], sizes = [8, 128], strides = [1, 1]} : vector<8x384xf32> to vector<8x128xf32>
    %83 = vector.broadcast %9 : vector<1x128xf32> to vector<8x128xf32>
    %84 = arith.addf %82, %83 : vector<8x128xf32>
    %85 = arith.mulf %72, %84 : vector<8x128xf32>
    %86 = arith.addf %81, %85 : vector<8x128xf32>
    %87 = math.tanh %86 : vector<8x128xf32>
    %cst_31 = arith.constant 1.000000e+00 : f32
    %88 = vector.broadcast %cst_31 : f32 to vector<8x128xf32>
    %89 = arith.subf %88, %80 : vector<8x128xf32>
    %90 = arith.mulf %89, %87 : vector<8x128xf32>
    %91 = arith.mulf %80, %54 : vector<8x128xf32>
    %92 = arith.addf %90, %91 : vector<8x128xf32>
    %93 = arith.addi %0, %c1_i32 : i32
    %94 = vector.broadcast %93 : i32 to vector<8x1xi32>
    %95 = arith.cmpi slt, %94, %1 : vector<8x1xi32>
    %96 = vector.shape_cast %95 : vector<8x1xi1> to vector<8x1xi1>
    %97 = vector.broadcast %96 : vector<8x1xi1> to vector<8x128xi1>
    %98 = arith.select %97, %92, %54 : vector<8x128xi1>, vector<8x128xf32>
    %99 = arith.truncf %98 : vector<8x128xf32> to vector<8x128xbf16>
    %100 = arith.index_cast %c1_i32 : i32 to index
    %c0_32 = arith.constant 0 : index
    %c0_33 = arith.constant 0 : index
    %101 = vector.load %arg15[%100, %c0_32, %c0_33] : memref<8x8x128xbf16, #tpu.memory_space<vmem>>, vector<1x8x128xbf16>
    %102 = vector.shape_cast %101 : vector<1x8x128xbf16> to vector<8x128xbf16>
    %103 = vector.shape_cast %99 : vector<8x128xbf16> to vector<1x8x128xbf16>
    tpu.vector_store %arg15[%100, %c0_32, %c0_33], %103 {strides = array<i32>} : memref<8x8x128xbf16, #tpu.memory_space<vmem>>, vector<1x8x128xbf16>,
    %c2_i32 = arith.constant 2 : i32
    %104 = arith.index_cast %c2_i32 : i32 to index
    %c0_34 = arith.constant 0 : index
    %c0_35 = arith.constant 0 : index
    %105 = vector.load %arg14[%104, %c0_34, %c0_35] : memref<8x8x384xf32, #tpu.memory_space<vmem>>, vector<1x8x384xf32>
    %106 = vector.shape_cast %105 : vector<1x8x384xf32> to vector<8x384xf32>
    %107 = arith.truncf %98 : vector<8x128xf32> to vector<8x128xbf16>
    %cst_36 = arith.constant dense<0.000000e+00> : vector<8x384xf32>
    %108 = tpu.matmul %107, %7, %cst_36 {dimension_numbers = #tpu.dot_dimension_numbers<[1], [0], [0], [1], [0, 0, 1, 1], [], []>} : vector<8x128xbf16>, vector<128x384xbf16>, vector<8x384xf32> -> vector<8x384xf32>
    %109 = vector.extract_strided_slice %106 {offsets = [0, 0], sizes = [8, 128], strides = [1, 1]} : vector<8x384xf32> to vector<8x128xf32>
    %110 = vector.extract_strided_slice %108 {offsets = [0, 0], sizes = [8, 128], strides = [1, 1]} : vector<8x384xf32> to vector<8x128xf32>
    %111 = arith.addf %109, %110 : vector<8x128xf32>
    %112 = arith.negf %111 : vector<8x128xf32>
    %113 = math.exp %112 : vector<8x128xf32>
    %cst_37 = arith.constant 1.000000e+00 : f32
    %114 = vector.broadcast %cst_37 : f32 to vector<8x128xf32>
    %115 = arith.addf %114, %113 : vector<8x128xf32>
    %116 = arith.divf %114, %115 : vector<8x128xf32>
    %117 = vector.extract_strided_slice %106 {offsets = [0, 128], sizes = [8, 128], strides = [1, 1]} : vector<8x384xf32> to vector<8x128xf32>
    %118 = vector.extract_strided_slice %108 {offsets = [0, 128], sizes = [8, 128], strides = [1, 1]} : vector<8x384xf32> to vector<8x128xf32>
    %119 = arith.addf %117, %118 : vector<8x128xf32>
    %120 = arith.negf %119 : vector<8x128xf32>
    %121 = math.exp %120 : vector<8x128xf32>
    %cst_38 = arith.constant 1.000000e+00 : f32
    %122 = vector.broadcast %cst_38 : f32 to vector<8x128xf32>
    %123 = arith.addf %122, %121 : vector<8x128xf32>
    %124 = arith.divf %122, %123 : vector<8x128xf32>
    %125 = vector.extract_strided_slice %106 {offsets = [0, 256], sizes = [8, 128], strides = [1, 1]} : vector<8x384xf32> to vector<8x128xf32>
    %126 = vector.extract_strided_slice %108 {offsets = [0, 256], sizes = [8, 128], strides = [1, 1]} : vector<8x384xf32> to vector<8x128xf32>
    %127 = vector.broadcast %9 : vector<1x128xf32> to vector<8x128xf32>
    %128 = arith.addf %126, %127 : vector<8x128xf32>
    %129 = arith.mulf %116, %128 : vector<8x128xf32>
    %130 = arith.addf %125, %129 : vector<8x128xf32>
    %131 = math.tanh %130 : vector<8x128xf32>
    %cst_39 = arith.constant 1.000000e+00 : f32
    %132 = vector.broadcast %cst_39 : f32 to vector<8x128xf32>
    %133 = arith.subf %132, %124 : vector<8x128xf32>
    %134 = arith.mulf %133, %131 : vector<8x128xf32>
    %135 = arith.mulf %124, %98 : vector<8x128xf32>
    %136 = arith.addf %134, %135 : vector<8x128xf32>
    %137 = arith.addi %0, %c2_i32 : i32
    %138 = vector.broadcast %137 : i32 to vector<8x1xi32>
    %139 = arith.cmpi slt, %138, %1 : vector<8x1xi32>
    %140 = vector.shape_cast %139 : vector<8x1xi1> to vector<8x1xi1>
    %141 = vector.broadcast %140 : vector<8x1xi1> to vector<8x128xi1>
    %142 = arith.select %141, %136, %98 : vector<8x128xi1>, vector<8x128xf32>
    %143 = arith.truncf %142 : vector<8x128xf32> to vector<8x128xbf16>
    %144 = arith.index_cast %c2_i32 : i32 to index
    %c0_40 = arith.constant 0 : index
    %c0_41 = arith.constant 0 : index
    %145 = vector.load %arg15[%144, %c0_40, %c0_41] : memref<8x8x128xbf16, #tpu.memory_space<vmem>>, vector<1x8x128xbf16>
    %146 = vector.shape_cast %145 : vector<1x8x128xbf16> to vector<8x128xbf16>
    %147 = vector.shape_cast %143 : vector<8x128xbf16> to vector<1x8x128xbf16>
    tpu.vector_store %arg15[%144, %c0_40, %c0_41], %147 {strides = array<i32>} : memref<8x8x128xbf16, #tpu.memory_space<vmem>>, vector<1x8x128xbf16>,
    %c3_i32 = arith.constant 3 : i32
    %148 = arith.index_cast %c3_i32 : i32 to index
    %c0_42 = arith.constant 0 : index
    %c0_43 = arith.constant 0 : index
    %149 = vector.load %arg14[%148, %c0_42, %c0_43] : memref<8x8x384xf32, #tpu.memory_space<vmem>>, vector<1x8x384xf32>
    %150 = vector.shape_cast %149 : vector<1x8x384xf32> to vector<8x384xf32>
    %151 = arith.truncf %142 : vector<8x128xf32> to vector<8x128xbf16>
    %cst_44 = arith.constant dense<0.000000e+00> : vector<8x384xf32>
    %152 = tpu.matmul %151, %7, %cst_44 {dimension_numbers = #tpu.dot_dimension_numbers<[1], [0], [0], [1], [0, 0, 1, 1], [], []>} : vector<8x128xbf16>, vector<128x384xbf16>, vector<8x384xf32> -> vector<8x384xf32>
    %153 = vector.extract_strided_slice %150 {offsets = [0, 0], sizes = [8, 128], strides = [1, 1]} : vector<8x384xf32> to vector<8x128xf32>
    %154 = vector.extract_strided_slice %152 {offsets = [0, 0], sizes = [8, 128], strides = [1, 1]} : vector<8x384xf32> to vector<8x128xf32>
    %155 = arith.addf %153, %154 : vector<8x128xf32>
    %156 = arith.negf %155 : vector<8x128xf32>
    %157 = math.exp %156 : vector<8x128xf32>
    %cst_45 = arith.constant 1.000000e+00 : f32
    %158 = vector.broadcast %cst_45 : f32 to vector<8x128xf32>
    %159 = arith.addf %158, %157 : vector<8x128xf32>
    %160 = arith.divf %158, %159 : vector<8x128xf32>
    %161 = vector.extract_strided_slice %150 {offsets = [0, 128], sizes = [8, 128], strides = [1, 1]} : vector<8x384xf32> to vector<8x128xf32>
    %162 = vector.extract_strided_slice %152 {offsets = [0, 128], sizes = [8, 128], strides = [1, 1]} : vector<8x384xf32> to vector<8x128xf32>
    %163 = arith.addf %161, %162 : vector<8x128xf32>
    %164 = arith.negf %163 : vector<8x128xf32>
    %165 = math.exp %164 : vector<8x128xf32>
    %cst_46 = arith.constant 1.000000e+00 : f32
    %166 = vector.broadcast %cst_46 : f32 to vector<8x128xf32>
    %167 = arith.addf %166, %165 : vector<8x128xf32>
    %168 = arith.divf %166, %167 : vector<8x128xf32>
    %169 = vector.extract_strided_slice %150 {offsets = [0, 256], sizes = [8, 128], strides = [1, 1]} : vector<8x384xf32> to vector<8x128xf32>
    %170 = vector.extract_strided_slice %152 {offsets = [0, 256], sizes = [8, 128], strides = [1, 1]} : vector<8x384xf32> to vector<8x128xf32>
    %171 = vector.broadcast %9 : vector<1x128xf32> to vector<8x128xf32>
    %172 = arith.addf %170, %171 : vector<8x128xf32>
    %173 = arith.mulf %160, %172 : vector<8x128xf32>
    %174 = arith.addf %169, %173 : vector<8x128xf32>
    %175 = math.tanh %174 : vector<8x128xf32>
    %cst_47 = arith.constant 1.000000e+00 : f32
    %176 = vector.broadcast %cst_47 : f32 to vector<8x128xf32>
    %177 = arith.subf %176, %168 : vector<8x128xf32>
    %178 = arith.mulf %177, %175 : vector<8x128xf32>
    %179 = arith.mulf %168, %142 : vector<8x128xf32>
    %180 = arith.addf %178, %179 : vector<8x128xf32>
    %181 = arith.addi %0, %c3_i32 : i32
    %182 = vector.broadcast %181 : i32 to vector<8x1xi32>
    %183 = arith.cmpi slt, %182, %1 : vector<8x1xi32>
    %184 = vector.shape_cast %183 : vector<8x1xi1> to vector<8x1xi1>
    %185 = vector.broadcast %184 : vector<8x1xi1> to vector<8x128xi1>
    %186 = arith.select %185, %180, %142 : vector<8x128xi1>, vector<8x128xf32>
    %187 = arith.truncf %186 : vector<8x128xf32> to vector<8x128xbf16>
    %188 = arith.index_cast %c3_i32 : i32 to index
    %c0_48 = arith.constant 0 : index
    %c0_49 = arith.constant 0 : index
    %189 = vector.load %arg15[%188, %c0_48, %c0_49] : memref<8x8x128xbf16, #tpu.memory_space<vmem>>, vector<1x8x128xbf16>
    %190 = vector.shape_cast %189 : vector<1x8x128xbf16> to vector<8x128xbf16>
    %191 = vector.shape_cast %187 : vector<8x128xbf16> to vector<1x8x128xbf16>
    tpu.vector_store %arg15[%188, %c0_48, %c0_49], %191 {strides = array<i32>} : memref<8x8x128xbf16, #tpu.memory_space<vmem>>, vector<1x8x128xbf16>,
    %c4_i32 = arith.constant 4 : i32
    %192 = arith.index_cast %c4_i32 : i32 to index
    %c0_50 = arith.constant 0 : index
    %c0_51 = arith.constant 0 : index
    %193 = vector.load %arg14[%192, %c0_50, %c0_51] : memref<8x8x384xf32, #tpu.memory_space<vmem>>, vector<1x8x384xf32>
    %194 = vector.shape_cast %193 : vector<1x8x384xf32> to vector<8x384xf32>
    %195 = arith.truncf %186 : vector<8x128xf32> to vector<8x128xbf16>
    %cst_52 = arith.constant dense<0.000000e+00> : vector<8x384xf32>
    %196 = tpu.matmul %195, %7, %cst_52 {dimension_numbers = #tpu.dot_dimension_numbers<[1], [0], [0], [1], [0, 0, 1, 1], [], []>} : vector<8x128xbf16>, vector<128x384xbf16>, vector<8x384xf32> -> vector<8x384xf32>
    %197 = vector.extract_strided_slice %194 {offsets = [0, 0], sizes = [8, 128], strides = [1, 1]} : vector<8x384xf32> to vector<8x128xf32>
    %198 = vector.extract_strided_slice %196 {offsets = [0, 0], sizes = [8, 128], strides = [1, 1]} : vector<8x384xf32> to vector<8x128xf32>
    %199 = arith.addf %197, %198 : vector<8x128xf32>
    %200 = arith.negf %199 : vector<8x128xf32>
    %201 = math.exp %200 : vector<8x128xf32>
    %cst_53 = arith.constant 1.000000e+00 : f32
    %202 = vector.broadcast %cst_53 : f32 to vector<8x128xf32>
    %203 = arith.addf %202, %201 : vector<8x128xf32>
    %204 = arith.divf %202, %203 : vector<8x128xf32>
    %205 = vector.extract_strided_slice %194 {offsets = [0, 128], sizes = [8, 128], strides = [1, 1]} : vector<8x384xf32> to vector<8x128xf32>
    %206 = vector.extract_strided_slice %196 {offsets = [0, 128], sizes = [8, 128], strides = [1, 1]} : vector<8x384xf32> to vector<8x128xf32>
    %207 = arith.addf %205, %206 : vector<8x128xf32>
    %208 = arith.negf %207 : vector<8x128xf32>
    %209 = math.exp %208 : vector<8x128xf32>
    %cst_54 = arith.constant 1.000000e+00 : f32
    %210 = vector.broadcast %cst_54 : f32 to vector<8x128xf32>
    %211 = arith.addf %210, %209 : vector<8x128xf32>
    %212 = arith.divf %210, %211 : vector<8x128xf32>
    %213 = vector.extract_strided_slice %194 {offsets = [0, 256], sizes = [8, 128], strides = [1, 1]} : vector<8x384xf32> to vector<8x128xf32>
    %214 = vector.extract_strided_slice %196 {offsets = [0, 256], sizes = [8, 128], strides = [1, 1]} : vector<8x384xf32> to vector<8x128xf32>
    %215 = vector.broadcast %9 : vector<1x128xf32> to vector<8x128xf32>
    %216 = arith.addf %214, %215 : vector<8x128xf32>
    %217 = arith.mulf %204, %216 : vector<8x128xf32>
    %218 = arith.addf %213, %217 : vector<8x128xf32>
    %219 = math.tanh %218 : vector<8x128xf32>
    %cst_55 = arith.constant 1.000000e+00 : f32
    %220 = vector.broadcast %cst_55 : f32 to vector<8x128xf32>
    %221 = arith.subf %220, %212 : vector<8x128xf32>
    %222 = arith.mulf %221, %219 : vector<8x128xf32>
    %223 = arith.mulf %212, %186 : vector<8x128xf32>
    %224 = arith.addf %222, %223 : vector<8x128xf32>
    %225 = arith.addi %0, %c4_i32 : i32
    %226 = vector.broadcast %225 : i32 to vector<8x1xi32>
    %227 = arith.cmpi slt, %226, %1 : vector<8x1xi32>
    %228 = vector.shape_cast %227 : vector<8x1xi1> to vector<8x1xi1>
    %229 = vector.broadcast %228 : vector<8x1xi1> to vector<8x128xi1>
    %230 = arith.select %229, %224, %186 : vector<8x128xi1>, vector<8x128xf32>
    %231 = arith.truncf %230 : vector<8x128xf32> to vector<8x128xbf16>
    %232 = arith.index_cast %c4_i32 : i32 to index
    %c0_56 = arith.constant 0 : index
    %c0_57 = arith.constant 0 : index
    %233 = vector.load %arg15[%232, %c0_56, %c0_57] : memref<8x8x128xbf16, #tpu.memory_space<vmem>>, vector<1x8x128xbf16>
    %234 = vector.shape_cast %233 : vector<1x8x128xbf16> to vector<8x128xbf16>
    %235 = vector.shape_cast %231 : vector<8x128xbf16> to vector<1x8x128xbf16>
    tpu.vector_store %arg15[%232, %c0_56, %c0_57], %235 {strides = array<i32>} : memref<8x8x128xbf16, #tpu.memory_space<vmem>>, vector<1x8x128xbf16>,
    %c5_i32 = arith.constant 5 : i32
    %236 = arith.index_cast %c5_i32 : i32 to index
    %c0_58 = arith.constant 0 : index
    %c0_59 = arith.constant 0 : index
    %237 = vector.load %arg14[%236, %c0_58, %c0_59] : memref<8x8x384xf32, #tpu.memory_space<vmem>>, vector<1x8x384xf32>
    %238 = vector.shape_cast %237 : vector<1x8x384xf32> to vector<8x384xf32>
    %239 = arith.truncf %230 : vector<8x128xf32> to vector<8x128xbf16>
    %cst_60 = arith.constant dense<0.000000e+00> : vector<8x384xf32>
    %240 = tpu.matmul %239, %7, %cst_60 {dimension_numbers = #tpu.dot_dimension_numbers<[1], [0], [0], [1], [0, 0, 1, 1], [], []>} : vector<8x128xbf16>, vector<128x384xbf16>, vector<8x384xf32> -> vector<8x384xf32>
    %241 = vector.extract_strided_slice %238 {offsets = [0, 0], sizes = [8, 128], strides = [1, 1]} : vector<8x384xf32> to vector<8x128xf32>
    %242 = vector.extract_strided_slice %240 {offsets = [0, 0], sizes = [8, 128], strides = [1, 1]} : vector<8x384xf32> to vector<8x128xf32>
    %243 = arith.addf %241, %242 : vector<8x128xf32>
    %244 = arith.negf %243 : vector<8x128xf32>
    %245 = math.exp %244 : vector<8x128xf32>
    %cst_61 = arith.constant 1.000000e+00 : f32
    %246 = vector.broadcast %cst_61 : f32 to vector<8x128xf32>
    %247 = arith.addf %246, %245 : vector<8x128xf32>
    %248 = arith.divf %246, %247 : vector<8x128xf32>
    %249 = vector.extract_strided_slice %238 {offsets = [0, 128], sizes = [8, 128], strides = [1, 1]} : vector<8x384xf32> to vector<8x128xf32>
    %250 = vector.extract_strided_slice %240 {offsets = [0, 128], sizes = [8, 128], strides = [1, 1]} : vector<8x384xf32> to vector<8x128xf32>
    %251 = arith.addf %249, %250 : vector<8x128xf32>
    %252 = arith.negf %251 : vector<8x128xf32>
    %253 = math.exp %252 : vector<8x128xf32>
    %cst_62 = arith.constant 1.000000e+00 : f32
    %254 = vector.broadcast %cst_62 : f32 to vector<8x128xf32>
    %255 = arith.addf %254, %253 : vector<8x128xf32>
    %256 = arith.divf %254, %255 : vector<8x128xf32>
    %257 = vector.extract_strided_slice %238 {offsets = [0, 256], sizes = [8, 128], strides = [1, 1]} : vector<8x384xf32> to vector<8x128xf32>
    %258 = vector.extract_strided_slice %240 {offsets = [0, 256], sizes = [8, 128], strides = [1, 1]} : vector<8x384xf32> to vector<8x128xf32>
    %259 = vector.broadcast %9 : vector<1x128xf32> to vector<8x128xf32>
    %260 = arith.addf %258, %259 : vector<8x128xf32>
    %261 = arith.mulf %248, %260 : vector<8x128xf32>
    %262 = arith.addf %257, %261 : vector<8x128xf32>
    %263 = math.tanh %262 : vector<8x128xf32>
    %cst_63 = arith.constant 1.000000e+00 : f32
    %264 = vector.broadcast %cst_63 : f32 to vector<8x128xf32>
    %265 = arith.subf %264, %256 : vector<8x128xf32>
    %266 = arith.mulf %265, %263 : vector<8x128xf32>
    %267 = arith.mulf %256, %230 : vector<8x128xf32>
    %268 = arith.addf %266, %267 : vector<8x128xf32>
    %269 = arith.addi %0, %c5_i32 : i32
    %270 = vector.broadcast %269 : i32 to vector<8x1xi32>
    %271 = arith.cmpi slt, %270, %1 : vector<8x1xi32>
    %272 = vector.shape_cast %271 : vector<8x1xi1> to vector<8x1xi1>
    %273 = vector.broadcast %272 : vector<8x1xi1> to vector<8x128xi1>
    %274 = arith.select %273, %268, %230 : vector<8x128xi1>, vector<8x128xf32>
    %275 = arith.truncf %274 : vector<8x128xf32> to vector<8x128xbf16>
    %276 = arith.index_cast %c5_i32 : i32 to index
    %c0_64 = arith.constant 0 : index
    %c0_65 = arith.constant 0 : index
    %277 = vector.load %arg15[%276, %c0_64, %c0_65] : memref<8x8x128xbf16, #tpu.memory_space<vmem>>, vector<1x8x128xbf16>
    %278 = vector.shape_cast %277 : vector<1x8x128xbf16> to vector<8x128xbf16>
    %279 = vector.shape_cast %275 : vector<8x128xbf16> to vector<1x8x128xbf16>
    tpu.vector_store %arg15[%276, %c0_64, %c0_65], %279 {strides = array<i32>} : memref<8x8x128xbf16, #tpu.memory_space<vmem>>, vector<1x8x128xbf16>,
    %c6_i32 = arith.constant 6 : i32
    %280 = arith.index_cast %c6_i32 : i32 to index
    %c0_66 = arith.constant 0 : index
    %c0_67 = arith.constant 0 : index
    %281 = vector.load %arg14[%280, %c0_66, %c0_67] : memref<8x8x384xf32, #tpu.memory_space<vmem>>, vector<1x8x384xf32>
    %282 = vector.shape_cast %281 : vector<1x8x384xf32> to vector<8x384xf32>
    %283 = arith.truncf %274 : vector<8x128xf32> to vector<8x128xbf16>
    %cst_68 = arith.constant dense<0.000000e+00> : vector<8x384xf32>
    %284 = tpu.matmul %283, %7, %cst_68 {dimension_numbers = #tpu.dot_dimension_numbers<[1], [0], [0], [1], [0, 0, 1, 1], [], []>} : vector<8x128xbf16>, vector<128x384xbf16>, vector<8x384xf32> -> vector<8x384xf32>
    %285 = vector.extract_strided_slice %282 {offsets = [0, 0], sizes = [8, 128], strides = [1, 1]} : vector<8x384xf32> to vector<8x128xf32>
    %286 = vector.extract_strided_slice %284 {offsets = [0, 0], sizes = [8, 128], strides = [1, 1]} : vector<8x384xf32> to vector<8x128xf32>
    %287 = arith.addf %285, %286 : vector<8x128xf32>
    %288 = arith.negf %287 : vector<8x128xf32>
    %289 = math.exp %288 : vector<8x128xf32>
    %cst_69 = arith.constant 1.000000e+00 : f32
    %290 = vector.broadcast %cst_69 : f32 to vector<8x128xf32>
    %291 = arith.addf %290, %289 : vector<8x128xf32>
    %292 = arith.divf %290, %291 : vector<8x128xf32>
    %293 = vector.extract_strided_slice %282 {offsets = [0, 128], sizes = [8, 128], strides = [1, 1]} : vector<8x384xf32> to vector<8x128xf32>
    %294 = vector.extract_strided_slice %284 {offsets = [0, 128], sizes = [8, 128], strides = [1, 1]} : vector<8x384xf32> to vector<8x128xf32>
    %295 = arith.addf %293, %294 : vector<8x128xf32>
    %296 = arith.negf %295 : vector<8x128xf32>
    %297 = math.exp %296 : vector<8x128xf32>
    %cst_70 = arith.constant 1.000000e+00 : f32
    %298 = vector.broadcast %cst_70 : f32 to vector<8x128xf32>
    %299 = arith.addf %298, %297 : vector<8x128xf32>
    %300 = arith.divf %298, %299 : vector<8x128xf32>
    %301 = vector.extract_strided_slice %282 {offsets = [0, 256], sizes = [8, 128], strides = [1, 1]} : vector<8x384xf32> to vector<8x128xf32>
    %302 = vector.extract_strided_slice %284 {offsets = [0, 256], sizes = [8, 128], strides = [1, 1]} : vector<8x384xf32> to vector<8x128xf32>
    %303 = vector.broadcast %9 : vector<1x128xf32> to vector<8x128xf32>
    %304 = arith.addf %302, %303 : vector<8x128xf32>
    %305 = arith.mulf %292, %304 : vector<8x128xf32>
    %306 = arith.addf %301, %305 : vector<8x128xf32>
    %307 = math.tanh %306 : vector<8x128xf32>
    %cst_71 = arith.constant 1.000000e+00 : f32
    %308 = vector.broadcast %cst_71 : f32 to vector<8x128xf32>
    %309 = arith.subf %308, %300 : vector<8x128xf32>
    %310 = arith.mulf %309, %307 : vector<8x128xf32>
    %311 = arith.mulf %300, %274 : vector<8x128xf32>
    %312 = arith.addf %310, %311 : vector<8x128xf32>
    %313 = arith.addi %0, %c6_i32 : i32
    %314 = vector.broadcast %313 : i32 to vector<8x1xi32>
    %315 = arith.cmpi slt, %314, %1 : vector<8x1xi32>
    %316 = vector.shape_cast %315 : vector<8x1xi1> to vector<8x1xi1>
    %317 = vector.broadcast %316 : vector<8x1xi1> to vector<8x128xi1>
    %318 = arith.select %317, %312, %274 : vector<8x128xi1>, vector<8x128xf32>
    %319 = arith.truncf %318 : vector<8x128xf32> to vector<8x128xbf16>
    %320 = arith.index_cast %c6_i32 : i32 to index
    %c0_72 = arith.constant 0 : index
    %c0_73 = arith.constant 0 : index
    %321 = vector.load %arg15[%320, %c0_72, %c0_73] : memref<8x8x128xbf16, #tpu.memory_space<vmem>>, vector<1x8x128xbf16>
    %322 = vector.shape_cast %321 : vector<1x8x128xbf16> to vector<8x128xbf16>
    %323 = vector.shape_cast %319 : vector<8x128xbf16> to vector<1x8x128xbf16>
    tpu.vector_store %arg15[%320, %c0_72, %c0_73], %323 {strides = array<i32>} : memref<8x8x128xbf16, #tpu.memory_space<vmem>>, vector<1x8x128xbf16>,
    %c7_i32 = arith.constant 7 : i32
    %324 = arith.index_cast %c7_i32 : i32 to index
    %c0_74 = arith.constant 0 : index
    %c0_75 = arith.constant 0 : index
    %325 = vector.load %arg14[%324, %c0_74, %c0_75] : memref<8x8x384xf32, #tpu.memory_space<vmem>>, vector<1x8x384xf32>
    %326 = vector.shape_cast %325 : vector<1x8x384xf32> to vector<8x384xf32>
    %327 = arith.truncf %318 : vector<8x128xf32> to vector<8x128xbf16>
    %cst_76 = arith.constant dense<0.000000e+00> : vector<8x384xf32>
    %328 = tpu.matmul %327, %7, %cst_76 {dimension_numbers = #tpu.dot_dimension_numbers<[1], [0], [0], [1], [0, 0, 1, 1], [], []>} : vector<8x128xbf16>, vector<128x384xbf16>, vector<8x384xf32> -> vector<8x384xf32>
    %329 = vector.extract_strided_slice %326 {offsets = [0, 0], sizes = [8, 128], strides = [1, 1]} : vector<8x384xf32> to vector<8x128xf32>
    %330 = vector.extract_strided_slice %328 {offsets = [0, 0], sizes = [8, 128], strides = [1, 1]} : vector<8x384xf32> to vector<8x128xf32>
    %331 = arith.addf %329, %330 : vector<8x128xf32>
    %332 = arith.negf %331 : vector<8x128xf32>
    %333 = math.exp %332 : vector<8x128xf32>
    %cst_77 = arith.constant 1.000000e+00 : f32
    %334 = vector.broadcast %cst_77 : f32 to vector<8x128xf32>
    %335 = arith.addf %334, %333 : vector<8x128xf32>
    %336 = arith.divf %334, %335 : vector<8x128xf32>
    %337 = vector.extract_strided_slice %326 {offsets = [0, 128], sizes = [8, 128], strides = [1, 1]} : vector<8x384xf32> to vector<8x128xf32>
    %338 = vector.extract_strided_slice %328 {offsets = [0, 128], sizes = [8, 128], strides = [1, 1]} : vector<8x384xf32> to vector<8x128xf32>
    %339 = arith.addf %337, %338 : vector<8x128xf32>
    %340 = arith.negf %339 : vector<8x128xf32>
    %341 = math.exp %340 : vector<8x128xf32>
    %cst_78 = arith.constant 1.000000e+00 : f32
    %342 = vector.broadcast %cst_78 : f32 to vector<8x128xf32>
    %343 = arith.addf %342, %341 : vector<8x128xf32>
    %344 = arith.divf %342, %343 : vector<8x128xf32>
    %345 = vector.extract_strided_slice %326 {offsets = [0, 256], sizes = [8, 128], strides = [1, 1]} : vector<8x384xf32> to vector<8x128xf32>
    %346 = vector.extract_strided_slice %328 {offsets = [0, 256], sizes = [8, 128], strides = [1, 1]} : vector<8x384xf32> to vector<8x128xf32>
    %347 = vector.broadcast %9 : vector<1x128xf32> to vector<8x128xf32>
    %348 = arith.addf %346, %347 : vector<8x128xf32>
    %349 = arith.mulf %336, %348 : vector<8x128xf32>
    %350 = arith.addf %345, %349 : vector<8x128xf32>
    %351 = math.tanh %350 : vector<8x128xf32>
    %cst_79 = arith.constant 1.000000e+00 : f32
    %352 = vector.broadcast %cst_79 : f32 to vector<8x128xf32>
    %353 = arith.subf %352, %344 : vector<8x128xf32>
    %354 = arith.mulf %353, %351 : vector<8x128xf32>
    %355 = arith.mulf %344, %318 : vector<8x128xf32>
    %356 = arith.addf %354, %355 : vector<8x128xf32>
    %357 = arith.addi %0, %c7_i32 : i32
    %358 = vector.broadcast %357 : i32 to vector<8x1xi32>
    %359 = arith.cmpi slt, %358, %1 : vector<8x1xi32>
    %360 = vector.shape_cast %359 : vector<8x1xi1> to vector<8x1xi1>
    %361 = vector.broadcast %360 : vector<8x1xi1> to vector<8x128xi1>
    %362 = arith.select %361, %356, %318 : vector<8x128xi1>, vector<8x128xf32>
    %363 = arith.truncf %362 : vector<8x128xf32> to vector<8x128xbf16>
    %364 = arith.index_cast %c7_i32 : i32 to index
    %c0_80 = arith.constant 0 : index
    %c0_81 = arith.constant 0 : index
    %365 = vector.load %arg15[%364, %c0_80, %c0_81] : memref<8x8x128xbf16, #tpu.memory_space<vmem>>, vector<1x8x128xbf16>
    %366 = vector.shape_cast %365 : vector<1x8x128xbf16> to vector<8x128xbf16>
    %367 = vector.shape_cast %363 : vector<8x128xbf16> to vector<1x8x128xbf16>
    tpu.vector_store %arg15[%364, %c0_80, %c0_81], %367 {strides = array<i32>} : memref<8x8x128xbf16, #tpu.memory_space<vmem>>, vector<1x8x128xbf16>,
    %c8_i32_82 = arith.constant 8 : i32
    %c0_83 = arith.constant 0 : index
    %c0_84 = arith.constant 0 : index
    %368 = vector.load %arg12[%c0_83, %c0_84] : memref<8x128xf32, #tpu.memory_space<vmem>>, vector<8x128xf32>
    tpu.vector_store %arg12[%c0_83, %c0_84], %362 {strides = array<i32>} : memref<8x128xf32, #tpu.memory_space<vmem>>, vector<8x128xf32>,
    %c0_85 = arith.constant 0 : index
    %c0_86 = arith.constant 0 : index
    %c0_87 = arith.constant 0 : index
    %369 = vector.load %arg15[%c0_85, %c0_86, %c0_87] : memref<8x8x128xbf16, #tpu.memory_space<vmem>>, vector<8x8x128xbf16>
    %370 = vector.shape_cast %369 : vector<8x8x128xbf16> to vector<64x128xbf16>
    %c0_88 = arith.constant 0 : index
    %c0_89 = arith.constant 0 : index
    %371 = vector.load %arg7[%c0_88, %c0_89] : memref<128x384xbf16, #tpu.memory_space<vmem>>, vector<128x384xbf16>
    %c0_90 = arith.constant 0 : index
    %c0_91 = arith.constant 0 : index
    %372 = vector.load %arg8[%c0_90, %c0_91] : memref<128x384xbf16, #tpu.memory_space<vmem>>, vector<128x384xbf16>
    %c0_92 = arith.constant 0 : index
    %c0_93 = arith.constant 0 : index
    %373 = vector.load %arg9[%c0_92, %c0_93] : memref<1x384xf32, #tpu.memory_space<vmem>>, vector<1x384xf32>
    %c0_94 = arith.constant 0 : index
    %c0_95 = arith.constant 0 : index
    %374 = vector.load %arg10[%c0_94, %c0_95] : memref<1x128xf32, #tpu.memory_space<vmem>>, vector<1x128xf32>
    %cst_96 = arith.constant dense<0.000000e+00> : vector<64x384xf32>
    %375 = tpu.matmul %370, %371, %cst_96 {dimension_numbers = #tpu.dot_dimension_numbers<[1], [0], [0], [1], [0, 0, 1, 1], [], []>} : vector<64x128xbf16>, vector<128x384xbf16>, vector<64x384xf32> -> vector<64x384xf32>
    %376 = vector.broadcast %373 : vector<1x384xf32> to vector<64x384xf32>
    %377 = arith.addf %375, %376 : vector<64x384xf32>
    %378 = vector.shape_cast %377 : vector<64x384xf32> to vector<8x8x384xf32>
    %c0_97 = arith.constant 0 : index
    %c0_98 = arith.constant 0 : index
    %c0_99 = arith.constant 0 : index
    %379 = vector.load %arg14[%c0_97, %c0_98, %c0_99] : memref<8x8x384xf32, #tpu.memory_space<vmem>>, vector<8x8x384xf32>
    tpu.vector_store %arg14[%c0_97, %c0_98, %c0_99], %378 {strides = array<i32>} : memref<8x8x384xf32, #tpu.memory_space<vmem>>, vector<8x8x384xf32>,
    %c0_100 = arith.constant 0 : index
    %c0_101 = arith.constant 0 : index
    %380 = vector.load %arg13[%c0_100, %c0_101] : memref<8x128xf32, #tpu.memory_space<vmem>>, vector<8x128xf32>
    %c0_i32_102 = arith.constant 0 : i32
    %381 = arith.index_cast %c0_i32_102 : i32 to index
    %c0_103 = arith.constant 0 : index
    %c0_104 = arith.constant 0 : index
    %382 = vector.load %arg14[%381, %c0_103, %c0_104] : memref<8x8x384xf32, #tpu.memory_space<vmem>>, vector<1x8x384xf32>
    %383 = vector.shape_cast %382 : vector<1x8x384xf32> to vector<8x384xf32>
    %384 = arith.truncf %380 : vector<8x128xf32> to vector<8x128xbf16>
    %cst_105 = arith.constant dense<0.000000e+00> : vector<8x384xf32>
    %385 = tpu.matmul %384, %372, %cst_105 {dimension_numbers = #tpu.dot_dimension_numbers<[1], [0], [0], [1], [0, 0, 1, 1], [], []>} : vector<8x128xbf16>, vector<128x384xbf16>, vector<8x384xf32> -> vector<8x384xf32>
    %386 = vector.extract_strided_slice %383 {offsets = [0, 0], sizes = [8, 128], strides = [1, 1]} : vector<8x384xf32> to vector<8x128xf32>
    %387 = vector.extract_strided_slice %385 {offsets = [0, 0], sizes = [8, 128], strides = [1, 1]} : vector<8x384xf32> to vector<8x128xf32>
    %388 = arith.addf %386, %387 : vector<8x128xf32>
    %389 = arith.negf %388 : vector<8x128xf32>
    %390 = math.exp %389 : vector<8x128xf32>
    %cst_106 = arith.constant 1.000000e+00 : f32
    %391 = vector.broadcast %cst_106 : f32 to vector<8x128xf32>
    %392 = arith.addf %391, %390 : vector<8x128xf32>
    %393 = arith.divf %391, %392 : vector<8x128xf32>
    %394 = vector.extract_strided_slice %383 {offsets = [0, 128], sizes = [8, 128], strides = [1, 1]} : vector<8x384xf32> to vector<8x128xf32>
    %395 = vector.extract_strided_slice %385 {offsets = [0, 128], sizes = [8, 128], strides = [1, 1]} : vector<8x384xf32> to vector<8x128xf32>
    %396 = arith.addf %394, %395 : vector<8x128xf32>
    %397 = arith.negf %396 : vector<8x128xf32>
    %398 = math.exp %397 : vector<8x128xf32>
    %cst_107 = arith.constant 1.000000e+00 : f32
    %399 = vector.broadcast %cst_107 : f32 to vector<8x128xf32>
    %400 = arith.addf %399, %398 : vector<8x128xf32>
    %401 = arith.divf %399, %400 : vector<8x128xf32>
    %402 = vector.extract_strided_slice %383 {offsets = [0, 256], sizes = [8, 128], strides = [1, 1]} : vector<8x384xf32> to vector<8x128xf32>
    %403 = vector.extract_strided_slice %385 {offsets = [0, 256], sizes = [8, 128], strides = [1, 1]} : vector<8x384xf32> to vector<8x128xf32>
    %404 = vector.broadcast %374 : vector<1x128xf32> to vector<8x128xf32>
    %405 = arith.addf %403, %404 : vector<8x128xf32>
    %406 = arith.mulf %393, %405 : vector<8x128xf32>
    %407 = arith.addf %402, %406 : vector<8x128xf32>
    %408 = math.tanh %407 : vector<8x128xf32>
    %cst_108 = arith.constant 1.000000e+00 : f32
    %409 = vector.broadcast %cst_108 : f32 to vector<8x128xf32>
    %410 = arith.subf %409, %401 : vector<8x128xf32>
    %411 = arith.mulf %410, %408 : vector<8x128xf32>
    %412 = arith.mulf %401, %380 : vector<8x128xf32>
    %413 = arith.addf %411, %412 : vector<8x128xf32>
    %414 = arith.addi %0, %c0_i32_102 : i32
    %415 = vector.broadcast %414 : i32 to vector<8x1xi32>
    %416 = arith.cmpi slt, %415, %1 : vector<8x1xi32>
    %417 = vector.shape_cast %416 : vector<8x1xi1> to vector<8x1xi1>
    %418 = vector.broadcast %417 : vector<8x1xi1> to vector<8x128xi1>
    %419 = arith.select %418, %413, %380 : vector<8x128xi1>, vector<8x128xf32>
    %c1_i32_109 = arith.constant 1 : i32
    %420 = arith.index_cast %c1_i32_109 : i32 to index
    %c0_110 = arith.constant 0 : index
    %c0_111 = arith.constant 0 : index
    %421 = vector.load %arg14[%420, %c0_110, %c0_111] : memref<8x8x384xf32, #tpu.memory_space<vmem>>, vector<1x8x384xf32>
    %422 = vector.shape_cast %421 : vector<1x8x384xf32> to vector<8x384xf32>
    %423 = arith.truncf %419 : vector<8x128xf32> to vector<8x128xbf16>
    %cst_112 = arith.constant dense<0.000000e+00> : vector<8x384xf32>
    %424 = tpu.matmul %423, %372, %cst_112 {dimension_numbers = #tpu.dot_dimension_numbers<[1], [0], [0], [1], [0, 0, 1, 1], [], []>} : vector<8x128xbf16>, vector<128x384xbf16>, vector<8x384xf32> -> vector<8x384xf32>
    %425 = vector.extract_strided_slice %422 {offsets = [0, 0], sizes = [8, 128], strides = [1, 1]} : vector<8x384xf32> to vector<8x128xf32>
    %426 = vector.extract_strided_slice %424 {offsets = [0, 0], sizes = [8, 128], strides = [1, 1]} : vector<8x384xf32> to vector<8x128xf32>
    %427 = arith.addf %425, %426 : vector<8x128xf32>
    %428 = arith.negf %427 : vector<8x128xf32>
    %429 = math.exp %428 : vector<8x128xf32>
    %cst_113 = arith.constant 1.000000e+00 : f32
    %430 = vector.broadcast %cst_113 : f32 to vector<8x128xf32>
    %431 = arith.addf %430, %429 : vector<8x128xf32>
    %432 = arith.divf %430, %431 : vector<8x128xf32>
    %433 = vector.extract_strided_slice %422 {offsets = [0, 128], sizes = [8, 128], strides = [1, 1]} : vector<8x384xf32> to vector<8x128xf32>
    %434 = vector.extract_strided_slice %424 {offsets = [0, 128], sizes = [8, 128], strides = [1, 1]} : vector<8x384xf32> to vector<8x128xf32>
    %435 = arith.addf %433, %434 : vector<8x128xf32>
    %436 = arith.negf %435 : vector<8x128xf32>
    %437 = math.exp %436 : vector<8x128xf32>
    %cst_114 = arith.constant 1.000000e+00 : f32
    %438 = vector.broadcast %cst_114 : f32 to vector<8x128xf32>
    %439 = arith.addf %438, %437 : vector<8x128xf32>
    %440 = arith.divf %438, %439 : vector<8x128xf32>
    %441 = vector.extract_strided_slice %422 {offsets = [0, 256], sizes = [8, 128], strides = [1, 1]} : vector<8x384xf32> to vector<8x128xf32>
    %442 = vector.extract_strided_slice %424 {offsets = [0, 256], sizes = [8, 128], strides = [1, 1]} : vector<8x384xf32> to vector<8x128xf32>
    %443 = vector.broadcast %374 : vector<1x128xf32> to vector<8x128xf32>
    %444 = arith.addf %442, %443 : vector<8x128xf32>
    %445 = arith.mulf %432, %444 : vector<8x128xf32>
    %446 = arith.addf %441, %445 : vector<8x128xf32>
    %447 = math.tanh %446 : vector<8x128xf32>
    %cst_115 = arith.constant 1.000000e+00 : f32
    %448 = vector.broadcast %cst_115 : f32 to vector<8x128xf32>
    %449 = arith.subf %448, %440 : vector<8x128xf32>
    %450 = arith.mulf %449, %447 : vector<8x128xf32>
    %451 = arith.mulf %440, %419 : vector<8x128xf32>
    %452 = arith.addf %450, %451 : vector<8x128xf32>
    %453 = arith.addi %0, %c1_i32_109 : i32
    %454 = vector.broadcast %453 : i32 to vector<8x1xi32>
    %455 = arith.cmpi slt, %454, %1 : vector<8x1xi32>
    %456 = vector.shape_cast %455 : vector<8x1xi1> to vector<8x1xi1>
    %457 = vector.broadcast %456 : vector<8x1xi1> to vector<8x128xi1>
    %458 = arith.select %457, %452, %419 : vector<8x128xi1>, vector<8x128xf32>
    %c2_i32_116 = arith.constant 2 : i32
    %459 = arith.index_cast %c2_i32_116 : i32 to index
    %c0_117 = arith.constant 0 : index
    %c0_118 = arith.constant 0 : index
    %460 = vector.load %arg14[%459, %c0_117, %c0_118] : memref<8x8x384xf32, #tpu.memory_space<vmem>>, vector<1x8x384xf32>
    %461 = vector.shape_cast %460 : vector<1x8x384xf32> to vector<8x384xf32>
    %462 = arith.truncf %458 : vector<8x128xf32> to vector<8x128xbf16>
    %cst_119 = arith.constant dense<0.000000e+00> : vector<8x384xf32>
    %463 = tpu.matmul %462, %372, %cst_119 {dimension_numbers = #tpu.dot_dimension_numbers<[1], [0], [0], [1], [0, 0, 1, 1], [], []>} : vector<8x128xbf16>, vector<128x384xbf16>, vector<8x384xf32> -> vector<8x384xf32>
    %464 = vector.extract_strided_slice %461 {offsets = [0, 0], sizes = [8, 128], strides = [1, 1]} : vector<8x384xf32> to vector<8x128xf32>
    %465 = vector.extract_strided_slice %463 {offsets = [0, 0], sizes = [8, 128], strides = [1, 1]} : vector<8x384xf32> to vector<8x128xf32>
    %466 = arith.addf %464, %465 : vector<8x128xf32>
    %467 = arith.negf %466 : vector<8x128xf32>
    %468 = math.exp %467 : vector<8x128xf32>
    %cst_120 = arith.constant 1.000000e+00 : f32
    %469 = vector.broadcast %cst_120 : f32 to vector<8x128xf32>
    %470 = arith.addf %469, %468 : vector<8x128xf32>
    %471 = arith.divf %469, %470 : vector<8x128xf32>
    %472 = vector.extract_strided_slice %461 {offsets = [0, 128], sizes = [8, 128], strides = [1, 1]} : vector<8x384xf32> to vector<8x128xf32>
    %473 = vector.extract_strided_slice %463 {offsets = [0, 128], sizes = [8, 128], strides = [1, 1]} : vector<8x384xf32> to vector<8x128xf32>
    %474 = arith.addf %472, %473 : vector<8x128xf32>
    %475 = arith.negf %474 : vector<8x128xf32>
    %476 = math.exp %475 : vector<8x128xf32>
    %cst_121 = arith.constant 1.000000e+00 : f32
    %477 = vector.broadcast %cst_121 : f32 to vector<8x128xf32>
    %478 = arith.addf %477, %476 : vector<8x128xf32>
    %479 = arith.divf %477, %478 : vector<8x128xf32>
    %480 = vector.extract_strided_slice %461 {offsets = [0, 256], sizes = [8, 128], strides = [1, 1]} : vector<8x384xf32> to vector<8x128xf32>
    %481 = vector.extract_strided_slice %463 {offsets = [0, 256], sizes = [8, 128], strides = [1, 1]} : vector<8x384xf32> to vector<8x128xf32>
    %482 = vector.broadcast %374 : vector<1x128xf32> to vector<8x128xf32>
    %483 = arith.addf %481, %482 : vector<8x128xf32>
    %484 = arith.mulf %471, %483 : vector<8x128xf32>
    %485 = arith.addf %480, %484 : vector<8x128xf32>
    %486 = math.tanh %485 : vector<8x128xf32>
    %cst_122 = arith.constant 1.000000e+00 : f32
    %487 = vector.broadcast %cst_122 : f32 to vector<8x128xf32>
    %488 = arith.subf %487, %479 : vector<8x128xf32>
    %489 = arith.mulf %488, %486 : vector<8x128xf32>
    %490 = arith.mulf %479, %458 : vector<8x128xf32>
    %491 = arith.addf %489, %490 : vector<8x128xf32>
    %492 = arith.addi %0, %c2_i32_116 : i32
    %493 = vector.broadcast %492 : i32 to vector<8x1xi32>
    %494 = arith.cmpi slt, %493, %1 : vector<8x1xi32>
    %495 = vector.shape_cast %494 : vector<8x1xi1> to vector<8x1xi1>
    %496 = vector.broadcast %495 : vector<8x1xi1> to vector<8x128xi1>
    %497 = arith.select %496, %491, %458 : vector<8x128xi1>, vector<8x128xf32>
    %c3_i32_123 = arith.constant 3 : i32
    %498 = arith.index_cast %c3_i32_123 : i32 to index
    %c0_124 = arith.constant 0 : index
    %c0_125 = arith.constant 0 : index
    %499 = vector.load %arg14[%498, %c0_124, %c0_125] : memref<8x8x384xf32, #tpu.memory_space<vmem>>, vector<1x8x384xf32>
    %500 = vector.shape_cast %499 : vector<1x8x384xf32> to vector<8x384xf32>
    %501 = arith.truncf %497 : vector<8x128xf32> to vector<8x128xbf16>
    %cst_126 = arith.constant dense<0.000000e+00> : vector<8x384xf32>
    %502 = tpu.matmul %501, %372, %cst_126 {dimension_numbers = #tpu.dot_dimension_numbers<[1], [0], [0], [1], [0, 0, 1, 1], [], []>} : vector<8x128xbf16>, vector<128x384xbf16>, vector<8x384xf32> -> vector<8x384xf32>
    %503 = vector.extract_strided_slice %500 {offsets = [0, 0], sizes = [8, 128], strides = [1, 1]} : vector<8x384xf32> to vector<8x128xf32>
    %504 = vector.extract_strided_slice %502 {offsets = [0, 0], sizes = [8, 128], strides = [1, 1]} : vector<8x384xf32> to vector<8x128xf32>
    %505 = arith.addf %503, %504 : vector<8x128xf32>
    %506 = arith.negf %505 : vector<8x128xf32>
    %507 = math.exp %506 : vector<8x128xf32>
    %cst_127 = arith.constant 1.000000e+00 : f32
    %508 = vector.broadcast %cst_127 : f32 to vector<8x128xf32>
    %509 = arith.addf %508, %507 : vector<8x128xf32>
    %510 = arith.divf %508, %509 : vector<8x128xf32>
    %511 = vector.extract_strided_slice %500 {offsets = [0, 128], sizes = [8, 128], strides = [1, 1]} : vector<8x384xf32> to vector<8x128xf32>
    %512 = vector.extract_strided_slice %502 {offsets = [0, 128], sizes = [8, 128], strides = [1, 1]} : vector<8x384xf32> to vector<8x128xf32>
    %513 = arith.addf %511, %512 : vector<8x128xf32>
    %514 = arith.negf %513 : vector<8x128xf32>
    %515 = math.exp %514 : vector<8x128xf32>
    %cst_128 = arith.constant 1.000000e+00 : f32
    %516 = vector.broadcast %cst_128 : f32 to vector<8x128xf32>
    %517 = arith.addf %516, %515 : vector<8x128xf32>
    %518 = arith.divf %516, %517 : vector<8x128xf32>
    %519 = vector.extract_strided_slice %500 {offsets = [0, 256], sizes = [8, 128], strides = [1, 1]} : vector<8x384xf32> to vector<8x128xf32>
    %520 = vector.extract_strided_slice %502 {offsets = [0, 256], sizes = [8, 128], strides = [1, 1]} : vector<8x384xf32> to vector<8x128xf32>
    %521 = vector.broadcast %374 : vector<1x128xf32> to vector<8x128xf32>
    %522 = arith.addf %520, %521 : vector<8x128xf32>
    %523 = arith.mulf %510, %522 : vector<8x128xf32>
    %524 = arith.addf %519, %523 : vector<8x128xf32>
    %525 = math.tanh %524 : vector<8x128xf32>
    %cst_129 = arith.constant 1.000000e+00 : f32
    %526 = vector.broadcast %cst_129 : f32 to vector<8x128xf32>
    %527 = arith.subf %526, %518 : vector<8x128xf32>
    %528 = arith.mulf %527, %525 : vector<8x128xf32>
    %529 = arith.mulf %518, %497 : vector<8x128xf32>
    %530 = arith.addf %528, %529 : vector<8x128xf32>
    %531 = arith.addi %0, %c3_i32_123 : i32
    %532 = vector.broadcast %531 : i32 to vector<8x1xi32>
    %533 = arith.cmpi slt, %532, %1 : vector<8x1xi32>
    %534 = vector.shape_cast %533 : vector<8x1xi1> to vector<8x1xi1>
    %535 = vector.broadcast %534 : vector<8x1xi1> to vector<8x128xi1>
    %536 = arith.select %535, %530, %497 : vector<8x128xi1>, vector<8x128xf32>
    %c4_i32_130 = arith.constant 4 : i32
    %537 = arith.index_cast %c4_i32_130 : i32 to index
    %c0_131 = arith.constant 0 : index
    %c0_132 = arith.constant 0 : index
    %538 = vector.load %arg14[%537, %c0_131, %c0_132] : memref<8x8x384xf32, #tpu.memory_space<vmem>>, vector<1x8x384xf32>
    %539 = vector.shape_cast %538 : vector<1x8x384xf32> to vector<8x384xf32>
    %540 = arith.truncf %536 : vector<8x128xf32> to vector<8x128xbf16>
    %cst_133 = arith.constant dense<0.000000e+00> : vector<8x384xf32>
    %541 = tpu.matmul %540, %372, %cst_133 {dimension_numbers = #tpu.dot_dimension_numbers<[1], [0], [0], [1], [0, 0, 1, 1], [], []>} : vector<8x128xbf16>, vector<128x384xbf16>, vector<8x384xf32> -> vector<8x384xf32>
    %542 = vector.extract_strided_slice %539 {offsets = [0, 0], sizes = [8, 128], strides = [1, 1]} : vector<8x384xf32> to vector<8x128xf32>
    %543 = vector.extract_strided_slice %541 {offsets = [0, 0], sizes = [8, 128], strides = [1, 1]} : vector<8x384xf32> to vector<8x128xf32>
    %544 = arith.addf %542, %543 : vector<8x128xf32>
    %545 = arith.negf %544 : vector<8x128xf32>
    %546 = math.exp %545 : vector<8x128xf32>
    %cst_134 = arith.constant 1.000000e+00 : f32
    %547 = vector.broadcast %cst_134 : f32 to vector<8x128xf32>
    %548 = arith.addf %547, %546 : vector<8x128xf32>
    %549 = arith.divf %547, %548 : vector<8x128xf32>
    %550 = vector.extract_strided_slice %539 {offsets = [0, 128], sizes = [8, 128], strides = [1, 1]} : vector<8x384xf32> to vector<8x128xf32>
    %551 = vector.extract_strided_slice %541 {offsets = [0, 128], sizes = [8, 128], strides = [1, 1]} : vector<8x384xf32> to vector<8x128xf32>
    %552 = arith.addf %550, %551 : vector<8x128xf32>
    %553 = arith.negf %552 : vector<8x128xf32>
    %554 = math.exp %553 : vector<8x128xf32>
    %cst_135 = arith.constant 1.000000e+00 : f32
    %555 = vector.broadcast %cst_135 : f32 to vector<8x128xf32>
    %556 = arith.addf %555, %554 : vector<8x128xf32>
    %557 = arith.divf %555, %556 : vector<8x128xf32>
    %558 = vector.extract_strided_slice %539 {offsets = [0, 256], sizes = [8, 128], strides = [1, 1]} : vector<8x384xf32> to vector<8x128xf32>
    %559 = vector.extract_strided_slice %541 {offsets = [0, 256], sizes = [8, 128], strides = [1, 1]} : vector<8x384xf32> to vector<8x128xf32>
    %560 = vector.broadcast %374 : vector<1x128xf32> to vector<8x128xf32>
    %561 = arith.addf %559, %560 : vector<8x128xf32>
    %562 = arith.mulf %549, %561 : vector<8x128xf32>
    %563 = arith.addf %558, %562 : vector<8x128xf32>
    %564 = math.tanh %563 : vector<8x128xf32>
    %cst_136 = arith.constant 1.000000e+00 : f32
    %565 = vector.broadcast %cst_136 : f32 to vector<8x128xf32>
    %566 = arith.subf %565, %557 : vector<8x128xf32>
    %567 = arith.mulf %566, %564 : vector<8x128xf32>
    %568 = arith.mulf %557, %536 : vector<8x128xf32>
    %569 = arith.addf %567, %568 : vector<8x128xf32>
    %570 = arith.addi %0, %c4_i32_130 : i32
    %571 = vector.broadcast %570 : i32 to vector<8x1xi32>
    %572 = arith.cmpi slt, %571, %1 : vector<8x1xi32>
    %573 = vector.shape_cast %572 : vector<8x1xi1> to vector<8x1xi1>
    %574 = vector.broadcast %573 : vector<8x1xi1> to vector<8x128xi1>
    %575 = arith.select %574, %569, %536 : vector<8x128xi1>, vector<8x128xf32>
    %c5_i32_137 = arith.constant 5 : i32
    %576 = arith.index_cast %c5_i32_137 : i32 to index
    %c0_138 = arith.constant 0 : index
    %c0_139 = arith.constant 0 : index
    %577 = vector.load %arg14[%576, %c0_138, %c0_139] : memref<8x8x384xf32, #tpu.memory_space<vmem>>, vector<1x8x384xf32>
    %578 = vector.shape_cast %577 : vector<1x8x384xf32> to vector<8x384xf32>
    %579 = arith.truncf %575 : vector<8x128xf32> to vector<8x128xbf16>
    %cst_140 = arith.constant dense<0.000000e+00> : vector<8x384xf32>
    %580 = tpu.matmul %579, %372, %cst_140 {dimension_numbers = #tpu.dot_dimension_numbers<[1], [0], [0], [1], [0, 0, 1, 1], [], []>} : vector<8x128xbf16>, vector<128x384xbf16>, vector<8x384xf32> -> vector<8x384xf32>
    %581 = vector.extract_strided_slice %578 {offsets = [0, 0], sizes = [8, 128], strides = [1, 1]} : vector<8x384xf32> to vector<8x128xf32>
    %582 = vector.extract_strided_slice %580 {offsets = [0, 0], sizes = [8, 128], strides = [1, 1]} : vector<8x384xf32> to vector<8x128xf32>
    %583 = arith.addf %581, %582 : vector<8x128xf32>
    %584 = arith.negf %583 : vector<8x128xf32>
    %585 = math.exp %584 : vector<8x128xf32>
    %cst_141 = arith.constant 1.000000e+00 : f32
    %586 = vector.broadcast %cst_141 : f32 to vector<8x128xf32>
    %587 = arith.addf %586, %585 : vector<8x128xf32>
    %588 = arith.divf %586, %587 : vector<8x128xf32>
    %589 = vector.extract_strided_slice %578 {offsets = [0, 128], sizes = [8, 128], strides = [1, 1]} : vector<8x384xf32> to vector<8x128xf32>
    %590 = vector.extract_strided_slice %580 {offsets = [0, 128], sizes = [8, 128], strides = [1, 1]} : vector<8x384xf32> to vector<8x128xf32>
    %591 = arith.addf %589, %590 : vector<8x128xf32>
    %592 = arith.negf %591 : vector<8x128xf32>
    %593 = math.exp %592 : vector<8x128xf32>
    %cst_142 = arith.constant 1.000000e+00 : f32
    %594 = vector.broadcast %cst_142 : f32 to vector<8x128xf32>
    %595 = arith.addf %594, %593 : vector<8x128xf32>
    %596 = arith.divf %594, %595 : vector<8x128xf32>
    %597 = vector.extract_strided_slice %578 {offsets = [0, 256], sizes = [8, 128], strides = [1, 1]} : vector<8x384xf32> to vector<8x128xf32>
    %598 = vector.extract_strided_slice %580 {offsets = [0, 256], sizes = [8, 128], strides = [1, 1]} : vector<8x384xf32> to vector<8x128xf32>
    %599 = vector.broadcast %374 : vector<1x128xf32> to vector<8x128xf32>
    %600 = arith.addf %598, %599 : vector<8x128xf32>
    %601 = arith.mulf %588, %600 : vector<8x128xf32>
    %602 = arith.addf %597, %601 : vector<8x128xf32>
    %603 = math.tanh %602 : vector<8x128xf32>
    %cst_143 = arith.constant 1.000000e+00 : f32
    %604 = vector.broadcast %cst_143 : f32 to vector<8x128xf32>
    %605 = arith.subf %604, %596 : vector<8x128xf32>
    %606 = arith.mulf %605, %603 : vector<8x128xf32>
    %607 = arith.mulf %596, %575 : vector<8x128xf32>
    %608 = arith.addf %606, %607 : vector<8x128xf32>
    %609 = arith.addi %0, %c5_i32_137 : i32
    %610 = vector.broadcast %609 : i32 to vector<8x1xi32>
    %611 = arith.cmpi slt, %610, %1 : vector<8x1xi32>
    %612 = vector.shape_cast %611 : vector<8x1xi1> to vector<8x1xi1>
    %613 = vector.broadcast %612 : vector<8x1xi1> to vector<8x128xi1>
    %614 = arith.select %613, %608, %575 : vector<8x128xi1>, vector<8x128xf32>
    %c6_i32_144 = arith.constant 6 : i32
    %615 = arith.index_cast %c6_i32_144 : i32 to index
    %c0_145 = arith.constant 0 : index
    %c0_146 = arith.constant 0 : index
    %616 = vector.load %arg14[%615, %c0_145, %c0_146] : memref<8x8x384xf32, #tpu.memory_space<vmem>>, vector<1x8x384xf32>
    %617 = vector.shape_cast %616 : vector<1x8x384xf32> to vector<8x384xf32>
    %618 = arith.truncf %614 : vector<8x128xf32> to vector<8x128xbf16>
    %cst_147 = arith.constant dense<0.000000e+00> : vector<8x384xf32>
    %619 = tpu.matmul %618, %372, %cst_147 {dimension_numbers = #tpu.dot_dimension_numbers<[1], [0], [0], [1], [0, 0, 1, 1], [], []>} : vector<8x128xbf16>, vector<128x384xbf16>, vector<8x384xf32> -> vector<8x384xf32>
    %620 = vector.extract_strided_slice %617 {offsets = [0, 0], sizes = [8, 128], strides = [1, 1]} : vector<8x384xf32> to vector<8x128xf32>
    %621 = vector.extract_strided_slice %619 {offsets = [0, 0], sizes = [8, 128], strides = [1, 1]} : vector<8x384xf32> to vector<8x128xf32>
    %622 = arith.addf %620, %621 : vector<8x128xf32>
    %623 = arith.negf %622 : vector<8x128xf32>
    %624 = math.exp %623 : vector<8x128xf32>
    %cst_148 = arith.constant 1.000000e+00 : f32
    %625 = vector.broadcast %cst_148 : f32 to vector<8x128xf32>
    %626 = arith.addf %625, %624 : vector<8x128xf32>
    %627 = arith.divf %625, %626 : vector<8x128xf32>
    %628 = vector.extract_strided_slice %617 {offsets = [0, 128], sizes = [8, 128], strides = [1, 1]} : vector<8x384xf32> to vector<8x128xf32>
    %629 = vector.extract_strided_slice %619 {offsets = [0, 128], sizes = [8, 128], strides = [1, 1]} : vector<8x384xf32> to vector<8x128xf32>
    %630 = arith.addf %628, %629 : vector<8x128xf32>
    %631 = arith.negf %630 : vector<8x128xf32>
    %632 = math.exp %631 : vector<8x128xf32>
    %cst_149 = arith.constant 1.000000e+00 : f32
    %633 = vector.broadcast %cst_149 : f32 to vector<8x128xf32>
    %634 = arith.addf %633, %632 : vector<8x128xf32>
    %635 = arith.divf %633, %634 : vector<8x128xf32>
    %636 = vector.extract_strided_slice %617 {offsets = [0, 256], sizes = [8, 128], strides = [1, 1]} : vector<8x384xf32> to vector<8x128xf32>
    %637 = vector.extract_strided_slice %619 {offsets = [0, 256], sizes = [8, 128], strides = [1, 1]} : vector<8x384xf32> to vector<8x128xf32>
    %638 = vector.broadcast %374 : vector<1x128xf32> to vector<8x128xf32>
    %639 = arith.addf %637, %638 : vector<8x128xf32>
    %640 = arith.mulf %627, %639 : vector<8x128xf32>
    %641 = arith.addf %636, %640 : vector<8x128xf32>
    %642 = math.tanh %641 : vector<8x128xf32>
    %cst_150 = arith.constant 1.000000e+00 : f32
    %643 = vector.broadcast %cst_150 : f32 to vector<8x128xf32>
    %644 = arith.subf %643, %635 : vector<8x128xf32>
    %645 = arith.mulf %644, %642 : vector<8x128xf32>
    %646 = arith.mulf %635, %614 : vector<8x128xf32>
    %647 = arith.addf %645, %646 : vector<8x128xf32>
    %648 = arith.addi %0, %c6_i32_144 : i32
    %649 = vector.broadcast %648 : i32 to vector<8x1xi32>
    %650 = arith.cmpi slt, %649, %1 : vector<8x1xi32>
    %651 = vector.shape_cast %650 : vector<8x1xi1> to vector<8x1xi1>
    %652 = vector.broadcast %651 : vector<8x1xi1> to vector<8x128xi1>
    %653 = arith.select %652, %647, %614 : vector<8x128xi1>, vector<8x128xf32>
    %c7_i32_151 = arith.constant 7 : i32
    %654 = arith.index_cast %c7_i32_151 : i32 to index
    %c0_152 = arith.constant 0 : index
    %c0_153 = arith.constant 0 : index
    %655 = vector.load %arg14[%654, %c0_152, %c0_153] : memref<8x8x384xf32, #tpu.memory_space<vmem>>, vector<1x8x384xf32>
    %656 = vector.shape_cast %655 : vector<1x8x384xf32> to vector<8x384xf32>
    %657 = arith.truncf %653 : vector<8x128xf32> to vector<8x128xbf16>
    %cst_154 = arith.constant dense<0.000000e+00> : vector<8x384xf32>
    %658 = tpu.matmul %657, %372, %cst_154 {dimension_numbers = #tpu.dot_dimension_numbers<[1], [0], [0], [1], [0, 0, 1, 1], [], []>} : vector<8x128xbf16>, vector<128x384xbf16>, vector<8x384xf32> -> vector<8x384xf32>
    %659 = vector.extract_strided_slice %656 {offsets = [0, 0], sizes = [8, 128], strides = [1, 1]} : vector<8x384xf32> to vector<8x128xf32>
    %660 = vector.extract_strided_slice %658 {offsets = [0, 0], sizes = [8, 128], strides = [1, 1]} : vector<8x384xf32> to vector<8x128xf32>
    %661 = arith.addf %659, %660 : vector<8x128xf32>
    %662 = arith.negf %661 : vector<8x128xf32>
    %663 = math.exp %662 : vector<8x128xf32>
    %cst_155 = arith.constant 1.000000e+00 : f32
    %664 = vector.broadcast %cst_155 : f32 to vector<8x128xf32>
    %665 = arith.addf %664, %663 : vector<8x128xf32>
    %666 = arith.divf %664, %665 : vector<8x128xf32>
    %667 = vector.extract_strided_slice %656 {offsets = [0, 128], sizes = [8, 128], strides = [1, 1]} : vector<8x384xf32> to vector<8x128xf32>
    %668 = vector.extract_strided_slice %658 {offsets = [0, 128], sizes = [8, 128], strides = [1, 1]} : vector<8x384xf32> to vector<8x128xf32>
    %669 = arith.addf %667, %668 : vector<8x128xf32>
    %670 = arith.negf %669 : vector<8x128xf32>
    %671 = math.exp %670 : vector<8x128xf32>
    %cst_156 = arith.constant 1.000000e+00 : f32
    %672 = vector.broadcast %cst_156 : f32 to vector<8x128xf32>
    %673 = arith.addf %672, %671 : vector<8x128xf32>
    %674 = arith.divf %672, %673 : vector<8x128xf32>
    %675 = vector.extract_strided_slice %656 {offsets = [0, 256], sizes = [8, 128], strides = [1, 1]} : vector<8x384xf32> to vector<8x128xf32>
    %676 = vector.extract_strided_slice %658 {offsets = [0, 256], sizes = [8, 128], strides = [1, 1]} : vector<8x384xf32> to vector<8x128xf32>
    %677 = vector.broadcast %374 : vector<1x128xf32> to vector<8x128xf32>
    %678 = arith.addf %676, %677 : vector<8x128xf32>
    %679 = arith.mulf %666, %678 : vector<8x128xf32>
    %680 = arith.addf %675, %679 : vector<8x128xf32>
    %681 = math.tanh %680 : vector<8x128xf32>
    %cst_157 = arith.constant 1.000000e+00 : f32
    %682 = vector.broadcast %cst_157 : f32 to vector<8x128xf32>
    %683 = arith.subf %682, %674 : vector<8x128xf32>
    %684 = arith.mulf %683, %681 : vector<8x128xf32>
    %685 = arith.mulf %674, %653 : vector<8x128xf32>
    %686 = arith.addf %684, %685 : vector<8x128xf32>
    %687 = arith.addi %0, %c7_i32_151 : i32
    %688 = vector.broadcast %687 : i32 to vector<8x1xi32>
    %689 = arith.cmpi slt, %688, %1 : vector<8x1xi32>
    %690 = vector.shape_cast %689 : vector<8x1xi1> to vector<8x1xi1>
    %691 = vector.broadcast %690 : vector<8x1xi1> to vector<8x128xi1>
    %692 = arith.select %691, %686, %653 : vector<8x128xi1>, vector<8x128xf32>
    %c8_i32_158 = arith.constant 8 : i32
    %c0_159 = arith.constant 0 : index
    %c0_160 = arith.constant 0 : index
    %693 = vector.load %arg13[%c0_159, %c0_160] : memref<8x128xf32, #tpu.memory_space<vmem>>, vector<8x128xf32>
    tpu.vector_store %arg13[%c0_159, %c0_160], %692 {strides = array<i32>} : memref<8x128xf32, #tpu.memory_space<vmem>>, vector<8x128xf32>,
    %c1_i32_161 = arith.constant 1 : i32
    %694 = arith.cmpi eq, %arg0, %c1_i32_161 : i32
    %695 = arith.extui %694 : i1 to i32
    %c0_i32_162 = arith.constant 0 : i32
    %696 = arith.cmpi ne, %695, %c0_i32_162 : i32
    scf.if %696 {
      %c0_163 = arith.constant 0 : index
      %c0_164 = arith.constant 0 : index
      %697 = vector.load %arg13[%c0_163, %c0_164] : memref<8x128xf32, #tpu.memory_space<vmem>>, vector<8x128xf32>
      %698 = arith.mulf %697, %697 : vector<8x128xf32>
      %cst_165 = arith.constant dense<0.000000e+00> : vector<8xf32>
      %699 = vector.multi_reduction <add>, %698, %cst_165 [1] : vector<8x128xf32> to vector<8xf32>
      %700 = vector.shape_cast %699 : vector<8xf32> to vector<8x1xf32>
      %701 = math.sqrt %700 : vector<8x1xf32>
      %cst_166 = arith.constant 9.99999996E-13 : f32
      %702 = vector.broadcast %cst_166 : f32 to vector<8x1xf32>
      %703 = arith.maximumf %701, %702 : vector<8x1xf32>
      %704 = vector.broadcast %703 : vector<8x1xf32> to vector<8x128xf32>
      %705 = arith.divf %697, %704 : vector<8x128xf32>
      %706 = math.absf %705 : vector<8x128xf32>
      %c0_167 = arith.constant 0 : index
      %c0_168 = arith.constant 0 : index
      %707 = vector.load %arg11[%c0_167, %c0_168] : memref<8x128xf32, #tpu.memory_space<vmem>>, vector<8x128xf32>
      tpu.vector_store %arg11[%c0_167, %c0_168], %706 {strides = array<i32>} : memref<8x128xf32, #tpu.memory_space<vmem>>, vector<8x128xf32>,
    } else {
    }
    return
  }
  func.func @transform_0(%arg0: i32) -> (i32, i32) {
    %c0_i32 = arith.constant 0 : i32
    %c0_i32_0 = arith.constant 0 : i32
    return %arg0, %c0_i32 : i32, i32
  }
  func.func @transform_1(%arg0: i32) -> (i32, i32) {
    %c0_i32 = arith.constant 0 : i32
    %c0_i32_0 = arith.constant 0 : i32
    %c0_i32_1 = arith.constant 0 : i32
    return %c0_i32, %c0_i32_0 : i32, i32
  }
  func.func @transform_2(%arg0: i32) -> (i32, i32) {
    %c0_i32 = arith.constant 0 : i32
    %c0_i32_0 = arith.constant 0 : i32
    %c0_i32_1 = arith.constant 0 : i32
    return %c0_i32, %c0_i32_0 : i32, i32
  }
  func.func @transform_3(%arg0: i32) -> (i32, i32) {
    %c0_i32 = arith.constant 0 : i32
    %c0_i32_0 = arith.constant 0 : i32
    %c0_i32_1 = arith.constant 0 : i32
    return %c0_i32, %c0_i32_0 : i32, i32
  }
  func.func @transform_4(%arg0: i32) -> (i32, i32) {
    %c0_i32 = arith.constant 0 : i32
    %c0_i32_0 = arith.constant 0 : i32
    %c0_i32_1 = arith.constant 0 : i32
    return %c0_i32, %c0_i32_0 : i32, i32
  }
  func.func @transform_5(%arg0: i32) -> (i32, i32) {
    %c0_i32 = arith.constant 0 : i32
    %c0_i32_0 = arith.constant 0 : i32
    %c0_i32_1 = arith.constant 0 : i32
    return %c0_i32, %c0_i32_0 : i32, i32
  }
  func.func @transform_6(%arg0: i32) -> (i32, i32) {
    %c0_i32 = arith.constant 0 : i32
    %c0_i32_0 = arith.constant 0 : i32
    %c0_i32_1 = arith.constant 0 : i32
    return %c0_i32, %c0_i32_0 : i32, i32
  }
  func.func @transform_7(%arg0: i32) -> (i32, i32) {
    %c0_i32 = arith.constant 0 : i32
    %c0_i32_0 = arith.constant 0 : i32
    %c0_i32_1 = arith.constant 0 : i32
    return %c0_i32, %c0_i32_0 : i32, i32
  }
  func.func @transform_8(%arg0: i32) -> (i32, i32) {
    %c0_i32 = arith.constant 0 : i32
    %c0_i32_0 = arith.constant 0 : i32
    %c0_i32_1 = arith.constant 0 : i32
    return %c0_i32, %c0_i32_0 : i32, i32
  }
  func.func @transform_9(%arg0: i32) -> (i32, i32) {
    %c0_i32 = arith.constant 0 : i32
    %c0_i32_0 = arith.constant 0 : i32
    %c0_i32_1 = arith.constant 0 : i32
    return %c0_i32, %c0_i32_0 : i32, i32
  }
  func.func @transform_10(%arg0: i32) -> (i32, i32) {
    %c0_i32 = arith.constant 0 : i32
    %c0_i32_0 = arith.constant 0 : i32
    %c0_i32_1 = arith.constant 0 : i32
    return %c0_i32, %c0_i32_0 : i32, i32
  }
}

</mosaic_0001>

<bundles_post_ra>
// kernel: tpu_custom_call.1
= control target key start
LH: loop header
LB: loop body
LE: loop exit
PB: predicated region body
PF: predicated region fallthrough
CT: control target
= control target key end

     0   :  { %15 = vsyncpa [#allocation7], 0  ;;  %s5870_s0 = inlined_call_operand.vmem [shape: bf16[128,64], index: 0, kind: input, shape index: {}]   ;;  %s5871_s1 = inlined_call_operand.vmem [shape: s32[8,1], index: 1, kind: input, shape index: {}]   ;;  %s5872_s2 = inlined_call_operand.vmem [shape: bf16[64,384], index: 2, kind: input, shape index: {}]   ;;  %s5873_s3 = inlined_call_operand.hbm [shape: bf16[128,384], index: 3, kind: input, shape index: {}]   ;;  %s5874_s4 = inlined_call_operand.vmem [shape: f32[1,384], index: 4, kind: input, shape index: {}]   ;;  %s5875_s5 = inlined_call_operand.vmem [shape: f32[1,128], index: 5, kind: input, shape index: {}]   ;;  %s5876_s6 = inlined_call_operand.hbm [shape: bf16[128,384], index: 6, kind: input, shape index: {}]   ;;  %s5877_s7 = inlined_call_operand.hbm [shape: bf16[128,384], index: 7, kind: input, shape index: {}]   ;;  %s5878_s8 = inlined_call_operand.vmem [shape: f32[1,384], index: 8, kind: input, shape index: {}]   ;;  %s5879_s9 = inlined_call_operand.vmem [shape: f32[1,128], index: 9, kind: input, shape index: {}]   ;;  %s5880_s10 = inlined_call_operand.hbm [shape: f32[8,128], index: 10, kind: output, shape index: {}]  }
   0x1   :  { %16 = vsyncpa [#allocation10], 0 }
   0x2   :  { %17 = vsyncpa [#allocation8], 0  ;;  %s4581_s13 = smov 0  }
   0x3 LB: > { %s4587_s14 = sadd.s32 4294967295, %s4514_s13   ;;  %p3323_p0 = scmp.ge.s32.totalorder %s4514_s13, 1  ;;  %s4514_s13 = sphi %s4581_s13, %s23_s13  }
   0x4   : > { %p264_p1 = scmp.lt.s32.totalorder %s4514_s13, 3  ;;  %p5881_p3 = scmp.eq.s32.totalorder %s4587_s14, 0 }
   0x5   : > { %s4516_s16 = smov [#allocation9]   ;;  %s4517_s18 = smov [#allocation6]  }
   0x6   : > { %p4593_p4 = pnand %p3323_p0, %p264_p1  ;;  %s301_s17 = sshll.u32 %s4516_s16, 4  ;;  %s302_s17 = int_to_ptr.vmem [resolvable:$true] %s301_s17 }
   0x7   : > { %s282_s19 = sshll.u32 %s4517_s18, 4  ;;  %s4518_s21 = smov [#allocation11]   ;;  %s4605_s19 = int_to_ptr.vmem [resolvable:$true] %s282_s19 }
   0x8   : > { %s5896_s15 = scalar_select %p4593_p4, 1, 0 }
   0x9   : > { %p4015_p5 = pneg %p4593_p4  ;;  %s314_s22 = sshll.u32 %s4518_s21, 4  ;;  %s4607_s22 = int_to_ptr.vmem [resolvable:$true] %s314_s22 }
   0xa   : > { %s4386_s25 = scalar_lea.hbm %s5876_s6, 3072 }
   0xb   : > { %p4601_p6 = pnand %p5881_p3, %p4015_p5  ;;  %p4387_p7 = scmp.ne.s32.totalorder %s5876_s6, %s4386_s25 }
   0xc   : > { %p4393_p11 = scmp.lt.u32.totalorder %s4386_s25, %s5876_s6 }
   0xd   : > { %p4617_p8 = pneg %p4601_p6 }
   0xf   : > { %p4389_p9 = pnand %p4617_p8, %p4387_p7 }
  0x11   : > { %p4390_p10 = pneg %p4389_p9 }
  0x13   : > { %p4395_p12 = pnand %p4393_p11, %p4390_p10 }
  0x15   : > { %4398 = shalt.err (!%p4395_p12)
}
  0x16   : > { %s4399_s11 = scalar_lea.vmem %s302_s17, 3072  ;;  %p4407_p5 = scmp.lt.s32.totalorder %s302_s17, %s302_s17 }
  0x17   : > { %p4400_p13 = scmp.ne.s32.totalorder %s302_s17, %s4399_s11  ;;  %p4408_p2 = scmp.lt.s32.totalorder %s4399_s11, %s4399_s11 }
  0x19   : > { %p4402_p0 = pnand %p4400_p13, %p4617_p8  ;;  %p4409_p3 = por %p4408_p2, %p4407_p5 }
  0x1b   : > { %p4403_p1 = pneg %p4402_p0 }
  0x1d   : > { %p4410_p4 = pnand %p4409_p3, %p4403_p1 }
  0x1f   : > { %4413 = shalt.err (!%p4410_p4)
}
  0x20   : > { %s4519_s12 = smov 192   ;;  %s4520_s16 = smov 12  }
  0x21   : > { %4021 = dma.hbm_to_vmem [thread:$0]  (!%p4601_p6), %s5876_s6, 3072, %s302_s17, [#allocation10], %s4519_s12, %s4519_s12, %s4520_s16  }
  0x22   : > { %s4414_s25 = scalar_lea.hbm %s5873_s3, 3072 }
  0x23   : > { %p4415_p2 = scmp.ne.s32.totalorder %s5873_s3, %s4414_s25  ;;  %p4421_p7 = scmp.lt.u32.totalorder %s4414_s25, %s5873_s3 }
  0x25   : > { %p4417_p3 = pnand %p4415_p2, %p4617_p8 }
  0x27   : > { %p4418_p4 = pneg %p4417_p3 }
  0x29   : > { %p4423_p9 = pnand %p4421_p7, %p4418_p4 }
  0x2b   : > { %4426 = shalt.err (!%p4423_p9)
}
  0x2c   : > { %s4427_s17 = scalar_lea.vmem %s4605_s19, 3072  ;;  %p4435_p13 = scmp.lt.s32.totalorder %s4605_s19, %s4605_s19 }
  0x2d   : > { %p4428_p10 = scmp.ne.s32.totalorder %s4605_s19, %s4427_s17  ;;  %p4436_p0 = scmp.lt.s32.totalorder %s4427_s17, %s4427_s17 }
  0x2f   : > { %p4430_p11 = pnand %p4428_p10, %p4617_p8  ;;  %p4437_p1 = por %p4436_p0, %p4435_p13 }
  0x31   : > { %p4431_p12 = pneg %p4430_p11 }
  0x33   : > { %p4438_p5 = pnand %p4437_p1, %p4431_p12 }
  0x35   : > { %4441 = shalt.err (!%p4438_p5)
}
  0x36   : > { %4018 = dma.hbm_to_vmem [thread:$0]  (!%p4601_p6), %s5873_s3, 3072, %s4605_s19, [#allocation7], %s4519_s12, %s4519_s12, %s4520_s16  }
  0x37   : > { %s4442_s24 = scalar_lea.hbm %s5877_s7, 3072 }
  0x38   : > { %p4443_p2 = scmp.ne.s32.totalorder %s5877_s7, %s4442_s24  ;;  %p4449_p7 = scmp.lt.u32.totalorder %s4442_s24, %s5877_s7 }
  0x3a   : > { %p4445_p3 = pnand %p4443_p2, %p4617_p8 }
  0x3c   : > { %p4446_p4 = pneg %p4445_p3 }
  0x3e   : > { %p4451_p9 = pnand %p4449_p7, %p4446_p4 }
  0x40   : > { %4454 = shalt.err (!%p4451_p9)
}
  0x41   : > { %s4455_s19 = scalar_lea.vmem %s4607_s22, 3072  ;;  %p4463_p13 = scmp.lt.s32.totalorder %s4607_s22, %s4607_s22 }
  0x42   : > { %p4456_p10 = scmp.ne.s32.totalorder %s4607_s22, %s4455_s19  ;;  %p4464_p0 = scmp.lt.s32.totalorder %s4455_s19, %s4455_s19 }
  0x44   : > { %p4458_p11 = pnand %p4456_p10, %p4617_p8  ;;  %p4465_p1 = por %p4464_p0, %p4463_p13 }
  0x46   : > { %p4459_p12 = pneg %p4458_p11 }
  0x48   : > { %p4466_p5 = pnand %p4465_p1, %p4459_p12 }
  0x4a   : > { %4469 = shalt.err (!%p4466_p5)
}
  0x4b   : > { %4024 = dma.hbm_to_vmem [thread:$0]  (!%p4601_p6), %s5877_s7, 3072, %s4607_s22, [#allocation10], %s4519_s12, %s4519_s12, %s4520_s16  }
  0x4c   : > { %p5899_p2 = scmp.ne.s32.totalorder %s5896_s15, 0 }
  0x4e   : > { %345 = sbr.rel (%p5899_p2) target bundleno = 4567 (0x11d7), region = 60 }
  0x55   : > { %p5900_p8 = scmp.eq.s32.totalorder %s4587_s14, 0 }
  0x57   : > { %4501 = dma.done.wait (%p5900_p8), [#allocation7], 3072   ;;  %p5901_p3 = pmov %p5900_p8 }
  0x59   : > { %4503 = vsyncadd (%p5901_p3), [#allocation7], 4294964224  ;;  %p5902_p4 = pmov %p5901_p3 }
  0x5a   : > { %p5903_p7 = pmov %p5901_p3 }
  0x5b   : > { %4505 = dma.done.wait (%p5902_p4), [#allocation10], 6144  }
  0x5c   : > { %4507 = vsyncadd (%p5903_p7), [#allocation10], 4294961152  ;;  %s4699_s20 = sshll.u32 %s4587_s14, 3  ;;  %v4711_v0 = vld [vmem:[%s5871_s1] sm:$0xff]  ;;  %p5904_p9 = scmp.ne.s32.totalorder %s4587_s14, 0 }
  0x5d   : > { %p387_p6 = scmp.lt.s32.totalorder %s4699_s20, 15  ;;  %v4521_v1 = vmov (!%p5904_p9), 0.0  }
  0x5e   : > { %398 = sbr.rel (%p5904_p9) target bundleno = 101 (0x65), region = 76  ;;  %399 = vst [vmem:[#allocation2] sm:$0xff] (!%p5904_p9), %v4521_v1  ;;  %400 = vst [vmem:[#allocation3] sm:$0xff] (!%p5904_p9), %v4521_v1 }
  0x5f   : > { %s388_s15 = scalar_select %p387_p6, %s4699_s20, 15 }
  0x60   : > { %401 = vst [vmem:[#allocation12] sm:$0xff] (!%p5904_p9), %v4521_v1 }
  0x61   : > { %s3333_s22 = sshll.u32 %s388_s15, 2 }
  0x62   : > { %s4706_s16 = scalar_lea.vmem %s5870_s0, %s3333_s22 }
  0x65 PF: > { %v4053_v2 = vld [vmem:[%s5872_s2 + $0x4] ss:$12 sps:$4 sm:$0xff]   ;;  %v977_v3 = vstv %s4699_s20  ;;  %v4055_v4 = vld [vmem:[%s5872_s2] ss:$12 sps:$4 sm:$0xff]   ;;  %v5886_v5 = vmov 0   ;;  %s1094_s30 = sadd.s32 1, %s4699_s20  ;;  %v461_v54 = vlaneseq }
  0x66   : > { %605 = vmatprep.mubr.bf16.mxu0 %v5886_v5  ;;  %4051 = vset.pattern.permute.xlu0 %v5886_v5  ;;  %vm978_vm0 = vcmp.lt.s32.totalorder %v977_v3, %v4711_v0  ;;  %v4056_v6 = vld [vmem:[%s5872_s2 + $0x1c] ss:$12 sps:$4 sm:$0xff]   ;;  %v4058_v8 = vld [vmem:[%s5872_s2 + $0x18] ss:$12 sps:$4 sm:$0xff]   ;;  %v4059_v9 = vld [vmem:[%s5872_s2 + $0x34] ss:$12 sps:$4 sm:$0xff]   ;;  %v1095_v10 = vstv %s1094_s30 }
  0x67   : > { %573 = vmatprep.subr.bf16.mxu0 %v4053_v2  ;;  %v979_v7 = vsel %vm978_vm0, 1, %v5886_v5  ;;  %4052 = vset.pattern.permute.xlu1 %v5886_v5  ;;  %s1451_s22 = sadd.s32 4, %s4699_s20  ;;  %s1689_s28 = sadd.s32 6, %s4699_s20  ;;  %vm1096_vm1 = vcmp.lt.s32.totalorder %v1095_v10, %v4711_v0  ;;  %v4065_v12 = vld [vmem:[%s4706_s16] sm:$0xff]   ;;  %v4061_v14 = vld [vmem:[%s5872_s2 + $0x30] ss:$12 sps:$4 sm:$0xff]  }
  0x68   : > { %574 = vmatpush1.bf16.msra.mxu0 %v4055_v4  ;;  %981 = vperm.xlu0 %4051, %v979_v7   ;;  %v1452_v11 = vstv %s1451_s22  ;;  %v1097_v13 = vsel %vm1096_vm1, 1, %v5886_v5  ;;  %vm560_vm3 = vcmask 523264   ;;  %v1690_v15 = vstv %s1689_s28  ;;  %v4062_v16 = vld [vmem:[%s5872_s2 + $0x4c] ss:$12 sps:$4 sm:$0xff]   ;;  %v4073_v18 = vld [vmem:[%s5872_s2 + $0x8] ss:$12 sps:$4 sm:$0xff]  }
  0x69   : > { %575 = vmatprep.subr.bf16.mxu0 %v4056_v6  ;;  %vm1453_vm2 = vcmp.lt.s32.totalorder %v1452_v11, %v4711_v0  ;;  %3647 = vmatprep.mubr.msk.bf16.mxu1 %vm560_vm3, %v4065_v12  ;;  %vm1691_vm4 = vcmp.lt.s32.totalorder %v1690_v15, %v4711_v0  ;;  %v4064_v19 = vld [vmem:[%s5872_s2 + $0x48] ss:$12 sps:$4 sm:$0xff]   ;;  %v4077_v21 = vld [vmem:[%s5872_s2 + $0x20] ss:$12 sps:$4 sm:$0xff]   ;;  %v4764_v23 = vld [vmem:[#allocation6] ss:$12 sps:$4 sm:$0xff]  }
  0x6a   : > { %v1454_v17 = vsel %vm1453_vm2, 1, %v5886_v5  ;;  %v4758_v20 = vld [vmem:[#allocation6 + $0x4] ss:$12 sps:$4 sm:$0xff]   ;;  %3639 = vmatprep.subr.bf16.mxu1 %v4073_v18  ;;  %v1692_v22 = vsel %vm1691_vm4, 1, %v5886_v5  ;;  %v4766_v24 = vld [vmem:[#allocation6 + $0x1c] ss:$12 sps:$4 sm:$0xff]  }
  0x6b   : > { %3640 = vmatpush3.bf16.msra.mxu1 %v4073_v18  ;;  %v4082_v25 = vld [vmem:[%s5872_s2 + $0x38] ss:$12 sps:$4 sm:$0xff]   ;;  %v4086_v26 = vld [vmem:[%s5872_s2 + $0x50] ss:$12 sps:$4 sm:$0xff]   ;;  %v4777_v27 = vld [vmem:[#allocation6 + $0x18] ss:$12 sps:$4 sm:$0xff]  }
  0x6c   : > { %576 = vmatpush1.bf16.msra.mxu0 %v4058_v8  ;;  %1099 = vperm.xlu0 %4051, %v1097_v13   ;;  %v4781_v28 = vld [vmem:[#allocation6 + $0x34] ss:$12 sps:$4 sm:$0xff]   ;;  %v4072_v29 = vld [vmem:[%s4706_s16 + $0x8] sm:$0xff]   ;;  %v5888_v34 = vmov 0.0   ;;  %v4800_v36 = vld [vmem:[#allocation6 + $0x64] ss:$12 sps:$4 sm:$0xff]  }
  0x6d   : > { %577 = vmatprep.subr.bf16.mxu0 %v4059_v9  ;;  %3641 = vmatprep.subr.bf16.mxu1 %v4077_v21  ;;  %v4785_v30 = vld [vmem:[#allocation6 + $0x30] ss:$12 sps:$4 sm:$0xff]   ;;  %v4788_v31 = vld [vmem:[#allocation6 + $0x4c] ss:$12 sps:$4 sm:$0xff]   ;;  %v4790_v32 = vld [vmem:[#allocation6 + $0x8] ss:$12 sps:$4 sm:$0xff]  }
  0x6e   : > { %v4793_v33 = vld [vmem:[#allocation6 + $0x48] ss:$12 sps:$4 sm:$0xff]   ;;  %v4081_v35 = vld [vmem:[%s4706_s16 + $0x10] sm:$0xff]   ;;  %v4826_v44 = vld [vmem:[#allocation6 + $0x50] ss:$12 sps:$4 sm:$0xff]   ;;  %vm4524_vm5 = vmmov 0  }
  0x6f   : > { %3642 = vmatpush3.bf16.msra.mxu1 %v4077_v21  ;;  %v4804_v37 = vld [vmem:[#allocation6 + $0x20] ss:$12 sps:$4 sm:$0xff]   ;;  %v4811_v39 = vld [vmem:[#allocation6 + $0x7c] ss:$12 sps:$4 sm:$0xff]   ;;  %v4815_v41 = vld [vmem:[#allocation6 + $0x38] ss:$12 sps:$4 sm:$0xff]  }
  0x70   : > { %578 = vmatpush1.bf16.msra.mxu0 %v4061_v14  ;;  %1456 = vperm.xlu0 %4051, %v1454_v17   ;;  %v4807_v38 = vld [vmem:[#allocation6 + $0x60] ss:$12 sps:$4 sm:$0xff]   ;;  %v4817_v42 = vld [vmem:[#allocation6 + $0x78] ss:$12 sps:$4 sm:$0xff]   ;;  %v4830_v45 = vld [vmem:[#allocation6 + $0x90] ss:$12 sps:$4 sm:$0xff]  }
  0x71   : > { %579 = vmatprep.subr.bf16.mxu0 %v4062_v16  ;;  %3643 = vmatprep.subr.bf16.mxu1 %v4082_v25  ;;  %v4090_v40 = vld [vmem:[%s4706_s16 + $0x18] sm:$0xff]   ;;  %v4821_v43 = vld [vmem:[#allocation6 + $0x94] ss:$12 sps:$4 sm:$0xff]   ;;  %v4859_v52 = vld [vmem:[#allocation6 + $0x98] ss:$12 sps:$4 sm:$0xff]   ;;  %v4905_v55 = vshrl.u32 %v461_v54, 7 }
  0x72   : > { %v4835_v46 = vld [vmem:[#allocation6 + $0xac] ss:$12 sps:$4 sm:$0xff]   ;;  %v4839_v47 = vld [vmem:[#allocation6 + $0x68] ss:$12 sps:$4 sm:$0xff]   ;;  %v4864_v53 = vld [vmem:[#allocation6 + $0xb0] ss:$12 sps:$4 sm:$0xff]  }
  0x73   : > { %3644 = vmatpush3.bf16.msra.mxu1 %v4082_v25  ;;  %v4842_v48 = vld [vmem:[#allocation6 + $0xa8] ss:$12 sps:$4 sm:$0xff]   ;;  %v4851_v50 = vld [vmem:[#allocation6 + $0x80] ss:$12 sps:$4 sm:$0xff]   ;;  %5905 = vst [vmem:[#allocation16_spill] sm:$0xff] %v4905_v55  ;;  %v5885_v56 = vsub.s32 0, %v4905_v55 }
  0x74   : > { %580 = vmatpush1.bf16.msra.mxu0 %v4064_v19  ;;  %1694 = vperm.xlu0 %4051, %v1692_v22   ;;  %v4844_v49 = vld [vmem:[#allocation2] sm:$0xff]  ;;  %v5884_v58 = vsub.s32 1, %v4905_v55  ;;  %v5883_v3 = vsub.s32 2, %v4905_v55  ;;  %s1213_s11 = sadd.s32 2, %s4699_s20  ;;  %s1332_s18 = sadd.s32 3, %s4699_s20 }
  0x75   : > { %868 = vmatprep.subr.bf16.mxu0 %v4758_v20  ;;  %3645 = vmatprep.subr.bf16.mxu1 %v4086_v26  ;;  %v739_v51 = vpack.c.bf16 %v4844_v49, %v4844_v49  ;;  %v458_v57 = vld [vmem:[%s5874_s4] sm:$0x7]  ;;  %s1570_s21 = sadd.s32 5, %s4699_s20  ;;  %s1808_s23 = sadd.s32 7, %s4699_s20 }
  0x76   : > { %v464_v60 = vrot.slane %v458_v57, %v5885_v56  ;;  %v468_v62 = vrot.slane %v458_v57, %v5884_v58  ;;  %v4923_v6 = vrot.slane %v458_v57, %v5883_v3  ;;  %p3470_p10 = scmp.ne.s32.totalorder %s4587_s14, 1 }
  0x77   : > { %3352 = vmatmul.mubr.msk.bf16.vlgmr.msra.gmra.mrb[0].mxu0 %vm560_vm3, %v4065_v12  ;;  %3646 = vmatpush3.bf16.msra.mxu1 %v4086_v26 }
  0x78   : > { %869 = vmatpush1.bf16.msra.mxu0 %v4764_v23  ;;  %615 = vmatprep.mubr.bf16.mxu0 %v5886_v5 }
  0x79   : > { %870 = vmatprep.subr.bf16.mxu0 %v4766_v24  ;;  %3655 = vmatprep.subr.bf16.mxu1 %v5888_v34 }
  0x7a   : > { %3648 = vmatmul.mubr.msk.bf16.vlgmr.msra.gmra.mrb[0].mxu1 %vm560_vm3, %v4072_v29 }
  0x7b   : > { %3656 = vmatpush3.bf16.msra.mxu1 %v4790_v32  ;;  %3651 = vmatprep.mubr.msk.bf16.mxu1 %vm560_vm3, %v4081_v35 }
  0x7c   : > { %871 = vmatpush1.bf16.msra.mxu0 %v4777_v27  ;;  %3657 = vmatprep.subr.bf16.mxu1 %v5888_v34 }
  0x7d   : > { %872 = vmatprep.subr.bf16.mxu0 %v4781_v28 }
  0x7f   : > { %3353 = vmatmul.mubr.msk.bf16.gmra.mrb[4].mxu0 %vm560_vm3, %v4072_v29  ;;  %3658 = vmatpush3.bf16.msra.mxu1 %v4804_v37 }
  0x80   : > { %873 = vmatpush1.bf16.msra.mxu0 %v4785_v30  ;;  %625 = vmatprep.mubr.bf16.mxu0 %v5886_v5 }
  0x81   : > { %874 = vmatprep.subr.bf16.mxu0 %v4788_v31  ;;  %3659 = vmatprep.subr.bf16.mxu1 %v5888_v34 }
  0x82   : > { %3652 = vmatmul.mubr.msk.bf16.gmra.mrb[4].mxu1 %vm560_vm3, %v4090_v40 }
  0x83   : > { %3660 = vmatpush3.bf16.msra.mxu1 %v4815_v41  ;;  %3671 = vmatprep.mubr.msk.bf16.mxu1 %vm4524_vm5, %v5888_v34 }
  0x84   : > { %875 = vmatpush1.bf16.msra.mxu0 %v4793_v33  ;;  %3661 = vmatprep.subr.bf16.mxu1 %v5888_v34 }
  0x85   : > { %876 = vmatprep.subr.bf16.mxu0 %v4800_v36 }
  0x87   : > { %3354 = vmatmul.mubr.msk.bf16.gmra.mrb[8].mxu0 %vm560_vm3, %v4081_v35  ;;  %3662 = vmatpush3.bf16.msra.mxu1 %v4826_v44 }
  0x88   : > { %877 = vmatpush1.bf16.msra.mxu0 %v4807_v38  ;;  %635 = vmatprep.mubr.bf16.mxu0 %v5886_v5 }
  0x89   : > { %878 = vmatprep.subr.bf16.mxu0 %v4811_v39  ;;  %3663 = vmatprep.subr.bf16.mxu1 %v5888_v34 }
  0x8b   : > { %3664 = vmatpush3.bf16.msra.mxu1 %v4839_v47 }
  0x8c   : > { %879 = vmatpush1.bf16.msra.mxu0 %v4817_v42  ;;  %3665 = vmatprep.subr.bf16.mxu1 %v5888_v34 }
  0x8d   : > { %880 = vmatprep.subr.bf16.mxu0 %v4821_v43 }
  0x8f   : > { %3355 = vmatmul.mubr.msk.bf16.gmra.mrb[12].mxu0 %vm560_vm3, %v4090_v40  ;;  %3666 = vmatpush3.bf16.msra.mxu1 %v4851_v50 }
  0x90   : > { %881 = vmatpush1.bf16.msra.mxu0 %v4830_v45  ;;  %900 = vmatprep.mubr.bf16.mxu0 %v5886_v5 }
  0x91   : > { %882 = vmatprep.subr.bf16.mxu0 %v4835_v46  ;;  %3667 = vmatprep.subr.bf16.mxu1 %v5888_v34 }
  0x93   : > { %3668 = vmatpush3.bf16.msra.mxu1 %v4859_v52 }
  0x94   : > { %883 = vmatpush1.bf16.msra.mxu0 %v4842_v48  ;;  %3669 = vmatprep.subr.bf16.mxu1 %v5888_v34 }
  0x95   : > { %991 = vmatprep.subr.bf16.mxu0 %v4758_v20 }
  0x97   : > { %901 = vmatmul.mubr.bf16.vlgmr.msra.gmra.mrb[16].mxu0 %v739_v51  ;;  %3670 = vmatpush3.bf16.msra.mxu1 %v4864_v53 }
  0x98   : > { %992 = vmatpush1.bf16.msra.mxu0 %v4764_v23  ;;  %1023 = vmatprep.mubr.bf16.mxu0 %v5886_v5 }
  0x99   : > { %993 = vmatprep.subr.bf16.mxu0 %v4766_v24  ;;  %3675 = vmatprep.subr.bf16.mxu1 %v5888_v34 }
  0x9a   : > { %3672 = vmatmul.mubr.bf16.vlgmr.msra.gmra.mrb[8].mxu1 %v739_v51 }
  0x9b   : > { %3676 = vmatpush3.bf16.msra.mxu1 %v4790_v32  ;;  %3691 = vmatprep.mubr.msk.bf16.mxu1 %vm4524_vm5, %v5888_v34 }
  0x9c   : > { %994 = vmatpush1.bf16.msra.mxu0 %v4777_v27  ;;  %3677 = vmatprep.subr.bf16.mxu1 %v5888_v34 }
  0x9d   : > { %995 = vmatprep.subr.bf16.mxu0 %v4781_v28 }
  0x9f   : > { %3678 = vmatpush3.bf16.msra.mxu1 %v4804_v37 }
  0xa0   : > { %996 = vmatpush1.bf16.msra.mxu0 %v4785_v30  ;;  %3679 = vmatprep.subr.bf16.mxu1 %v5888_v34 }
  0xa1   : > { %997 = vmatprep.subr.bf16.mxu0 %v4788_v31 }
  0xa3   : > { %3680 = vmatpush3.bf16.msra.mxu1 %v4815_v41 }
  0xa4   : > { %998 = vmatpush1.bf16.msra.mxu0 %v4793_v33  ;;  %3681 = vmatprep.subr.bf16.mxu1 %v5888_v34 }
  0xa5   : > { %999 = vmatprep.subr.bf16.mxu0 %v4800_v36 }
  0xa7   : > { %3682 = vmatpush3.bf16.msra.mxu1 %v4826_v44 }
  0xa8   : > { %1000 = vmatpush1.bf16.msra.mxu0 %v4807_v38  ;;  %3683 = vmatprep.subr.bf16.mxu1 %v5888_v34 }
  0xa9   : > { %1001 = vmatprep.subr.bf16.mxu0 %v4811_v39 }
  0xab   : > { %3684 = vmatpush3.bf16.msra.mxu1 %v4839_v47 }
  0xac   : > { %1002 = vmatpush1.bf16.msra.mxu0 %v4817_v42  ;;  %3685 = vmatprep.subr.bf16.mxu1 %v5888_v34 }
  0xad   : > { %1003 = vmatprep.subr.bf16.mxu0 %v4821_v43 }
  0xaf   : > { %3686 = vmatpush3.bf16.msra.mxu1 %v4851_v50 }
  0xb0   : > { %1004 = vmatpush1.bf16.msra.mxu0 %v4830_v45  ;;  %3687 = vmatprep.subr.bf16.mxu1 %v5888_v34 }
  0xb1   : > { %1005 = vmatprep.subr.bf16.mxu0 %v4835_v46 }
  0xb3   : > { %3688 = vmatpush3.bf16.msra.mxu1 %v4859_v52 }
  0xb4   : > { %1006 = vmatpush1.bf16.msra.mxu0 %v4842_v48  ;;  %3689 = vmatprep.subr.bf16.mxu1 %v5888_v34 }
  0xb5   : > { %1110 = vmatprep.subr.bf16.mxu0 %v4758_v20 }
  0xb7   : > { %3690 = vmatpush3.bf16.msra.mxu1 %v4864_v53 }
  0xb8   : > { %3695 = vmatprep.subr.bf16.mxu1 %v5888_v34 }
 0x14a   : > { %v607_v59 = vpop.f32.mrb[0].mxu0 }
 0x14b   : > { %v609_v61 = vpop.f32.mrb[1].mxu0  ;;  %v608_v58 = vadd.f32 %v607_v59, %v464_v60 }
 0x14c   : > { %v611_v63 = vpop.f32.mrb[2].mxu0  ;;  %v610_v56 = vadd.f32 %v609_v61, %v468_v62 }
 0x14d   : > { %v4916_v1 = vadd.f32 %v611_v63, %v464_v60  ;;  %v613_v2 = vpop.f32.mrb[3].mxu0  ;;  %v3649_v12 = vpop.f32.mrb[0].mxu1 }
 0x14e   : > { %v4919_v4 = vadd.f32 %v613_v2, %v468_v62  ;;  %v4932_v15 = vadd.f32 %v3649_v12, %v4923_v6  ;;  %v680_v16 = vpop.f32.mrb[1].mxu1 }
 0x14f   : > { %v3650_v18 = vpop.f32.mrb[2].mxu1 }
 0x150   : > { %v4937_v19 = vadd.f32 %v3650_v18, %v4923_v6  ;;  %v683_v21 = vpop.f32.mrb[3].mxu1 }
 0x151   : > { %v4940_v22 = vadd.f32 %v683_v21, %v4923_v6 }
 0x152   : > { %v617_v7 = vpop.f32.mrb[4].mxu0 }
 0x153   : > { %v4925_v8 = vadd.f32 %v617_v7, %v464_v60  ;;  %v619_v9 = vpop.f32.mrb[5].mxu0 }
 0x154   : > { %v4927_v10 = vadd.f32 %v619_v9, %v468_v62  ;;  %v621_v11 = vpop.f32.mrb[6].mxu0 }
 0x155   : > { %v4929_v13 = vadd.f32 %v621_v11, %v464_v60  ;;  %v623_v14 = vpop.f32.mrb[7].mxu0  ;;  %v3653_v51 = vpop.f32.mrb[4].mxu1 }
 0x156   : > { %v4934_v17 = vadd.f32 %v623_v14, %v468_v62  ;;  %v4949_v63 = vadd.f32 %v3653_v51, %v4923_v6  ;;  %v696_v2 = vpop.f32.mrb[5].mxu1 }
 0x157   : > { %v4954_v9 = vadd.f32 %v696_v2, %v4923_v6  ;;  %v3654_v11 = vpop.f32.mrb[6].mxu1 }
 0x158   : > { %5906 = vst [vmem:[#allocation17_spill] sm:$0xff] %v4949_v63  ;;  %v4957_v12 = vadd.f32 %v3654_v11, %v4923_v6  ;;  %v699_v14 = vpop.f32.mrb[7].mxu1 }
 0x159   : > { %v4960_v18 = vadd.f32 %v699_v14, %v4923_v6 }
 0x15a   : > { %v627_v25 = vpop.f32.mrb[8].mxu0  ;;  %5907 = vst [vmem:[#allocation18_spill] sm:$0xff] %v4957_v12 }
 0x15b   : > { %v4942_v26 = vadd.f32 %v627_v25, %v464_v60  ;;  %v629_v29 = vpop.f32.mrb[9].mxu0  ;;  %5908 = vst [vmem:[#allocation19_spill] sm:$0xff] %v4960_v18 }
 0x15c   : > { %v4944_v35 = vadd.f32 %v629_v29, %v468_v62  ;;  %v631_v40 = vpop.f32.mrb[10].mxu0 }
 0x15d   : > { %v4946_v54 = vadd.f32 %v631_v40, %v464_v60  ;;  %v633_v57 = vpop.f32.mrb[11].mxu0 }
 0x15e   : > { %v4951_v7 = vadd.f32 %v633_v57, %v468_v62 }
 0x162   : > { %v637_v21 = vpop.f32.mrb[12].mxu0 }
 0x163   : > { %v4962_v25 = vadd.f32 %v637_v21, %v464_v60  ;;  %v639_v29 = vpop.f32.mrb[13].mxu0 }
 0x164   : > { %v4964_v40 = vadd.f32 %v639_v29, %v468_v62  ;;  %v641_v51 = vpop.f32.mrb[14].mxu0 }
 0x165   : > { %5909 = vst [vmem:[#allocation20_spill] sm:$0xff] %v4962_v25  ;;  %v4966_v57 = vadd.f32 %v641_v51, %v464_v60  ;;  %v643_v3 = vpop.f32.mrb[15].mxu0 }
 0x166   : > { %5910 = vst [vmem:[#allocation21_spill] sm:$0xff] %v4964_v40  ;;  %v4968_v2 = vadd.f32 %v643_v3, %v468_v62 }
 0x167   : > { %5911 = vst [vmem:[#allocation22_spill] sm:$0xff] %v4966_v57 }
 0x16a   : > { %v902_v11 = vpop.f32.mrb[16].mxu0 }
 0x16b   : > { %v949_v5 = vadd.f32 %v902_v11, %v608_v58  ;;  %v904_v34 = vpop.f32.mrb[17].mxu0  ;;  %v4973_v58 = vld [vmem:[%s5875_s5] ss:$0 sm:$0xff]  ;;  %v5913_v11 = vmov 0  }
 0x16c   : > { %v956_v55 = vadd.f32 %v904_v34, %v610_v56  ;;  %v906_v14 = vpop.f32.mrb[18].mxu0 }
 0x16d   : > { %v3384_v12 = vmul.f32 -1.442695, %v949_v5  ;;  %v907_v63 = vpop.f32.mrb[19].mxu0  ;;  %v943_v25 = vpop.f32.mrb[8].mxu1  ;;  %v1333_v14 = vstv %s1332_s18 }
 0x16e   : > { %v3385_v21 = vmul.f32 -1.442695, %v956_v55  ;;  %v3673_v29 = vpop.f32.mrb[9].mxu1  ;;  %v969_v5 = vadd.f32 %v4973_v58, %v943_v25  ;;  %v681_v55 = vadd.f32 %v680_v16, %v4923_v6  ;;  %v5912_v16 = vmov 0.0  }
 0x16f   : > { %4173 = vpow2.f32 %v3384_v12  ;;  %v946_v40 = vpop.f32.mrb[10].mxu1  ;;  %v4977_v12 = vpop.permute.xlu0 %981  ;;  %vm1334_vm8 = vcmp.lt.s32.totalorder %v1333_v14, %v4711_v0  ;;  %v1571_v29 = vstv %s1570_s21 }
 0x170   : > { %4175 = vpow2.f32 %v3385_v21  ;;  %v3674_v51 = vpop.f32.mrb[11].mxu1  ;;  %vm983_vm6 = vcmp.eq.s32.totalorder %v4977_v12, 1  ;;  %vm1572_vm9 = vcmp.lt.s32.totalorder %v1571_v29, %v4711_v0 }
 0x171   : > { %v1335_v51 = vsel %vm1334_vm8, 1, %v5913_v11 }
 0x179   : > { %v4174_v57 = vpop.eup %4173 }
 0x17a   : > { %v953_v18 = vadd.f32 1.0, %v4174_v57  ;;  %v4176_v3 = vpop.eup %4175 }
 0x17b   : > { %v960_v34 = vadd.f32 1.0, %v4176_v3  ;;  %v1809_v3 = vstv %s1808_s23 }
 0x17c   : > { %4177 = vrcp.f32 %v953_v18  ;;  %vm1810_vm10 = vcmp.lt.s32.totalorder %v1809_v3, %v4711_v0 }
 0x17d   : > { %4179 = vrcp.f32 %v960_v34  ;;  %v1573_v34 = vsel %vm1572_vm9, 1, %v5913_v11 }
 0x186   : > { %v4178_v56 = vpop.eup %4177 }
 0x187   : > { %v970_v59 = vmul.f32 %v4178_v56, %v969_v5  ;;  %v4180_v61 = vpop.eup %4179  ;;  %v1811_v5 = vsel %vm1810_vm10, 1, %v5913_v11 }
 0x188   : > { %v973_v62 = vsub.f32 1.0, %v4180_v61  ;;  %v975_v40 = vmul.f32 %v4180_v61, %v4844_v49 }
 0x189   : > { %v971_v60 = vadd.f32 %v970_v59, %v681_v55 }
 0x18b   : > { %4181 = vtanh.f32 %v971_v60 }
 0x195   : > { %v4182_v63 = vpop.eup %4181 }
 0x196   : > { %v974_v18 = vmul.f32 %v4182_v63, %v973_v62 }
 0x198   : > { %v976_v57 = vadd.f32 %v975_v40, %v974_v18 }
 0x19a   : > { %v4984_v25 = vsel %vm983_vm6, %v976_v57, %v4844_v49  ;;  %v1214_v49 = vstv %s1213_s11 }
 0x19b   : > { %v985_v6 = vpack.c.bf16 %v4984_v25, %v4984_v25  ;;  %vm1215_vm7 = vcmp.lt.s32.totalorder %v1214_v49, %v4711_v0 }
 0x19c   : > { %v1216_v21 = vsel %vm1215_vm7, 1, %v5913_v11 }
 0x19d   : > { %986 = vst [vmem:[#allocation5] sm:$0xf] %v985_v6  ;;  %1024 = vmatmul.mubr.bf16.vlgmr.msra.gmra.mrb[20].mxu0 %v985_v6  ;;  %3692 = vmatmul.mubr.bf16.vlgmr.msra.gmra.mrb[12].mxu1 %v985_v6 }
 0x19e   : > { %1111 = vmatpush1.bf16.msra.mxu0 %v4764_v23  ;;  %3696 = vmatpush3.bf16.msra.mxu1 %v4790_v32 }
 0x19f   : > { %1112 = vmatprep.subr.bf16.mxu0 %v4766_v24  ;;  %3697 = vmatprep.subr.bf16.mxu1 %v5912_v16 }
 0x1a0   : > { %1142 = vmatprep.mubr.bf16.mxu0 %v5913_v11  ;;  %3711 = vmatprep.mubr.msk.bf16.mxu1 %vm4524_vm5, %v5912_v16 }
 0x1a1   : > { %1218 = vperm.xlu1 %4052, %v1216_v21  }
 0x1a2   : > { %1113 = vmatpush1.bf16.msra.mxu0 %v4777_v27  ;;  %3698 = vmatpush3.bf16.msra.mxu1 %v4804_v37 }
 0x1a3   : > { %1114 = vmatprep.subr.bf16.mxu0 %v4781_v28  ;;  %3699 = vmatprep.subr.bf16.mxu1 %v5912_v16 }
 0x1a5   : > { %1337 = vperm.xlu1 %4052, %v1335_v51  }
 0x1a6   : > { %1115 = vmatpush1.bf16.msra.mxu0 %v4785_v30  ;;  %3700 = vmatpush3.bf16.msra.mxu1 %v4815_v41 }
 0x1a7   : > { %1116 = vmatprep.subr.bf16.mxu0 %v4788_v31  ;;  %3701 = vmatprep.subr.bf16.mxu1 %v5912_v16 }
 0x1a9   : > { %1575 = vperm.xlu1 %4052, %v1573_v34  }
 0x1aa   : > { %1117 = vmatpush1.bf16.msra.mxu0 %v4793_v33  ;;  %3702 = vmatpush3.bf16.msra.mxu1 %v4826_v44 }
 0x1ab   : > { %1118 = vmatprep.subr.bf16.mxu0 %v4800_v36  ;;  %3703 = vmatprep.subr.bf16.mxu1 %v5912_v16 }
 0x1ad   : > { %1813 = vperm.xlu1 %4052, %v1811_v5  }
 0x1ae   : > { %1119 = vmatpush1.bf16.msra.mxu0 %v4807_v38  ;;  %3704 = vmatpush3.bf16.msra.mxu1 %v4839_v47 }
 0x1af   : > { %1120 = vmatprep.subr.bf16.mxu0 %v4811_v39  ;;  %3705 = vmatprep.subr.bf16.mxu1 %v5912_v16 }
 0x1b2   : > { %1121 = vmatpush1.bf16.msra.mxu0 %v4817_v42  ;;  %3706 = vmatpush3.bf16.msra.mxu1 %v4851_v50 }
 0x1b3   : > { %1122 = vmatprep.subr.bf16.mxu0 %v4821_v43  ;;  %3707 = vmatprep.subr.bf16.mxu1 %v5912_v16 }
 0x1b6   : > { %1123 = vmatpush1.bf16.msra.mxu0 %v4830_v45  ;;  %3708 = vmatpush3.bf16.msra.mxu1 %v4859_v52 }
 0x1b7   : > { %1124 = vmatprep.subr.bf16.mxu0 %v4835_v46  ;;  %3709 = vmatprep.subr.bf16.mxu1 %v5912_v16 }
 0x1ba   : > { %1125 = vmatpush1.bf16.msra.mxu0 %v4842_v48  ;;  %3710 = vmatpush3.bf16.msra.mxu1 %v4864_v53 }
 0x1bb   : > { %1229 = vmatprep.subr.bf16.mxu0 %v4758_v20  ;;  %3715 = vmatprep.subr.bf16.mxu1 %v5912_v16 }
 0x270   : > { %v1025_v56 = vpop.f32.mrb[20].mxu0  ;;  %v1066_v55 = vpop.f32.mrb[12].mxu1 }
 0x271   : > { %v1072_v59 = vadd.f32 %v1025_v56, %v4916_v1  ;;  %v1027_v60 = vpop.f32.mrb[21].mxu0  ;;  %v3693_v61 = vpop.f32.mrb[13].mxu1  ;;  %v1086_v51 = vadd.f32 %v4973_v58, %v1066_v55 }
 0x272   : > { %v1079_v62 = vadd.f32 %v1027_v60, %v4919_v4  ;;  %v1029_v63 = vpop.f32.mrb[22].mxu0  ;;  %v1069_v18 = vpop.f32.mrb[14].mxu1 }
 0x273   : > { %v3387_v40 = vmul.f32 -1.442695, %v1072_v59  ;;  %v1030_v57 = vpop.f32.mrb[23].mxu0  ;;  %v3694_v6 = vpop.f32.mrb[15].mxu1 }
 0x274   : > { %v3388_v49 = vmul.f32 -1.442695, %v1079_v62  ;;  %v5040_v61 = vpop.permute.xlu0 %1099 }
 0x275   : > { %4183 = vpow2.f32 %v3387_v40  ;;  %vm1101_vm11 = vcmp.eq.s32.totalorder %v5040_v61, 1 }
 0x276   : > { %4185 = vpow2.f32 %v3388_v49 }
 0x27f   : > { %v4184_v0 = vpop.eup %4183 }
 0x280   : > { %v1076_v14 = vadd.f32 1.0, %v4184_v0  ;;  %v4186_v21 = vpop.eup %4185 }
 0x281   : > { %v1083_v29 = vadd.f32 1.0, %v4186_v21 }
 0x282   : > { %4187 = vrcp.f32 %v1076_v14 }
 0x283   : > { %4189 = vrcp.f32 %v1083_v29 }
 0x28c   : > { %v4188_v1 = vpop.eup %4187 }
 0x28d   : > { %v1087_v3 = vmul.f32 %v4188_v1, %v1086_v51  ;;  %v4190_v34 = vpop.eup %4189 }
 0x28e   : > { %v1090_v5 = vsub.f32 1.0, %v4190_v34  ;;  %v1092_v59 = vmul.f32 %v4190_v34, %v4984_v25 }
 0x28f   : > { %v1088_v4 = vadd.f32 %v1087_v3, %v4940_v22 }
 0x291   : > { %4191 = vtanh.f32 %v1088_v4 }
 0x29b   : > { %v4192_v56 = vpop.eup %4191 }
 0x29c   : > { %v1091_v60 = vmul.f32 %v4192_v56, %v1090_v5 }
 0x29e   : > { %v1093_v62 = vadd.f32 %v1092_v59, %v1091_v60 }
 0x2a0   : > { %v5046_v55 = vsel %vm1101_vm11, %v1093_v62, %v4984_v25  ;;  %v5089_v62 = vpop.permute.xlu1 %1218 }
 0x2a1   : > { %v1103_v22 = vpack.c.bf16 %v5046_v55, %v5046_v55  ;;  %vm1220_vm12 = vcmp.eq.s32.totalorder %v5089_v62, 1 }
 0x2a3   : > { %1105 = vst [vmem:[#allocation5 + $0x4] sm:$0xf] %v1103_v22  ;;  %1143 = vmatmul.mubr.bf16.vlgmr.msra.gmra.mrb[24].mxu0 %v1103_v22  ;;  %3712 = vmatmul.mubr.bf16.vlgmr.msra.gmra.mrb[16].mxu1 %v1103_v22 }
 0x2a4   : > { %1230 = vmatpush1.bf16.msra.mxu0 %v4764_v23  ;;  %3716 = vmatpush3.bf16.msra.mxu1 %v4790_v32 }
 0x2a5   : > { %1231 = vmatprep.subr.bf16.mxu0 %v4766_v24  ;;  %3717 = vmatprep.subr.bf16.mxu1 %v5912_v16 }
 0x2a6   : > { %1261 = vmatprep.mubr.bf16.mxu0 %v5913_v11  ;;  %3731 = vmatprep.mubr.msk.bf16.mxu1 %vm4524_vm5, %v5912_v16 }
 0x2a8   : > { %1232 = vmatpush1.bf16.msra.mxu0 %v4777_v27  ;;  %3718 = vmatpush3.bf16.msra.mxu1 %v4804_v37 }
 0x2a9   : > { %1233 = vmatprep.subr.bf16.mxu0 %v4781_v28  ;;  %3719 = vmatprep.subr.bf16.mxu1 %v5912_v16 }
 0x2ac   : > { %1234 = vmatpush1.bf16.msra.mxu0 %v4785_v30  ;;  %3720 = vmatpush3.bf16.msra.mxu1 %v4815_v41 }
 0x2ad   : > { %1235 = vmatprep.subr.bf16.mxu0 %v4788_v31  ;;  %3721 = vmatprep.subr.bf16.mxu1 %v5912_v16 }
 0x2b0   : > { %1236 = vmatpush1.bf16.msra.mxu0 %v4793_v33  ;;  %3722 = vmatpush3.bf16.msra.mxu1 %v4826_v44 }
 0x2b1   : > { %1237 = vmatprep.subr.bf16.mxu0 %v4800_v36  ;;  %3723 = vmatprep.subr.bf16.mxu1 %v5912_v16 }
 0x2b4   : > { %1238 = vmatpush1.bf16.msra.mxu0 %v4807_v38  ;;  %3724 = vmatpush3.bf16.msra.mxu1 %v4839_v47 }
 0x2b5   : > { %1239 = vmatprep.subr.bf16.mxu0 %v4811_v39  ;;  %3725 = vmatprep.subr.bf16.mxu1 %v5912_v16 }
 0x2b8   : > { %1240 = vmatpush1.bf16.msra.mxu0 %v4817_v42  ;;  %3726 = vmatpush3.bf16.msra.mxu1 %v4851_v50 }
 0x2b9   : > { %1241 = vmatprep.subr.bf16.mxu0 %v4821_v43  ;;  %3727 = vmatprep.subr.bf16.mxu1 %v5912_v16 }
 0x2bc   : > { %1242 = vmatpush1.bf16.msra.mxu0 %v4830_v45  ;;  %3728 = vmatpush3.bf16.msra.mxu1 %v4859_v52 }
 0x2bd   : > { %1243 = vmatprep.subr.bf16.mxu0 %v4835_v46  ;;  %3729 = vmatprep.subr.bf16.mxu1 %v5912_v16 }
 0x2c0   : > { %1244 = vmatpush1.bf16.msra.mxu0 %v4842_v48  ;;  %3730 = vmatpush3.bf16.msra.mxu1 %v4864_v53 }
 0x2c1   : > { %1348 = vmatprep.subr.bf16.mxu0 %v4758_v20  ;;  %3735 = vmatprep.subr.bf16.mxu1 %v5912_v16 }
 0x376   : > { %v1144_v25 = vpop.f32.mrb[24].mxu0  ;;  %v1185_v63 = vpop.f32.mrb[16].mxu1 }
 0x377   : > { %v1191_v18 = vadd.f32 %v1144_v25, %v4925_v8  ;;  %v1146_v40 = vpop.f32.mrb[25].mxu0  ;;  %v3713_v57 = vpop.f32.mrb[17].mxu1  ;;  %v1205_v34 = vadd.f32 %v4973_v58, %v1185_v63 }
 0x378   : > { %v1198_v6 = vadd.f32 %v1146_v40, %v4927_v10  ;;  %v1148_v49 = vpop.f32.mrb[26].mxu0  ;;  %v1188_v0 = vpop.f32.mrb[18].mxu1 }
 0x379   : > { %v3389_v14 = vmul.f32 -1.442695, %v1191_v18  ;;  %v1149_v21 = vpop.f32.mrb[27].mxu0  ;;  %v3714_v29 = vpop.f32.mrb[19].mxu1 }
 0x37a   : > { %v3390_v51 = vmul.f32 -1.442695, %v1198_v6 }
 0x37b   : > { %4193 = vpow2.f32 %v3389_v14 }
 0x37c   : > { %4195 = vpow2.f32 %v3390_v51 }
 0x385   : > { %v4194_v1 = vpop.eup %4193 }
 0x386   : > { %v1195_v20 = vadd.f32 1.0, %v4194_v1  ;;  %v4196_v3 = vpop.eup %4195 }
 0x387   : > { %v1202_v4 = vadd.f32 1.0, %v4196_v3 }
 0x388   : > { %4197 = vrcp.f32 %v1195_v20 }
 0x389   : > { %4199 = vrcp.f32 %v1202_v4 }
 0x392   : > { %v4198_v8 = vpop.eup %4197 }
 0x393   : > { %v1206_v5 = vmul.f32 %v4198_v8, %v1205_v34  ;;  %v4200_v56 = vpop.eup %4199 }
 0x394   : > { %v1209_v59 = vsub.f32 1.0, %v4200_v56  ;;  %v1211_v25 = vmul.f32 %v4200_v56, %v5046_v55 }
 0x395   : > { %v1207_v10 = vadd.f32 %v1206_v5, %v4932_v15  ;;  %v5142_v5 = vpop.permute.xlu1 %1337 }
 0x396   : > { %vm1339_vm13 = vcmp.eq.s32.totalorder %v5142_v5, 1 }
 0x397   : > { %4201 = vtanh.f32 %v1207_v10 }
 0x3a1   : > { %v4202_v60 = vpop.eup %4201 }
 0x3a2   : > { %v1210_v22 = vmul.f32 %v4202_v60, %v1209_v59  ;;  %v5152_v59 = vld [vmem:[#allocation6] ss:$12 sps:$4 sm:$0xff]   ;;  %v5156_v60 = vld [vmem:[#allocation6 + $0x1c] ss:$12 sps:$4 sm:$0xff]  }
 0x3a4   : > { %v1212_v18 = vadd.f32 %v1211_v25, %v1210_v22  ;;  %v5163_v22 = vld [vmem:[#allocation6 + $0x18] ss:$12 sps:$4 sm:$0xff]   ;;  %v5167_v25 = vld [vmem:[#allocation6 + $0x34] ss:$12 sps:$4 sm:$0xff]  }
 0x3a6   : > { %v5096_v63 = vsel %vm1220_vm12, %v1212_v18, %v5046_v55  ;;  %v5175_v18 = vld [vmem:[#allocation6 + $0x4c] ss:$12 sps:$4 sm:$0xff]  }
 0x3a7   : > { %v1222_v15 = vpack.c.bf16 %v5096_v63, %v5096_v63 }
 0x3a9   : > { %1224 = vst [vmem:[#allocation5 + $0x8] sm:$0xf] %v1222_v15  ;;  %1262 = vmatmul.mubr.bf16.vlgmr.msra.gmra.mrb[28].mxu0 %v1222_v15  ;;  %3732 = vmatmul.mubr.bf16.vlgmr.msra.gmra.mrb[20].mxu1 %v1222_v15 }
 0x3aa   : > { %1349 = vmatpush1.bf16.msra.mxu0 %v4764_v23  ;;  %3736 = vmatpush3.bf16.msra.mxu1 %v4790_v32  ;;  %v5133_v23 = vld [vmem:[#allocation6 + $0x4] ss:$12 sps:$4 sm:$0xff]  }
 0x3ab   : > { %1350 = vmatprep.subr.bf16.mxu0 %v4766_v24  ;;  %3737 = vmatprep.subr.bf16.mxu1 %v5912_v16 }
 0x3ac   : > { %1380 = vmatprep.mubr.bf16.mxu0 %v5913_v11  ;;  %3751 = vmatprep.mubr.msk.bf16.mxu1 %vm4524_vm5, %v5912_v16 }
 0x3ae   : > { %1351 = vmatpush1.bf16.msra.mxu0 %v4777_v27  ;;  %3738 = vmatpush3.bf16.msra.mxu1 %v4804_v37 }
 0x3af   : > { %1352 = vmatprep.subr.bf16.mxu0 %v4781_v28  ;;  %3739 = vmatprep.subr.bf16.mxu1 %v5912_v16 }
 0x3b2   : > { %1353 = vmatpush1.bf16.msra.mxu0 %v4785_v30  ;;  %3740 = vmatpush3.bf16.msra.mxu1 %v4815_v41 }
 0x3b3   : > { %1354 = vmatprep.subr.bf16.mxu0 %v4788_v31  ;;  %3741 = vmatprep.subr.bf16.mxu1 %v5912_v16 }
 0x3b6   : > { %1355 = vmatpush1.bf16.msra.mxu0 %v4793_v33  ;;  %3742 = vmatpush3.bf16.msra.mxu1 %v4826_v44 }
 0x3b7   : > { %1356 = vmatprep.subr.bf16.mxu0 %v4800_v36  ;;  %3743 = vmatprep.subr.bf16.mxu1 %v5912_v16 }
 0x3ba   : > { %1357 = vmatpush1.bf16.msra.mxu0 %v4807_v38  ;;  %3744 = vmatpush3.bf16.msra.mxu1 %v4839_v47 }
 0x3bb   : > { %1358 = vmatprep.subr.bf16.mxu0 %v4811_v39  ;;  %3745 = vmatprep.subr.bf16.mxu1 %v5912_v16 }
 0x3be   : > { %1359 = vmatpush1.bf16.msra.mxu0 %v4817_v42  ;;  %3746 = vmatpush3.bf16.msra.mxu1 %v4851_v50 }
 0x3bf   : > { %1360 = vmatprep.subr.bf16.mxu0 %v4821_v43  ;;  %3747 = vmatprep.subr.bf16.mxu1 %v5912_v16 }
 0x3c2   : > { %1361 = vmatpush1.bf16.msra.mxu0 %v4830_v45  ;;  %3748 = vmatpush3.bf16.msra.mxu1 %v4859_v52 }
 0x3c3   : > { %1362 = vmatprep.subr.bf16.mxu0 %v4835_v46  ;;  %3749 = vmatprep.subr.bf16.mxu1 %v5912_v16 }
 0x3c6   : > { %1363 = vmatpush1.bf16.msra.mxu0 %v4842_v48  ;;  %3750 = vmatpush3.bf16.msra.mxu1 %v4864_v53 }
 0x3c7   : > { %1467 = vmatprep.subr.bf16.mxu0 %v5133_v23  ;;  %3755 = vmatprep.subr.bf16.mxu1 %v5912_v16 }
 0x47c   : > { %v1263_v24 = vpop.f32.mrb[28].mxu0  ;;  %v1304_v27 = vpop.f32.mrb[20].mxu1 }
 0x47d   : > { %v1310_v28 = vadd.f32 %v1263_v24, %v4929_v13  ;;  %v1265_v30 = vpop.f32.mrb[29].mxu0  ;;  %v3733_v31 = vpop.f32.mrb[21].mxu1  ;;  %v1324_v51 = vadd.f32 %v4973_v58, %v1304_v27 }
 0x47e   : > { %v1317_v33 = vadd.f32 %v1265_v30, %v4934_v17  ;;  %v1267_v36 = vpop.f32.mrb[30].mxu0  ;;  %v1307_v55 = vpop.f32.mrb[22].mxu1 }
 0x47f   : > { %v3391_v40 = vmul.f32 -1.442695, %v1310_v28  ;;  %v1268_v57 = vpop.f32.mrb[31].mxu0  ;;  %v3734_v6 = vpop.f32.mrb[23].mxu1 }
 0x480   : > { %v3392_v49 = vmul.f32 -1.442695, %v1317_v33 }
 0x481   : > { %4203 = vpow2.f32 %v3391_v40 }
 0x482   : > { %4205 = vpow2.f32 %v3392_v49  ;;  %v5208_v49 = vpop.permute.xlu0 %1456 }
 0x483   : > { %5914 = vst [vmem:[#allocation23_spill] sm:$0xff] %v5208_v49  ;;  %vm1458_vm14 = vcmp.eq.s32.totalorder %v5208_v49, 1 }
 0x48b   : > { %v4204_v0 = vpop.eup %4203 }
 0x48c   : > { %v1314_v14 = vadd.f32 1.0, %v4204_v0  ;;  %v4206_v21 = vpop.eup %4205 }
 0x48d   : > { %v1321_v29 = vadd.f32 1.0, %v4206_v21  ;;  %v5219_v21 = vld [vmem:[#allocation6 + $0x8] ss:$12 sps:$4 sm:$0xff]  }
 0x48e   : > { %4207 = vrcp.f32 %v1314_v14 }
 0x48f   : > { %4209 = vrcp.f32 %v1321_v29  ;;  %v5228_v29 = vld [vmem:[#allocation6 + $0x20] ss:$12 sps:$4 sm:$0xff]  }
 0x498   : > { %v4208_v13 = vpop.eup %4207 }
 0x499   : > { %v1325_v1 = vmul.f32 %v4208_v13, %v1324_v51  ;;  %v4210_v20 = vpop.eup %4209  ;;  %v5234_v51 = vld [vmem:[#allocation6 + $0x38] ss:$12 sps:$4 sm:$0xff]   ;;  %v5240_v13 = vld [vmem:[#allocation6 + $0x50] ss:$12 sps:$4 sm:$0xff]  }
 0x49a   : > { %v1328_v3 = vsub.f32 1.0, %v4210_v20  ;;  %v1330_v34 = vmul.f32 %v4210_v20, %v5096_v63  ;;  %v5251_v20 = vld [vmem:[#allocation6 + $0x7c] ss:$12 sps:$4 sm:$0xff]  }
 0x49b   : > { %v1326_v17 = vadd.f32 %v1325_v1, %v4937_v19  ;;  %v5245_v1 = vld [vmem:[#allocation6 + $0x60] ss:$12 sps:$4 sm:$0xff]  }
 0x49d   : > { %4211 = vtanh.f32 %v1326_v17  ;;  %v5248_v17 = vld [vmem:[#allocation6 + $0x68] ss:$12 sps:$4 sm:$0xff]  }
 0x4a7   : > { %v4212_v4 = vpop.eup %4211 }
 0x4a8   : > { %v1329_v8 = vmul.f32 %v4212_v4, %v1328_v3  ;;  %v5255_v3 = vld [vmem:[#allocation6 + $0x78] ss:$12 sps:$4 sm:$0xff]   ;;  %v5258_v4 = vld [vmem:[#allocation6 + $0x80] ss:$12 sps:$4 sm:$0xff]  }
 0x4aa   : > { %v1331_v10 = vadd.f32 %v1330_v34, %v1329_v8  ;;  %v5261_v34 = vld [vmem:[#allocation6 + $0x94] ss:$12 sps:$4 sm:$0xff]   ;;  %v5265_v8 = vld [vmem:[#allocation6 + $0x90] ss:$12 sps:$4 sm:$0xff]  }
 0x4ac   : > { %v5148_v56 = vsel %vm1339_vm13, %v1331_v10, %v5096_v63  ;;  %v5179_v63 = vld [vmem:[#allocation6 + $0x48] ss:$12 sps:$4 sm:$0xff]   ;;  %v5269_v10 = vld [vmem:[#allocation6 + $0xac] ss:$12 sps:$4 sm:$0xff]  }
 0x4ad   : > { %v1341_v19 = vpack.c.bf16 %v5148_v56, %v5148_v56 }
 0x4af   : > { %1343 = vst [vmem:[#allocation5 + $0xc] sm:$0xf] %v1341_v19  ;;  %1381 = vmatmul.mubr.bf16.vlgmr.msra.gmra.mrb[32].mxu0 %v1341_v19  ;;  %3752 = vmatmul.mubr.bf16.vlgmr.msra.gmra.mrb[24].mxu1 %v1341_v19 }
 0x4b0   : > { %1468 = vmatpush1.bf16.msra.mxu0 %v5152_v59  ;;  %3756 = vmatpush3.bf16.msra.mxu1 %v4790_v32  ;;  %v5171_v32 = vld [vmem:[#allocation6 + $0x30] ss:$12 sps:$4 sm:$0xff]  }
 0x4b1   : > { %1469 = vmatprep.subr.bf16.mxu0 %v5156_v60  ;;  %3757 = vmatprep.subr.bf16.mxu1 %v5912_v16 }
 0x4b2   : > { %1499 = vmatprep.mubr.bf16.mxu0 %v5913_v11  ;;  %3771 = vmatprep.mubr.msk.bf16.mxu1 %vm4524_vm5, %v5912_v16 }
 0x4b4   : > { %1470 = vmatpush1.bf16.msra.mxu0 %v5163_v22  ;;  %3758 = vmatpush3.bf16.msra.mxu1 %v4804_v37  ;;  %v5183_v37 = vld [vmem:[#allocation6 + $0x64] ss:$12 sps:$4 sm:$0xff]  }
 0x4b5   : > { %1471 = vmatprep.subr.bf16.mxu0 %v5167_v25  ;;  %3759 = vmatprep.subr.bf16.mxu1 %v5912_v16 }
 0x4b8   : > { %1472 = vmatpush1.bf16.msra.mxu0 %v5171_v32  ;;  %3760 = vmatpush3.bf16.msra.mxu1 %v4815_v41 }
 0x4b9   : > { %1473 = vmatprep.subr.bf16.mxu0 %v5175_v18  ;;  %3761 = vmatprep.subr.bf16.mxu1 %v5912_v16 }
 0x4bc   : > { %1474 = vmatpush1.bf16.msra.mxu0 %v5179_v63  ;;  %3762 = vmatpush3.bf16.msra.mxu1 %v4826_v44 }
 0x4bd   : > { %1475 = vmatprep.subr.bf16.mxu0 %v5183_v37  ;;  %3763 = vmatprep.subr.bf16.mxu1 %v5912_v16 }
 0x4c0   : > { %1476 = vmatpush1.bf16.msra.mxu0 %v4807_v38  ;;  %3764 = vmatpush3.bf16.msra.mxu1 %v4839_v47 }
 0x4c1   : > { %1477 = vmatprep.subr.bf16.mxu0 %v4811_v39  ;;  %3765 = vmatprep.subr.bf16.mxu1 %v5912_v16 }
 0x4c4   : > { %1478 = vmatpush1.bf16.msra.mxu0 %v4817_v42  ;;  %3766 = vmatpush3.bf16.msra.mxu1 %v4851_v50 }
 0x4c5   : > { %1479 = vmatprep.subr.bf16.mxu0 %v4821_v43  ;;  %3767 = vmatprep.subr.bf16.mxu1 %v5912_v16 }
 0x4c8   : > { %1480 = vmatpush1.bf16.msra.mxu0 %v4830_v45  ;;  %3768 = vmatpush3.bf16.msra.mxu1 %v4859_v52 }
 0x4c9   : > { %1481 = vmatprep.subr.bf16.mxu0 %v4835_v46  ;;  %3769 = vmatprep.subr.bf16.mxu1 %v5912_v16 }
 0x4cc   : > { %1482 = vmatpush1.bf16.msra.mxu0 %v4842_v48  ;;  %3770 = vmatpush3.bf16.msra.mxu1 %v4864_v53 }
 0x4cd   : > { %1586 = vmatprep.subr.bf16.mxu0 %v5133_v23  ;;  %3775 = vmatprep.subr.bf16.mxu1 %v5912_v16 }
 0x582   : > { %v1382_v38 = vpop.f32.mrb[32].mxu0  ;;  %v1423_v39 = vpop.f32.mrb[24].mxu1 }
 0x583   : > { %v1429_v41 = vadd.f32 %v1382_v38, %v4942_v26  ;;  %v1384_v42 = vpop.f32.mrb[33].mxu0  ;;  %v3753_v43 = vpop.f32.mrb[25].mxu1  ;;  %v1443_v31 = vadd.f32 %v4973_v58, %v1423_v39 }
 0x584   : > { %v1436_v44 = vadd.f32 %v1384_v42, %v4944_v35  ;;  %v1386_v45 = vpop.f32.mrb[34].mxu0  ;;  %v1426_v46 = vpop.f32.mrb[26].mxu1 }
 0x585   : > { %v3393_v47 = vmul.f32 -1.442695, %v1429_v41  ;;  %v1387_v50 = vpop.f32.mrb[35].mxu0  ;;  %v3754_v15 = vpop.f32.mrb[27].mxu1 }
 0x586   : > { %v3394_v48 = vmul.f32 -1.442695, %v1436_v44 }
 0x587   : > { %4213 = vpow2.f32 %v3393_v47 }
 0x588   : > { %4215 = vpow2.f32 %v3394_v48 }
 0x591   : > { %v4214_v24 = vpop.eup %4213 }
 0x592   : > { %v1433_v27 = vadd.f32 1.0, %v4214_v24  ;;  %v4216_v28 = vpop.eup %4215 }
 0x593   : > { %v1440_v30 = vadd.f32 1.0, %v4216_v28  ;;  %v5915_v28 = vld [vmem:[#allocation19_spill] sm:$0xff] }
 0x594   : > { %4217 = vrcp.f32 %v1433_v27 }
 0x595   : > { %4219 = vrcp.f32 %v1440_v30 }
 0x59e   : > { %v4218_v26 = vpop.eup %4217 }
 0x59f   : > { %v1444_v33 = vmul.f32 %v4218_v26, %v1443_v31  ;;  %v4220_v36 = vpop.eup %4219 }
 0x5a0   : > { %v1447_v55 = vsub.f32 1.0, %v4220_v36  ;;  %v1449_v57 = vmul.f32 %v4220_v36, %v5148_v56  ;;  %v5284_v36 = vpop.permute.xlu1 %1575 }
 0x5a1   : > { %v1445_v35 = vadd.f32 %v1444_v33, %v4954_v9  ;;  %5916 = vst [vmem:[#allocation19_spill] sm:$0xff] %v5284_v36  ;;  %vm1577_vm15 = vcmp.eq.s32.totalorder %v5284_v36, 1 }
 0x5a3   : > { %4221 = vtanh.f32 %v1445_v35 }
 0x5ad   : > { %v4222_v40 = vpop.eup %4221 }
 0x5ae   : > { %v1448_v6 = vmul.f32 %v4222_v40, %v1447_v55 }
 0x5b0   : > { %v1450_v0 = vadd.f32 %v1449_v57, %v1448_v6 }
 0x5b2   : > { %v5214_v14 = vsel %vm1458_vm14, %v1450_v0, %v5148_v56  ;;  %v5273_v56 = vld [vmem:[#allocation6 + $0xa8] ss:$12 sps:$4 sm:$0xff]  }
 0x5b3   : > { %v1460_v9 = vpack.c.bf16 %v5214_v14, %v5214_v14 }
 0x5b5   : > { %1462 = vst [vmem:[#allocation5 + $0x10] sm:$0xf] %v1460_v9  ;;  %1500 = vmatmul.mubr.bf16.vlgmr.msra.gmra.mrb[36].mxu0 %v1460_v9  ;;  %3772 = vmatmul.mubr.bf16.vlgmr.msra.gmra.mrb[28].mxu1 %v1460_v9 }
 0x5b6   : > { %1587 = vmatpush1.bf16.msra.mxu0 %v5152_v59  ;;  %3776 = vmatpush3.bf16.msra.mxu1 %v5219_v21 }
 0x5b7   : > { %1588 = vmatprep.subr.bf16.mxu0 %v5156_v60  ;;  %3777 = vmatprep.subr.bf16.mxu1 %v5912_v16 }
 0x5b8   : > { %1618 = vmatprep.mubr.bf16.mxu0 %v5913_v11  ;;  %3791 = vmatprep.mubr.msk.bf16.mxu1 %vm4524_vm5, %v5912_v16 }
 0x5ba   : > { %1589 = vmatpush1.bf16.msra.mxu0 %v5163_v22  ;;  %3778 = vmatpush3.bf16.msra.mxu1 %v5228_v29 }
 0x5bb   : > { %1590 = vmatprep.subr.bf16.mxu0 %v5167_v25  ;;  %3779 = vmatprep.subr.bf16.mxu1 %v5912_v16 }
 0x5be   : > { %1591 = vmatpush1.bf16.msra.mxu0 %v5171_v32  ;;  %3780 = vmatpush3.bf16.msra.mxu1 %v5234_v51 }
 0x5bf   : > { %1592 = vmatprep.subr.bf16.mxu0 %v5175_v18  ;;  %3781 = vmatprep.subr.bf16.mxu1 %v5912_v16 }
 0x5c2   : > { %1593 = vmatpush1.bf16.msra.mxu0 %v5179_v63  ;;  %3782 = vmatpush3.bf16.msra.mxu1 %v5240_v13 }
 0x5c3   : > { %1594 = vmatprep.subr.bf16.mxu0 %v5183_v37  ;;  %3783 = vmatprep.subr.bf16.mxu1 %v5912_v16 }
 0x5c6   : > { %1595 = vmatpush1.bf16.msra.mxu0 %v5245_v1  ;;  %3784 = vmatpush3.bf16.msra.mxu1 %v5248_v17 }
 0x5c7   : > { %1596 = vmatprep.subr.bf16.mxu0 %v5251_v20  ;;  %3785 = vmatprep.subr.bf16.mxu1 %v5912_v16 }
 0x5ca   : > { %1597 = vmatpush1.bf16.msra.mxu0 %v5255_v3  ;;  %3786 = vmatpush3.bf16.msra.mxu1 %v5258_v4 }
 0x5cb   : > { %1598 = vmatprep.subr.bf16.mxu0 %v5261_v34  ;;  %3787 = vmatprep.subr.bf16.mxu1 %v5912_v16 }
 0x5ce   : > { %1599 = vmatpush1.bf16.msra.mxu0 %v5265_v8  ;;  %3788 = vmatpush3.bf16.msra.mxu1 %v4859_v52 }
 0x5cf   : > { %1600 = vmatprep.subr.bf16.mxu0 %v5269_v10  ;;  %3789 = vmatprep.subr.bf16.mxu1 %v5912_v16 }
 0x5d2   : > { %1601 = vmatpush1.bf16.msra.mxu0 %v5273_v56  ;;  %3790 = vmatpush3.bf16.msra.mxu1 %v4864_v53 }
 0x5d3   : > { %1705 = vmatprep.subr.bf16.mxu0 %v5133_v23  ;;  %3795 = vmatprep.subr.bf16.mxu1 %v5912_v16 }
 0x688   : > { %v1501_v19 = vpop.f32.mrb[36].mxu0  ;;  %v1542_v38 = vpop.f32.mrb[28].mxu1 }
 0x689   : > { %v1548_v52 = vadd.f32 %v1501_v19, %v4946_v54  ;;  %v1503_v39 = vpop.f32.mrb[37].mxu0  ;;  %v3773_v41 = vpop.f32.mrb[29].mxu1  ;;  %v1562_v24 = vadd.f32 %v4973_v58, %v1542_v38  ;;  %v5919_v19 = vld [vmem:[#allocation17_spill] sm:$0xff] }
 0x68a   : > { %v1555_v42 = vadd.f32 %v1503_v39, %v4951_v7  ;;  %v1505_v43 = vpop.f32.mrb[38].mxu0  ;;  %v1545_v44 = vpop.f32.mrb[30].mxu1 }
 0x68b   : > { %v3395_v45 = vmul.f32 -1.442695, %v1548_v52  ;;  %v1506_v46 = vpop.f32.mrb[39].mxu0  ;;  %v3774_v47 = vpop.f32.mrb[31].mxu1 }
 0x68c   : > { %v3396_v50 = vmul.f32 -1.442695, %v1555_v42  ;;  %v5329_v42 = vpop.permute.xlu0 %1694  ;;  %v4105_v46 = vld [vmem:[#allocation9] ss:$12 sps:$4 sm:$0xff]  }
 0x68d   : > { %4223 = vpow2.f32 %v3395_v45  ;;  %vm1696_vm0 = vcmp.eq.s32.totalorder %v5329_v42, 1 }
 0x68e   : > { %4225 = vpow2.f32 %v3396_v50  ;;  %v4112_v50 = vld [vmem:[#allocation9 + $0x1c] ss:$12 sps:$4 sm:$0xff]  }
 0x697   : > { %v4224_v53 = vpop.eup %4223 }
 0x698   : > { %v1552_v23 = vadd.f32 1.0, %v4224_v53  ;;  %v4226_v15 = vpop.eup %4225  ;;  %v4113_v53 = vld [vmem:[#allocation9 + $0x20] ss:$12 sps:$4 sm:$0xff]  }
 0x699   : > { %v1559_v48 = vadd.f32 1.0, %v4226_v15  ;;  %v4110_v15 = vld [vmem:[#allocation9 + $0x18] ss:$12 sps:$4 sm:$0xff]  }
 0x69a   : > { %4227 = vrcp.f32 %v1552_v23  ;;  %v4109_v23 = vld [vmem:[#allocation5] sm:$0xff]  }
 0x69b   : > { %4229 = vrcp.f32 %v1559_v48  ;;  %v4116_v48 = vld [vmem:[#allocation9 + $0x34] ss:$12 sps:$4 sm:$0xff]  }
 0x6a4   : > { %v4228_v54 = vpop.eup %4227 }
 0x6a5   : > { %v1563_v27 = vmul.f32 %v4228_v54, %v1562_v24  ;;  %v4230_v30 = vpop.eup %4229  ;;  %v4117_v24 = vld [vmem:[#allocation9 + $0x38] ss:$12 sps:$4 sm:$0xff]   ;;  %v4114_v54 = vld [vmem:[#allocation9 + $0x30] ss:$12 sps:$4 sm:$0xff]  }
 0x6a6   : > { %v1566_v31 = vsub.f32 1.0, %v4230_v30  ;;  %v1568_v33 = vmul.f32 %v4230_v30, %v5214_v14  ;;  %v4124_v30 = vld [vmem:[#allocation9 + $0x64] ss:$12 sps:$4 sm:$0xff]  }
 0x6a7   : > { %v1564_v7 = vadd.f32 %v1563_v27, %v5915_v28  ;;  %v4120_v27 = vld [vmem:[#allocation9 + $0x4c] ss:$12 sps:$4 sm:$0xff]   ;;  %v4121_v28 = vld [vmem:[#allocation9 + $0x50] ss:$12 sps:$4 sm:$0xff]  }
 0x6a9   : > { %4231 = vtanh.f32 %v1564_v7  ;;  %v4118_v7 = vld [vmem:[#allocation9 + $0x48] ss:$12 sps:$4 sm:$0xff]  }
 0x6b3   : > { %v4232_v26 = vpop.eup %4231 }
 0x6b4   : > { %v1567_v35 = vmul.f32 %v4232_v26, %v1566_v31  ;;  %v4125_v31 = vld [vmem:[#allocation9 + $0x68] ss:$12 sps:$4 sm:$0xff]   ;;  %v4122_v26 = vld [vmem:[#allocation9 + $0x60] ss:$12 sps:$4 sm:$0xff]  }
 0x6b6   : > { %v1569_v55 = vadd.f32 %v1568_v33, %v1567_v35  ;;  %v4128_v33 = vld [vmem:[#allocation9 + $0x7c] ss:$12 sps:$4 sm:$0xff]   ;;  %v4129_v35 = vld [vmem:[#allocation9 + $0x80] ss:$12 sps:$4 sm:$0xff]  }
 0x6b8   : > { %v5290_v40 = vsel %vm1577_vm15, %v1569_v55, %v5214_v14  ;;  %v5918_v14 = vld [vmem:[#allocation21_spill] sm:$0xff]  ;;  %v4126_v55 = vld [vmem:[#allocation9 + $0x78] ss:$12 sps:$4 sm:$0xff]  }
 0x6b9   : > { %v1579_v57 = vpack.c.bf16 %v5290_v40, %v5290_v40 }
 0x6bb   : > { %1581 = vst [vmem:[#allocation5 + $0x14] sm:$0xf] %v1579_v57  ;;  %1619 = vmatmul.mubr.bf16.vlgmr.msra.gmra.mrb[40].mxu0 %v1579_v57  ;;  %3792 = vmatmul.mubr.bf16.vlgmr.msra.gmra.mrb[32].mxu1 %v1579_v57  ;;  %v4133_v57 = vld [vmem:[#allocation9 + $0x98] ss:$12 sps:$4 sm:$0xff]  }
 0x6bc   : > { %1706 = vmatpush1.bf16.msra.mxu0 %v5152_v59  ;;  %3796 = vmatpush3.bf16.msra.mxu1 %v5219_v21  ;;  %v4355_v59 = vld [vmem:[#allocation6 + $0x98] ss:$12 sps:$4 sm:$0xff]  }
 0x6bd   : > { %1707 = vmatprep.subr.bf16.mxu0 %v5156_v60  ;;  %3797 = vmatprep.subr.bf16.mxu1 %v5912_v16  ;;  %v4356_v60 = vld [vmem:[#allocation6 + $0xb0] ss:$12 sps:$4 sm:$0xff]  }
 0x6be   : > { %1737 = vmatprep.mubr.bf16.mxu0 %v5913_v11  ;;  %3811 = vmatprep.mubr.msk.bf16.mxu1 %vm4524_vm5, %v5912_v16 }
 0x6c0   : > { %1708 = vmatpush1.bf16.msra.mxu0 %v5163_v22  ;;  %3798 = vmatpush3.bf16.msra.mxu1 %v5228_v29  ;;  %v4107_v22 = vld [vmem:[#allocation9 + $0x4] ss:$12 sps:$4 sm:$0xff]  }
 0x6c1   : > { %1709 = vmatprep.subr.bf16.mxu0 %v5167_v25  ;;  %3799 = vmatprep.subr.bf16.mxu1 %v5912_v16  ;;  %v4108_v25 = vld [vmem:[#allocation9 + $0x8] ss:$12 sps:$4 sm:$0xff]  }
 0x6c4   : > { %1710 = vmatpush1.bf16.msra.mxu0 %v5171_v32  ;;  %3800 = vmatpush3.bf16.msra.mxu1 %v5234_v51 }
 0x6c5   : > { %1711 = vmatprep.subr.bf16.mxu0 %v5175_v18  ;;  %3801 = vmatprep.subr.bf16.mxu1 %v5912_v16 }
 0x6c8   : > { %1712 = vmatpush1.bf16.msra.mxu0 %v5179_v63  ;;  %3802 = vmatpush3.bf16.msra.mxu1 %v5240_v13  ;;  %v5917_v63 = vld [vmem:[#allocation20_spill] sm:$0xff] }
 0x6c9   : > { %1713 = vmatprep.subr.bf16.mxu0 %v5183_v37  ;;  %3803 = vmatprep.subr.bf16.mxu1 %v5912_v16  ;;  %5920 = vst [vmem:[#allocation20_spill] sm:$0xff] %v5329_v42 }
 0x6cc   : > { %1714 = vmatpush1.bf16.msra.mxu0 %v5245_v1  ;;  %3804 = vmatpush3.bf16.msra.mxu1 %v5248_v17 }
 0x6cd   : > { %1715 = vmatprep.subr.bf16.mxu0 %v5251_v20  ;;  %3805 = vmatprep.subr.bf16.mxu1 %v5912_v16 }
 0x6d0   : > { %1716 = vmatpush1.bf16.msra.mxu0 %v5255_v3  ;;  %3806 = vmatpush3.bf16.msra.mxu1 %v5258_v4 }
 0x6d1   : > { %1717 = vmatprep.subr.bf16.mxu0 %v5261_v34  ;;  %3807 = vmatprep.subr.bf16.mxu1 %v5912_v16 }
 0x6d4   : > { %1718 = vmatpush1.bf16.msra.mxu0 %v5265_v8  ;;  %3808 = vmatpush3.bf16.msra.mxu1 %v4355_v59  ;;  %v4130_v59 = vld [vmem:[#allocation9 + $0x90] ss:$12 sps:$4 sm:$0xff]  }
 0x6d5   : > { %1719 = vmatprep.subr.bf16.mxu0 %v5269_v10  ;;  %3809 = vmatprep.subr.bf16.mxu1 %v5912_v16 }
 0x6d8   : > { %1720 = vmatpush1.bf16.msra.mxu0 %v5273_v56  ;;  %3810 = vmatpush3.bf16.msra.mxu1 %v4356_v60  ;;  %v4136_v60 = vld [vmem:[#allocation9 + $0xac] ss:$12 sps:$4 sm:$0xff]  }
 0x6d9   : > { %2063 = vmatprep.subr.bf16.mxu0 %v4107_v22  ;;  %3815 = vmatprep.subr.bf16.mxu1 %v4108_v25  ;;  %v4137_v22 = vld [vmem:[#allocation9 + $0xb0] ss:$12 sps:$4 sm:$0xff]  }
 0x78e   : > { %v1620_v32 = vpop.f32.mrb[40].mxu0  ;;  %v1661_v18 = vpop.f32.mrb[32].mxu1 }
 0x78f   : > { %v1667_v37 = vadd.f32 %v1620_v32, %v5917_v63  ;;  %v1622_v6 = vpop.f32.mrb[41].mxu0  ;;  %v3793_v0 = vpop.f32.mrb[33].mxu1  ;;  %v1681_v8 = vadd.f32 %v4973_v58, %v1661_v18  ;;  %v4138_v32 = vld [vmem:[#allocation5 + $0x8] sm:$0xff]   ;;  %v4139_v18 = vld [vmem:[#allocation5 + $0x10] sm:$0xff]  }
 0x790   : > { %v1674_v9 = vadd.f32 %v1622_v6, %v5918_v14  ;;  %v1624_v21 = vpop.f32.mrb[42].mxu0  ;;  %v1664_v29 = vpop.f32.mrb[34].mxu1  ;;  %v5345_v63 = vld [vmem:[#allocation11 + $0x4] ss:$12 sps:$4 sm:$0xff]   ;;  %v5351_v6 = vld [vmem:[#allocation11 + $0x1c] ss:$12 sps:$4 sm:$0xff]  }
 0x791   : > { %v3397_v51 = vmul.f32 -1.442695, %v1667_v37  ;;  %v1625_v13 = vpop.f32.mrb[43].mxu0  ;;  %v3794_v1 = vpop.f32.mrb[35].mxu1  ;;  %v5347_v37 = vld [vmem:[#allocation11] ss:$12 sps:$4 sm:$0xff]  }
 0x792   : > { %v3398_v17 = vmul.f32 -1.442695, %v1674_v9  ;;  %v5353_v0 = vld [vmem:[#allocation11 + $0x18] ss:$12 sps:$4 sm:$0xff]   ;;  %v5357_v14 = vld [vmem:[#allocation11 + $0x34] ss:$12 sps:$4 sm:$0xff]  }
 0x793   : > { %4233 = vpow2.f32 %v3397_v51  ;;  %v5359_v9 = vld [vmem:[#allocation11 + $0x30] ss:$12 sps:$4 sm:$0xff]   ;;  %v5363_v21 = vld [vmem:[#allocation11 + $0x4c] ss:$12 sps:$4 sm:$0xff]   ;;  %v5365_v29 = vld [vmem:[#allocation11 + $0x48] ss:$12 sps:$4 sm:$0xff]  }
 0x794   : > { %4235 = vpow2.f32 %v3398_v17  ;;  %v5369_v51 = vld [vmem:[#allocation11 + $0x64] ss:$12 sps:$4 sm:$0xff]   ;;  %v5371_v13 = vld [vmem:[#allocation11 + $0x60] ss:$12 sps:$4 sm:$0xff]   ;;  %v5373_v1 = vld [vmem:[#allocation11 + $0x7c] ss:$12 sps:$4 sm:$0xff]  }
 0x795   : > { %v5377_v17 = vld [vmem:[#allocation11 + $0x78] ss:$12 sps:$4 sm:$0xff]  }
 0x79d   : > { %v4234_v20 = vpop.eup %4233 }
 0x79e   : > { %v1671_v3 = vadd.f32 1.0, %v4234_v20  ;;  %v4236_v4 = vpop.eup %4235  ;;  %v5381_v20 = vld [vmem:[#allocation11 + $0x94] ss:$12 sps:$4 sm:$0xff]  }
 0x79f   : > { %v1678_v34 = vadd.f32 1.0, %v4236_v4  ;;  %v5385_v4 = vld [vmem:[#allocation11 + $0x90] ss:$12 sps:$4 sm:$0xff]  }
 0x7a0   : > { %4237 = vrcp.f32 %v1671_v3  ;;  %v5383_v3 = vld [vmem:[#allocation11 + $0x8] ss:$12 sps:$4 sm:$0xff]  }
 0x7a1   : > { %4239 = vrcp.f32 %v1678_v34  ;;  %v5387_v34 = vld [vmem:[#allocation11 + $0xac] ss:$12 sps:$4 sm:$0xff]  }
 0x7aa   : > { %v4238_v10 = vpop.eup %4237 }
 0x7ab   : > { %v1682_v56 = vmul.f32 %v4238_v10, %v1681_v8  ;;  %v4240_v52 = vpop.eup %4239  ;;  %v5391_v8 = vld [vmem:[#allocation11 + $0x20] ss:$12 sps:$4 sm:$0xff]   ;;  %v5395_v10 = vld [vmem:[#allocation11 + $0xa8] ss:$12 sps:$4 sm:$0xff]  }
 0x7ac   : > { %v1685_v39 = vsub.f32 1.0, %v4240_v52  ;;  %v1687_v43 = vmul.f32 %v4240_v52, %v5290_v40  ;;  %v5413_v52 = vld [vmem:[#allocation11 + $0x80] ss:$12 sps:$4 sm:$0xff]  }
 0x7ad   : > { %v1683_v38 = vadd.f32 %v1682_v56, %v5919_v19  ;;  %v5401_v56 = vld [vmem:[#allocation11 + $0x38] ss:$12 sps:$4 sm:$0xff]   ;;  %v5405_v19 = vld [vmem:[#allocation11 + $0x50] ss:$12 sps:$4 sm:$0xff]  }
 0x7af   : > { %4241 = vtanh.f32 %v1683_v38  ;;  %v5409_v38 = vld [vmem:[#allocation11 + $0x68] ss:$12 sps:$4 sm:$0xff]  }
 0x7b9   : > { %v4242_v41 = vpop.eup %4241 }
 0x7ba   : > { %v1686_v44 = vmul.f32 %v4242_v41, %v1685_v39  ;;  %v5417_v39 = vld [vmem:[#allocation11 + $0x98] ss:$12 sps:$4 sm:$0xff]   ;;  %v5421_v41 = vld [vmem:[#allocation11 + $0xb0] ss:$12 sps:$4 sm:$0xff]  }
 0x7bc   : > { %v1688_v45 = vadd.f32 %v1687_v43, %v1686_v44 }
 0x7be   : > { %v5336_v58 = vsel %vm1696_vm0, %v1688_v45, %v5290_v40  ;;  %v4132_v40 = vld [vmem:[#allocation9 + $0x94] ss:$12 sps:$4 sm:$0xff]   ;;  %v5921_v45 = vld [vmem:[#allocation22_spill] sm:$0xff] }
 0x7bf   : > { %v1698_v47 = vpack.c.bf16 %v5336_v58, %v5336_v58 }
 0x7c1   : > { %1700 = vst [vmem:[#allocation5 + $0x18] sm:$0xf] %v1698_v47  ;;  %1738 = vmatmul.mubr.bf16.vlgmr.msra.gmra.mrb[44].mxu0 %v1698_v47  ;;  %3812 = vmatmul.mubr.bf16.vlgmr.msra.gmra.mrb[36].mxu1 %v1698_v47 }
 0x7c2   : > { %2064 = vmatpush1.bf16.msra.mxu0 %v4105_v46  ;;  %3816 = vmatpush3.bf16.msra.mxu1 %v4108_v25  ;;  %v4134_v25 = vld [vmem:[#allocation9 + $0xa8] ss:$12 sps:$4 sm:$0xff]  }
 0x7c3   : > { %3831 = vmatprep.mubr.bf16.mxu1 %v4109_v23  ;;  %2065 = vmatprep.subr.bf16.mxu0 %v4112_v50 }
 0x7c4   : > { %3817 = vmatprep.subr.bf16.mxu1 %v4113_v53  ;;  %2095 = vmatprep.mubr.bf16.mxu0 %v5913_v11 }
 0x7c6   : > { %2066 = vmatpush1.bf16.msra.mxu0 %v4110_v15  ;;  %3818 = vmatpush3.bf16.msra.mxu1 %v4113_v53 }
 0x7c7   : > { %2067 = vmatprep.subr.bf16.mxu0 %v4116_v48  ;;  %3819 = vmatprep.subr.bf16.mxu1 %v4117_v24 }
 0x7ca   : > { %2068 = vmatpush1.bf16.msra.mxu0 %v4114_v54  ;;  %3820 = vmatpush3.bf16.msra.mxu1 %v4117_v24 }
 0x7cb   : > { %2069 = vmatprep.subr.bf16.mxu0 %v4120_v27  ;;  %3821 = vmatprep.subr.bf16.mxu1 %v4121_v28 }
 0x7ce   : > { %2070 = vmatpush1.bf16.msra.mxu0 %v4118_v7  ;;  %3822 = vmatpush3.bf16.msra.mxu1 %v4121_v28 }
 0x7cf   : > { %2071 = vmatprep.subr.bf16.mxu0 %v4124_v30  ;;  %3823 = vmatprep.subr.bf16.mxu1 %v4125_v31 }
 0x7d2   : > { %2072 = vmatpush1.bf16.msra.mxu0 %v4122_v26  ;;  %3824 = vmatpush3.bf16.msra.mxu1 %v4125_v31  ;;  %v4357_v26 = vld [vmem:[%s5875_s5] ss:$0 sm:$0xff] }
 0x7d3   : > { %2073 = vmatprep.subr.bf16.mxu0 %v4128_v33  ;;  %3825 = vmatprep.subr.bf16.mxu1 %v4129_v35 }
 0x7d6   : > { %2074 = vmatpush1.bf16.msra.mxu0 %v4126_v55  ;;  %3826 = vmatpush3.bf16.msra.mxu1 %v4129_v35  ;;  %v5922_v55 = vld [vmem:[#allocation18_spill] sm:$0xff] }
 0x7d7   : > { %2075 = vmatprep.subr.bf16.mxu0 %v4132_v40  ;;  %3827 = vmatprep.subr.bf16.mxu1 %v4133_v57 }
 0x7da   : > { %2076 = vmatpush1.bf16.msra.mxu0 %v4130_v59  ;;  %3828 = vmatpush3.bf16.msra.mxu1 %v4133_v57 }
 0x7db   : > { %2077 = vmatprep.subr.bf16.mxu0 %v4136_v60  ;;  %3829 = vmatprep.subr.bf16.mxu1 %v4137_v22 }
 0x7de   : > { %2078 = vmatpush1.bf16.msra.mxu0 %v4134_v25  ;;  %3830 = vmatpush3.bf16.msra.mxu1 %v4137_v22 }
 0x7df   : > { %3839 = vmatprep.subr.bf16.mxu1 %v5912_v16  ;;  %2358 = vmatprep.subr.bf16.mxu0 %v5345_v63 }
 0x7e1   : > { %2096 = vmatmul.mubr.bf16.vlgmr.msra.gmra.mrb[48].mxu0 %v4109_v23  ;;  %3832 = vmatmul.mubr.bf16.vlgmr.msra.gmra.mrb[40].mxu1 %v4138_v32 }
 0x7e2   : > { %3835 = vmatprep.mubr.bf16.mxu1 %v4139_v18  ;;  %2105 = vmatprep.mubr.bf16.mxu0 %v5913_v11 }
 0x7e3   : > { %2359 = vmatpush1.bf16.msra.mxu0 %v5347_v37  ;;  %3840 = vmatpush3.bf16.msra.mxu1 %v5383_v3 }
 0x7e4   : > { %2360 = vmatprep.subr.bf16.mxu0 %v5351_v6  ;;  %3841 = vmatprep.subr.bf16.mxu1 %v5912_v16 }
 0x7e7   : > { %2361 = vmatpush1.bf16.msra.mxu0 %v5353_v0  ;;  %3842 = vmatpush3.bf16.msra.mxu1 %v5391_v8 }
 0x7e8   : > { %2362 = vmatprep.subr.bf16.mxu0 %v5357_v14  ;;  %3843 = vmatprep.subr.bf16.mxu1 %v5912_v16 }
 0x7e9   : > { %2106 = vmatmul.mubr.bf16.gmra.mrb[52].mxu0 %v4138_v32 }
 0x7ea   : > { %2115 = vmatprep.mubr.bf16.mxu0 %v5913_v11 }
 0x7eb   : > { %2363 = vmatpush1.bf16.msra.mxu0 %v5359_v9  ;;  %3844 = vmatpush3.bf16.msra.mxu1 %v5401_v56 }
 0x7ec   : > { %2364 = vmatprep.subr.bf16.mxu0 %v5363_v21  ;;  %3845 = vmatprep.subr.bf16.mxu1 %v5912_v16 }
 0x7ef   : > { %2365 = vmatpush1.bf16.msra.mxu0 %v5365_v29  ;;  %3846 = vmatpush3.bf16.msra.mxu1 %v5405_v19 }
 0x7f0   : > { %2366 = vmatprep.subr.bf16.mxu0 %v5369_v51  ;;  %3847 = vmatprep.subr.bf16.mxu1 %v5912_v16 }
 0x7f1   : > { %2116 = vmatmul.mubr.bf16.gmra.mrb[56].mxu0 %v4139_v18 }
 0x7f2   : > { %2125 = vmatprep.mubr.bf16.mxu0 %v5913_v11 }
 0x7f3   : > { %2367 = vmatpush1.bf16.msra.mxu0 %v5371_v13  ;;  %3848 = vmatpush3.bf16.msra.mxu1 %v5409_v38 }
 0x7f4   : > { %2368 = vmatprep.subr.bf16.mxu0 %v5373_v1  ;;  %3849 = vmatprep.subr.bf16.mxu1 %v5912_v16 }
 0x7f7   : > { %2369 = vmatpush1.bf16.msra.mxu0 %v5377_v17  ;;  %3850 = vmatpush3.bf16.msra.mxu1 %v5413_v52 }
 0x7f8   : > { %2370 = vmatprep.subr.bf16.mxu0 %v5381_v20  ;;  %3851 = vmatprep.subr.bf16.mxu1 %v5912_v16 }
 0x7fb   : > { %2371 = vmatpush1.bf16.msra.mxu0 %v5385_v4  ;;  %3852 = vmatpush3.bf16.msra.mxu1 %v5417_v39 }
 0x7fc   : > { %2372 = vmatprep.subr.bf16.mxu0 %v5387_v34  ;;  %3853 = vmatprep.subr.bf16.mxu1 %v5912_v16 }
 0x7ff   : > { %2373 = vmatpush1.bf16.msra.mxu0 %v5395_v10  ;;  %3854 = vmatpush3.bf16.msra.mxu1 %v5421_v41 }
 0x800   : > { %2472 = vmatprep.subr.bf16.mxu0 %v5345_v63  ;;  %3859 = vmatprep.subr.bf16.mxu1 %v5912_v16 }
 0x894   : > { %v1739_v43 = vpop.f32.mrb[44].mxu0  ;;  %v1780_v44 = vpop.f32.mrb[36].mxu1 }
 0x895   : > { %v1786_v46 = vadd.f32 %v1739_v43, %v5921_v45  ;;  %v1741_v47 = vpop.f32.mrb[45].mxu0  ;;  %v3813_v50 = vpop.f32.mrb[37].mxu1  ;;  %v1800_v33 = vadd.f32 %v4357_v26, %v1780_v44 }
 0x896   : > { %v1793_v53 = vadd.f32 %v1741_v47, %v4968_v2  ;;  %v1743_v23 = vpop.f32.mrb[46].mxu0  ;;  %v1783_v15 = vpop.f32.mrb[38].mxu1 }
 0x897   : > { %v3399_v48 = vmul.f32 -1.442695, %v1786_v46  ;;  %v1744_v24 = vpop.f32.mrb[47].mxu0  ;;  %v3814_v54 = vpop.f32.mrb[39].mxu1 }
 0x898   : > { %v3400_v27 = vmul.f32 -1.442695, %v1793_v53  ;;  %v5456_v15 = vpop.permute.xlu1 %1813 }
 0x899   : > { %4243 = vpow2.f32 %v3399_v48  ;;  %5923 = vst [vmem:[#allocation21_spill] sm:$0xff] %v5456_v15  ;;  %vm1815_vm1 = vcmp.eq.s32.totalorder %v5456_v15, 1 }
 0x89a   : > { %4245 = vpow2.f32 %v3400_v27 }
 0x8a3   : > { %v4244_v28 = vpop.eup %4243 }
 0x8a4   : > { %v1790_v7 = vadd.f32 1.0, %v4244_v28  ;;  %v4246_v30 = vpop.eup %4245 }
 0x8a5   : > { %v1797_v31 = vadd.f32 1.0, %v4246_v30 }
 0x8a6   : > { %4247 = vrcp.f32 %v1790_v7 }
 0x8a7   : > { %4249 = vrcp.f32 %v1797_v31 }
 0x8b0   : > { %v4248_v35 = vpop.eup %4247 }
 0x8b1   : > { %v1801_v2 = vmul.f32 %v4248_v35, %v1800_v33  ;;  %v4250_v44 = vpop.eup %4249  ;;  %v5472_v35 = vld [vmem:[#allocation3] sm:$0xff] }
 0x8b2   : > { %v1804_v47 = vsub.f32 1.0, %v4250_v44  ;;  %v1806_v24 = vmul.f32 %v4250_v44, %v5336_v58 }
 0x8b3   : > { %v1802_v40 = vadd.f32 %v1801_v2, %v5922_v55  ;;  %v1893_v2 = vld [vmem:[%s5878_s8] sm:$0x7] }
 0x8b4   : > { %v5432_v57 = vpop.f32.mrb[48].mxu0  ;;  %v5434_v59 = vpop.f32.mrb[40].mxu1 }
 0x8b5   : > { %4251 = vtanh.f32 %v1802_v40  ;;  %v5436_v60 = vpop.f32.mrb[49].mxu0  ;;  %v5438_v22 = vpop.f32.mrb[41].mxu1 }
 0x8b6   : > { %v5440_v25 = vpop.f32.mrb[50].mxu0  ;;  %v5442_v32 = vpop.f32.mrb[42].mxu1 }
 0x8b7   : > { %v5444_v18 = vpop.f32.mrb[51].mxu0  ;;  %v5446_v43 = vpop.f32.mrb[43].mxu1 }
 0x8bc   : > { %v5448_v45 = vpop.f32.mrb[52].mxu0 }
 0x8bd   : > { %v5450_v46 = vpop.f32.mrb[53].mxu0 }
 0x8be   : > { %v5452_v50 = vpop.f32.mrb[54].mxu0 }
 0x8bf   : > { %v4252_v53 = vpop.eup %4251  ;;  %v5454_v23 = vpop.f32.mrb[55].mxu0 }
 0x8c0   : > { %v1805_v48 = vmul.f32 %v4252_v53, %v1804_v47 }
 0x8c2   : > { %v1807_v54 = vadd.f32 %v1806_v24, %v1805_v48  ;;  %v5933_v24 = vld [vmem:[#allocation16_spill] sm:$0xff] }
 0x8c4   : > { %v1816_v27 = vsel %vm1815_vm1, %v1807_v54, %v5336_v58  ;;  %v5463_v28 = vpop.f32.mrb[56].mxu0  ;;  %v2229_v58 = vpack.c.bf16 %v5472_v35, %v5472_v35  ;;  %v5934_v54 = vsub.s32 0, %v5933_v24 }
 0x8c5   : > { %v1817_v7 = vpack.c.bf16 %v1816_v27, %v1816_v27  ;;  %1820 = vst [vmem:[#allocation2] sm:$0xff] %v1816_v27  ;;  %v5465_v30 = vpop.f32.mrb[57].mxu0 }
 0x8c6   : > { %5924 = vst [vmem:[#allocation17_spill] sm:$0xff] %v5465_v30  ;;  %v5467_v31 = vpop.f32.mrb[58].mxu0  ;;  %v5530_v27 = vrot.slane %v1893_v2, %v5934_v54 }
 0x8c7   : > { %5925 = vst [vmem:[#allocation22_spill] sm:$0xff] %v5467_v31  ;;  %1819 = vst [vmem:[#allocation5 + $0x1c] sm:$0xf] %v1817_v7  ;;  %v5469_v26 = vpop.f32.mrb[59].mxu0 }
 0x8c8   : > { %5926 = vst [vmem:[#allocation18_spill] sm:$0xff] %v5469_v26  ;;  %v2098_v42 = vadd.f32 %v5432_v57, %v5530_v27  ;;  %v2102_v12 = vadd.f32 %v5440_v25, %v5530_v27  ;;  %v2108_v61 = vadd.f32 %v5448_v45, %v5530_v27  ;;  %v2112_v62 = vadd.f32 %v5452_v50, %v5530_v27 }
 0x8c9   : > { %v2118_v5 = vadd.f32 %v5463_v28, %v5530_v27 }
 0x8ce   : > { %v4158_v33 = vld [vmem:[#allocation5 + $0x18] sm:$0xff]  }
 0x8cf   : > { %2126 = vmatmul.mubr.bf16.gmra.mrb[60].mxu0 %v4158_v33  ;;  %3836 = vmatmul.mubr.bf16.gmra.mrb[44].mxu1 %v4158_v33 }
 0x8d0   : > { %2390 = vmatprep.mubr.bf16.mxu0 %v5913_v11  ;;  %3855 = vmatprep.mubr.msk.bf16.mxu1 %vm4524_vm5, %v5912_v16 }
 0x8d7   : > { %2391 = vmatmul.mubr.bf16.vlgmr.msra.gmra.mrb[64].mxu0 %v2229_v58  ;;  %3856 = vmatmul.mubr.bf16.vlgmr.msra.gmra.mrb[48].mxu1 %v2229_v58  ;;  %v5937_v58 = vsub.s32 1, %v5933_v24 }
 0x8d8   : > { %2473 = vmatpush1.bf16.msra.mxu0 %v5347_v37  ;;  %3860 = vmatpush3.bf16.msra.mxu1 %v5383_v3 }
 0x8d9   : > { %2474 = vmatprep.subr.bf16.mxu0 %v5351_v6  ;;  %3861 = vmatprep.subr.bf16.mxu1 %v5912_v16  ;;  %v5538_v15 = vrot.slane %v1893_v2, %v5937_v58 }
 0x8da   : > { %2504 = vmatprep.mubr.bf16.mxu0 %v5913_v11  ;;  %3875 = vmatprep.mubr.msk.bf16.mxu1 %vm4524_vm5, %v5912_v16 }
 0x8dc   : > { %2475 = vmatpush1.bf16.msra.mxu0 %v5353_v0  ;;  %3862 = vmatpush3.bf16.msra.mxu1 %v5391_v8 }
 0x8dd   : > { %2476 = vmatprep.subr.bf16.mxu0 %v5357_v14  ;;  %3863 = vmatprep.subr.bf16.mxu1 %v5912_v16 }
 0x8e0   : > { %2477 = vmatpush1.bf16.msra.mxu0 %v5359_v9  ;;  %3864 = vmatpush3.bf16.msra.mxu1 %v5401_v56 }
 0x8e1   : > { %2478 = vmatprep.subr.bf16.mxu0 %v5363_v21  ;;  %3865 = vmatprep.subr.bf16.mxu1 %v5912_v16 }
 0x8e4   : > { %2479 = vmatpush1.bf16.msra.mxu0 %v5365_v29  ;;  %3866 = vmatpush3.bf16.msra.mxu1 %v5405_v19 }
 0x8e5   : > { %2480 = vmatprep.subr.bf16.mxu0 %v5369_v51  ;;  %3867 = vmatprep.subr.bf16.mxu1 %v5912_v16 }
 0x8e8   : > { %2481 = vmatpush1.bf16.msra.mxu0 %v5371_v13  ;;  %3868 = vmatpush3.bf16.msra.mxu1 %v5409_v38 }
 0x8e9   : > { %2482 = vmatprep.subr.bf16.mxu0 %v5373_v1  ;;  %3869 = vmatprep.subr.bf16.mxu1 %v5912_v16 }
 0x8ec   : > { %2483 = vmatpush1.bf16.msra.mxu0 %v5377_v17  ;;  %3870 = vmatpush3.bf16.msra.mxu1 %v5413_v52 }
 0x8ed   : > { %2484 = vmatprep.subr.bf16.mxu0 %v5381_v20  ;;  %3871 = vmatprep.subr.bf16.mxu1 %v5912_v16 }
 0x8f0   : > { %2485 = vmatpush1.bf16.msra.mxu0 %v5385_v4  ;;  %3872 = vmatpush3.bf16.msra.mxu1 %v5417_v39 }
 0x8f1   : > { %2486 = vmatprep.subr.bf16.mxu0 %v5387_v34  ;;  %3873 = vmatprep.subr.bf16.mxu1 %v5912_v16 }
 0x8f4   : > { %2487 = vmatpush1.bf16.msra.mxu0 %v5395_v10  ;;  %3874 = vmatpush3.bf16.msra.mxu1 %v5421_v41 }
 0x8f5   : > { %2580 = vmatprep.subr.bf16.mxu0 %v5345_v63  ;;  %3879 = vmatprep.subr.bf16.mxu1 %v5912_v16 }
 0x9a2   : > { %v5516_v55 = vpop.f32.mrb[60].mxu0  ;;  %v5518_v40 = vpop.f32.mrb[44].mxu1 }
 0x9a3   : > { %5927 = vst [vmem:[#allocation24_spill] sm:$0xff] %v5516_v55  ;;  %5928 = vst [vmem:[#allocation25_spill] sm:$0xff] %v5518_v40  ;;  %v5520_v44 = vpop.f32.mrb[61].mxu0  ;;  %v5522_v47 = vpop.f32.mrb[45].mxu1 }
 0x9a4   : > { %5929 = vst [vmem:[#allocation26_spill] sm:$0xff] %v5520_v44  ;;  %5930 = vst [vmem:[#allocation27_spill] sm:$0xff] %v5522_v47  ;;  %v5524_v53 = vpop.f32.mrb[62].mxu0  ;;  %v5526_v48 = vpop.f32.mrb[46].mxu1 }
 0x9a5   : > { %5931 = vst [vmem:[#allocation28_spill] sm:$0xff] %v5524_v53  ;;  %5932 = vst [vmem:[#allocation29_spill] sm:$0xff] %v5526_v48  ;;  %v5532_v7 = vpop.f32.mrb[63].mxu0  ;;  %v5534_v33 = vpop.f32.mrb[47].mxu1  ;;  %v2100_v53 = vadd.f32 %v5436_v60, %v5538_v15  ;;  %v5547_v60 = vld [vmem:[%s5879_s9] ss:$0 sm:$0xff] }
 0x9a6   : > { %5935 = vst [vmem:[#allocation16_spill] sm:$0xff] %v5532_v7  ;;  %5936 = vst [vmem:[#allocation30_spill] sm:$0xff] %v5534_v33 }
 0x9aa   : > { %v2392_v40 = vpop.f32.mrb[64].mxu0  ;;  %v2433_v48 = vpop.f32.mrb[48].mxu1 }
 0x9ab   : > { %v2439_v44 = vadd.f32 %v2392_v40, %v2098_v42  ;;  %v2394_v55 = vpop.f32.mrb[65].mxu0  ;;  %v3857_v54 = vpop.f32.mrb[49].mxu1  ;;  %v5938_v42 = vsub.s32 2, %v5933_v24  ;;  %v2459_v40 = vadd.f32 %v5547_v60, %v2433_v48 }
 0x9ac   : > { %v2446_v36 = vadd.f32 %v2394_v55, %v2100_v53  ;;  %v2396_v26 = vpop.f32.mrb[66].mxu0  ;;  %v2436_v7 = vpop.f32.mrb[50].mxu1 }
 0x9ad   : > { %v3453_v31 = vmul.f32 -1.442695, %v2439_v44  ;;  %v2397_v33 = vpop.f32.mrb[67].mxu0  ;;  %v3858_v49 = vpop.f32.mrb[51].mxu1  ;;  %v5551_v55 = vrot.slane %v1893_v2, %v5938_v42 }
 0x9ae   : > { %v3454_v58 = vmul.f32 -1.442695, %v2446_v36 }
 0x9af   : > { %4253 = vpow2.f32 %v3453_v31  ;;  %v2171_v36 = vadd.f32 %v5438_v22, %v5551_v55  ;;  %v2104_v22 = vadd.f32 %v5444_v18, %v5538_v15 }
 0x9b0   : > { %4255 = vpow2.f32 %v3454_v58 }
 0x9b9   : > { %v4254_v47 = vpop.eup %4253 }
 0x9ba   : > { %v2443_v30 = vadd.f32 1.0, %v4254_v47  ;;  %v4256_v57 = vpop.eup %4255 }
 0x9bb   : > { %v2450_v26 = vadd.f32 1.0, %v4256_v57 }
 0x9bc   : > { %4257 = vrcp.f32 %v2443_v30 }
 0x9bd   : > { %4259 = vrcp.f32 %v2450_v26 }
 0x9c6   : > { %v4258_v49 = vpop.eup %4257 }
 0x9c7   : > { %v2460_v31 = vmul.f32 %v4258_v49, %v2459_v40  ;;  %v4260_v44 = vpop.eup %4259 }
 0x9c8   : > { %v2463_v47 = vsub.f32 1.0, %v4260_v44  ;;  %v2465_v7 = vmul.f32 %v4260_v44, %v5472_v35 }
 0x9c9   : > { %v2461_v30 = vadd.f32 %v2460_v31, %v2171_v36 }
 0x9cb   : > { %4261 = vtanh.f32 %v2461_v30 }
 0x9d5   : > { %v4262_v53 = vpop.eup %4261 }
 0x9d6   : > { %v2464_v33 = vmul.f32 %v4262_v53, %v2463_v47 }
 0x9d8   : > { %v2466_v24 = vadd.f32 %v2465_v7, %v2464_v33 }
 0x9da   : > { %v5560_v2 = vsel %vm983_vm6, %v2466_v24, %v5472_v35  ;;  %v2174_v24 = vadd.f32 %v5446_v43, %v5551_v55  ;;  %v2110_v43 = vadd.f32 %v5450_v46, %v5538_v15 }
 0x9db   : > { %v2471_v48 = vpack.c.bf16 %v5560_v2, %v5560_v2 }
 0x9dd   : > { %2505 = vmatmul.mubr.bf16.vlgmr.msra.gmra.mrb[68].mxu0 %v2471_v48  ;;  %3876 = vmatmul.mubr.bf16.vlgmr.msra.gmra.mrb[52].mxu1 %v2471_v48 }
 0x9de   : > { %2581 = vmatpush1.bf16.msra.mxu0 %v5347_v37  ;;  %3880 = vmatpush3.bf16.msra.mxu1 %v5383_v3 }
 0x9df   : > { %2582 = vmatprep.subr.bf16.mxu0 %v5351_v6  ;;  %3881 = vmatprep.subr.bf16.mxu1 %v5912_v16 }
 0x9e0   : > { %2612 = vmatprep.mubr.bf16.mxu0 %v5913_v11  ;;  %3895 = vmatprep.mubr.msk.bf16.mxu1 %vm4524_vm5, %v5912_v16 }
 0x9e2   : > { %2583 = vmatpush1.bf16.msra.mxu0 %v5353_v0  ;;  %3882 = vmatpush3.bf16.msra.mxu1 %v5391_v8 }
 0x9e3   : > { %2584 = vmatprep.subr.bf16.mxu0 %v5357_v14  ;;  %3883 = vmatprep.subr.bf16.mxu1 %v5912_v16 }
 0x9e6   : > { %2585 = vmatpush1.bf16.msra.mxu0 %v5359_v9  ;;  %3884 = vmatpush3.bf16.msra.mxu1 %v5401_v56 }
 0x9e7   : > { %2586 = vmatprep.subr.bf16.mxu0 %v5363_v21  ;;  %3885 = vmatprep.subr.bf16.mxu1 %v5912_v16 }
 0x9ea   : > { %2587 = vmatpush1.bf16.msra.mxu0 %v5365_v29  ;;  %3886 = vmatpush3.bf16.msra.mxu1 %v5405_v19 }
 0x9eb   : > { %2588 = vmatprep.subr.bf16.mxu0 %v5369_v51  ;;  %3887 = vmatprep.subr.bf16.mxu1 %v5912_v16 }
 0x9ee   : > { %2589 = vmatpush1.bf16.msra.mxu0 %v5371_v13  ;;  %3888 = vmatpush3.bf16.msra.mxu1 %v5409_v38 }
 0x9ef   : > { %2590 = vmatprep.subr.bf16.mxu0 %v5373_v1  ;;  %3889 = vmatprep.subr.bf16.mxu1 %v5912_v16 }
 0x9f2   : > { %2591 = vmatpush1.bf16.msra.mxu0 %v5377_v17  ;;  %3890 = vmatpush3.bf16.msra.mxu1 %v5413_v52 }
 0x9f3   : > { %2592 = vmatprep.subr.bf16.mxu0 %v5381_v20  ;;  %3891 = vmatprep.subr.bf16.mxu1 %v5912_v16 }
 0x9f6   : > { %2593 = vmatpush1.bf16.msra.mxu0 %v5385_v4  ;;  %3892 = vmatpush3.bf16.msra.mxu1 %v5417_v39 }
 0x9f7   : > { %2594 = vmatprep.subr.bf16.mxu0 %v5387_v34  ;;  %3893 = vmatprep.subr.bf16.mxu1 %v5912_v16 }
 0x9fa   : > { %2595 = vmatpush1.bf16.msra.mxu0 %v5395_v10  ;;  %3894 = vmatpush3.bf16.msra.mxu1 %v5421_v41 }
 0x9fb   : > { %2688 = vmatprep.subr.bf16.mxu0 %v5345_v63  ;;  %3899 = vmatprep.subr.bf16.mxu1 %v5912_v16 }
 0xab0   : > { %v2506_v35 = vpop.f32.mrb[68].mxu0  ;;  %v2547_v54 = vpop.f32.mrb[52].mxu1 }
 0xab1   : > { %v2553_v58 = vadd.f32 %v2506_v35, %v2102_v12  ;;  %v2508_v57 = vpop.f32.mrb[69].mxu0  ;;  %v3877_v42 = vpop.f32.mrb[53].mxu1  ;;  %v2567_v18 = vadd.f32 %v5547_v60, %v2547_v54 }
 0xab2   : > { %v2560_v26 = vadd.f32 %v2508_v57, %v2104_v22  ;;  %v2510_v40 = vpop.f32.mrb[70].mxu0  ;;  %v2550_v49 = vpop.f32.mrb[54].mxu1 }
 0xab3   : > { %v3456_v36 = vmul.f32 -1.442695, %v2553_v58  ;;  %v2511_v31 = vpop.f32.mrb[71].mxu0  ;;  %v3878_v30 = vpop.f32.mrb[55].mxu1 }
 0xab4   : > { %v3457_v44 = vmul.f32 -1.442695, %v2560_v26 }
 0xab5   : > { %4263 = vpow2.f32 %v3456_v36 }
 0xab6   : > { %4265 = vpow2.f32 %v3457_v44 }
 0xabf   : > { %v4264_v47 = vpop.eup %4263 }
 0xac0   : > { %v2557_v53 = vadd.f32 1.0, %v4264_v47  ;;  %v4266_v25 = vpop.eup %4265 }
 0xac1   : > { %v2564_v7 = vadd.f32 1.0, %v4266_v25 }
 0xac2   : > { %4267 = vrcp.f32 %v2557_v53 }
 0xac3   : > { %4269 = vrcp.f32 %v2564_v7 }
 0xacc   : > { %v4268_v33 = vpop.eup %4267 }
 0xacd   : > { %v2568_v48 = vmul.f32 %v4268_v33, %v2567_v18  ;;  %v4270_v22 = vpop.eup %4269 }
 0xace   : > { %v2571_v35 = vsub.f32 1.0, %v4270_v22  ;;  %v2573_v57 = vmul.f32 %v4270_v22, %v5560_v2 }
 0xacf   : > { %v2569_v12 = vadd.f32 %v2568_v48, %v2174_v24 }
 0xad1   : > { %4271 = vtanh.f32 %v2569_v12 }
 0xadb   : > { %v4272_v58 = vpop.eup %4271 }
 0xadc   : > { %v2572_v42 = vmul.f32 %v4272_v58, %v2571_v35  ;;  %v2179_v35 = vadd.f32 %v5434_v59, %v5551_v55  ;;  %v2114_v59 = vadd.f32 %v5454_v23, %v5538_v15 }
 0xade   : > { %v2574_v26 = vadd.f32 %v2573_v57, %v2572_v42 }
 0xae0   : > { %v5610_v40 = vsel %vm1101_vm11, %v2574_v26, %v5560_v2 }
 0xae1   : > { %v2579_v54 = vpack.c.bf16 %v5610_v40, %v5610_v40 }
 0xae3   : > { %2613 = vmatmul.mubr.bf16.vlgmr.msra.gmra.mrb[72].mxu0 %v2579_v54  ;;  %3896 = vmatmul.mubr.bf16.vlgmr.msra.gmra.mrb[56].mxu1 %v2579_v54 }
 0xae4   : > { %2689 = vmatpush1.bf16.msra.mxu0 %v5347_v37  ;;  %3900 = vmatpush3.bf16.msra.mxu1 %v5383_v3 }
 0xae5   : > { %2690 = vmatprep.subr.bf16.mxu0 %v5351_v6  ;;  %3901 = vmatprep.subr.bf16.mxu1 %v5912_v16 }
 0xae6   : > { %2720 = vmatprep.mubr.bf16.mxu0 %v5913_v11  ;;  %3915 = vmatprep.mubr.msk.bf16.mxu1 %vm4524_vm5, %v5912_v16 }
 0xae8   : > { %2691 = vmatpush1.bf16.msra.mxu0 %v5353_v0  ;;  %3902 = vmatpush3.bf16.msra.mxu1 %v5391_v8 }
 0xae9   : > { %2692 = vmatprep.subr.bf16.mxu0 %v5357_v14  ;;  %3903 = vmatprep.subr.bf16.mxu1 %v5912_v16 }
 0xaec   : > { %2693 = vmatpush1.bf16.msra.mxu0 %v5359_v9  ;;  %3904 = vmatpush3.bf16.msra.mxu1 %v5401_v56 }
 0xaed   : > { %2694 = vmatprep.subr.bf16.mxu0 %v5363_v21  ;;  %3905 = vmatprep.subr.bf16.mxu1 %v5912_v16 }
 0xaf0   : > { %2695 = vmatpush1.bf16.msra.mxu0 %v5365_v29  ;;  %3906 = vmatpush3.bf16.msra.mxu1 %v5405_v19 }
 0xaf1   : > { %2696 = vmatprep.subr.bf16.mxu0 %v5369_v51  ;;  %3907 = vmatprep.subr.bf16.mxu1 %v5912_v16 }
 0xaf4   : > { %2697 = vmatpush1.bf16.msra.mxu0 %v5371_v13  ;;  %3908 = vmatpush3.bf16.msra.mxu1 %v5409_v38 }
 0xaf5   : > { %2698 = vmatprep.subr.bf16.mxu0 %v5373_v1  ;;  %3909 = vmatprep.subr.bf16.mxu1 %v5912_v16 }
 0xaf8   : > { %2699 = vmatpush1.bf16.msra.mxu0 %v5377_v17  ;;  %3910 = vmatpush3.bf16.msra.mxu1 %v5413_v52 }
 0xaf9   : > { %2700 = vmatprep.subr.bf16.mxu0 %v5381_v20  ;;  %3911 = vmatprep.subr.bf16.mxu1 %v5912_v16 }
 0xafc   : > { %2701 = vmatpush1.bf16.msra.mxu0 %v5385_v4  ;;  %3912 = vmatpush3.bf16.msra.mxu1 %v5417_v39 }
 0xafd   : > { %2702 = vmatprep.subr.bf16.mxu0 %v5387_v34  ;;  %3913 = vmatprep.subr.bf16.mxu1 %v5912_v16 }
 0xb00   : > { %2703 = vmatpush1.bf16.msra.mxu0 %v5395_v10  ;;  %3914 = vmatpush3.bf16.msra.mxu1 %v5421_v41 }
 0xb01   : > { %2796 = vmatprep.subr.bf16.mxu0 %v5345_v63  ;;  %3919 = vmatprep.subr.bf16.mxu1 %v5912_v16 }
 0xbb6   : > { %v2614_v2 = vpop.f32.mrb[72].mxu0  ;;  %v2655_v49 = vpop.f32.mrb[56].mxu1 }
 0xbb7   : > { %v2661_v36 = vadd.f32 %v2614_v2, %v2108_v61  ;;  %v2616_v31 = vpop.f32.mrb[73].mxu0  ;;  %v3897_v30 = vpop.f32.mrb[57].mxu1  ;;  %v2675_v46 = vadd.f32 %v5547_v60, %v2655_v49 }
 0xbb8   : > { %v2668_v44 = vadd.f32 %v2616_v31, %v2110_v43  ;;  %v2618_v47 = vpop.f32.mrb[74].mxu0  ;;  %v2658_v53 = vpop.f32.mrb[58].mxu1 }
 0xbb9   : > { %v3458_v25 = vmul.f32 -1.442695, %v2661_v36  ;;  %v2619_v7 = vpop.f32.mrb[75].mxu0  ;;  %v3898_v18 = vpop.f32.mrb[59].mxu1 }
 0xbba   : > { %v3459_v33 = vmul.f32 -1.442695, %v2668_v44 }
 0xbbb   : > { %4273 = vpow2.f32 %v3458_v25 }
 0xbbc   : > { %4275 = vpow2.f32 %v3459_v33 }
 0xbc5   : > { %v4274_v24 = vpop.eup %4273 }
 0xbc6   : > { %v2665_v48 = vadd.f32 1.0, %v4274_v24  ;;  %v4276_v45 = vpop.eup %4275 }
 0xbc7   : > { %v2672_v12 = vadd.f32 1.0, %v4276_v45 }
 0xbc8   : > { %4277 = vrcp.f32 %v2665_v48 }
 0xbc9   : > { %4279 = vrcp.f32 %v2672_v12 }
 0xbd2   : > { %v4278_v22 = vpop.eup %4277 }
 0xbd3   : > { %v2676_v58 = vmul.f32 %v4278_v22, %v2675_v46  ;;  %v4280_v42 = vpop.eup %4279 }
 0xbd4   : > { %v2679_v26 = vsub.f32 1.0, %v4280_v42  ;;  %v2681_v61 = vmul.f32 %v4280_v42, %v5610_v40 }
 0xbd5   : > { %v2677_v57 = vadd.f32 %v2676_v58, %v2179_v35  ;;  %v2182_v35 = vadd.f32 %v5442_v32, %v5551_v55  ;;  %v5939_v32 = vld [vmem:[#allocation17_spill] sm:$0xff] }
 0xbd7   : > { %4281 = vtanh.f32 %v2677_v57 }
 0xbe1   : > { %v4282_v54 = vpop.eup %4281 }
 0xbe2   : > { %v2680_v43 = vmul.f32 %v4282_v54, %v2679_v26 }
 0xbe4   : > { %v2682_v2 = vadd.f32 %v2681_v61, %v2680_v43 }
 0xbe6   : > { %v5660_v36 = vsel %vm1220_vm12, %v2682_v2, %v5610_v40 }
 0xbe7   : > { %v2687_v49 = vpack.c.bf16 %v5660_v36, %v5660_v36 }
 0xbe9   : > { %2721 = vmatmul.mubr.bf16.vlgmr.msra.gmra.mrb[76].mxu0 %v2687_v49  ;;  %3916 = vmatmul.mubr.bf16.vlgmr.msra.gmra.mrb[60].mxu1 %v2687_v49 }
 0xbea   : > { %2797 = vmatpush1.bf16.msra.mxu0 %v5347_v37  ;;  %3920 = vmatpush3.bf16.msra.mxu1 %v5383_v3 }
 0xbeb   : > { %2798 = vmatprep.subr.bf16.mxu0 %v5351_v6  ;;  %3921 = vmatprep.subr.bf16.mxu1 %v5912_v16 }
 0xbec   : > { %2828 = vmatprep.mubr.bf16.mxu0 %v5913_v11  ;;  %3935 = vmatprep.mubr.msk.bf16.mxu1 %vm4524_vm5, %v5912_v16 }
 0xbee   : > { %2799 = vmatpush1.bf16.msra.mxu0 %v5353_v0  ;;  %3922 = vmatpush3.bf16.msra.mxu1 %v5391_v8 }
 0xbef   : > { %2800 = vmatprep.subr.bf16.mxu0 %v5357_v14  ;;  %3923 = vmatprep.subr.bf16.mxu1 %v5912_v16 }
 0xbf2   : > { %2801 = vmatpush1.bf16.msra.mxu0 %v5359_v9  ;;  %3924 = vmatpush3.bf16.msra.mxu1 %v5401_v56 }
 0xbf3   : > { %2802 = vmatprep.subr.bf16.mxu0 %v5363_v21  ;;  %3925 = vmatprep.subr.bf16.mxu1 %v5912_v16 }
 0xbf6   : > { %2803 = vmatpush1.bf16.msra.mxu0 %v5365_v29  ;;  %3926 = vmatpush3.bf16.msra.mxu1 %v5405_v19 }
 0xbf7   : > { %2804 = vmatprep.subr.bf16.mxu0 %v5369_v51  ;;  %3927 = vmatprep.subr.bf16.mxu1 %v5912_v16 }
 0xbfa   : > { %2805 = vmatpush1.bf16.msra.mxu0 %v5371_v13  ;;  %3928 = vmatpush3.bf16.msra.mxu1 %v5409_v38 }
 0xbfb   : > { %2806 = vmatprep.subr.bf16.mxu0 %v5373_v1  ;;  %3929 = vmatprep.subr.bf16.mxu1 %v5912_v16 }
 0xbfe   : > { %2807 = vmatpush1.bf16.msra.mxu0 %v5377_v17  ;;  %3930 = vmatpush3.bf16.msra.mxu1 %v5413_v52 }
 0xbff   : > { %2808 = vmatprep.subr.bf16.mxu0 %v5381_v20  ;;  %3931 = vmatprep.subr.bf16.mxu1 %v5912_v16 }
 0xc02   : > { %2809 = vmatpush1.bf16.msra.mxu0 %v5385_v4  ;;  %3932 = vmatpush3.bf16.msra.mxu1 %v5417_v39 }
 0xc03   : > { %2810 = vmatprep.subr.bf16.mxu0 %v5387_v34  ;;  %3933 = vmatprep.subr.bf16.mxu1 %v5912_v16 }
 0xc06   : > { %2811 = vmatpush1.bf16.msra.mxu0 %v5395_v10  ;;  %3934 = vmatpush3.bf16.msra.mxu1 %v5421_v41 }
 0xc07   : > { %2904 = vmatprep.subr.bf16.mxu0 %v5345_v63  ;;  %3939 = vmatprep.subr.bf16.mxu1 %v5912_v16 }
 0xcbc   : > { %v2722_v40 = vpop.f32.mrb[76].mxu0  ;;  %v2763_v31 = vpop.f32.mrb[60].mxu1 }
 0xcbd   : > { %v2769_v30 = vadd.f32 %v2722_v40, %v2112_v62  ;;  %v2724_v44 = vpop.f32.mrb[77].mxu0  ;;  %v3917_v47 = vpop.f32.mrb[61].mxu1  ;;  %v2783_v23 = vadd.f32 %v5547_v60, %v2763_v31 }
 0xcbe   : > { %v2776_v53 = vadd.f32 %v2724_v44, %v2114_v59  ;;  %v2726_v25 = vpop.f32.mrb[78].mxu0  ;;  %v2766_v7 = vpop.f32.mrb[62].mxu1 }
 0xcbf   : > { %v3460_v18 = vmul.f32 -1.442695, %v2769_v30  ;;  %v2727_v33 = vpop.f32.mrb[79].mxu0  ;;  %v3918_v24 = vpop.f32.mrb[63].mxu1 }
 0xcc0   : > { %v3461_v48 = vmul.f32 -1.442695, %v2776_v53 }
 0xcc1   : > { %4283 = vpow2.f32 %v3460_v18 }
 0xcc2   : > { %4285 = vpow2.f32 %v3461_v48 }
 0xccb   : > { %v4284_v45 = vpop.eup %4283 }
 0xccc   : > { %v2773_v12 = vadd.f32 1.0, %v4284_v45  ;;  %v4286_v50 = vpop.eup %4285 }
 0xccd   : > { %v2780_v46 = vadd.f32 1.0, %v4286_v50 }
 0xcce   : > { %4287 = vrcp.f32 %v2773_v12 }
 0xccf   : > { %4289 = vrcp.f32 %v2780_v46  ;;  %v5940_v46 = vld [vmem:[#allocation27_spill] sm:$0xff] }
 0xcd8   : > { %v4288_v22 = vpop.eup %4287 }
 0xcd9   : > { %v2784_v58 = vmul.f32 %v4288_v22, %v2783_v23  ;;  %v4290_v42 = vpop.eup %4289  ;;  %v2187_v23 = vadd.f32 %v5940_v46, %v5551_v55  ;;  %v4369_v46 = vld [vmem:[#allocation11 + $0x50] ss:$12 sps:$4 sm:$0xff]  }
 0xcda   : > { %v2787_v26 = vsub.f32 1.0, %v4290_v42  ;;  %v2789_v61 = vmul.f32 %v4290_v42, %v5660_v36 }
 0xcdb   : > { %v2785_v57 = vadd.f32 %v2784_v58, %v2182_v35 }
 0xcdd   : > { %4291 = vtanh.f32 %v2785_v57 }
 0xce7   : > { %v4292_v54 = vpop.eup %4291 }
 0xce8   : > { %v2788_v43 = vmul.f32 %v4292_v54, %v2787_v26 }
 0xcea   : > { %v2790_v2 = vadd.f32 %v2789_v61, %v2788_v43  ;;  %v4379_v43 = vld [vmem:[#allocation11 + $0xac] ss:$12 sps:$4 sm:$0xff]  }
 0xcec   : > { %v5710_v49 = vsel %vm1339_vm13, %v2790_v2, %v5660_v36  ;;  %v2120_v36 = vadd.f32 %v5939_v32, %v5538_v15 }
 0xced   : > { %v2795_v62 = vpack.c.bf16 %v5710_v49, %v5710_v49 }
 0xcef   : > { %2829 = vmatmul.mubr.bf16.vlgmr.msra.gmra.mrb[80].mxu0 %v2795_v62  ;;  %3936 = vmatmul.mubr.bf16.vlgmr.msra.gmra.mrb[64].mxu1 %v2795_v62 }
 0xcf0   : > { %2905 = vmatpush1.bf16.msra.mxu0 %v5347_v37  ;;  %3940 = vmatpush3.bf16.msra.mxu1 %v5383_v3 }
 0xcf1   : > { %2906 = vmatprep.subr.bf16.mxu0 %v5351_v6  ;;  %3941 = vmatprep.subr.bf16.mxu1 %v5912_v16 }
 0xcf2   : > { %2936 = vmatprep.mubr.bf16.mxu0 %v5913_v11  ;;  %3955 = vmatprep.mubr.msk.bf16.mxu1 %vm4524_vm5, %v5912_v16 }
 0xcf4   : > { %2907 = vmatpush1.bf16.msra.mxu0 %v5353_v0  ;;  %3942 = vmatpush3.bf16.msra.mxu1 %v5391_v8 }
 0xcf5   : > { %2908 = vmatprep.subr.bf16.mxu0 %v5357_v14  ;;  %3943 = vmatprep.subr.bf16.mxu1 %v5912_v16 }
 0xcf8   : > { %2909 = vmatpush1.bf16.msra.mxu0 %v5359_v9  ;;  %3944 = vmatpush3.bf16.msra.mxu1 %v5401_v56 }
 0xcf9   : > { %2910 = vmatprep.subr.bf16.mxu0 %v5363_v21  ;;  %3945 = vmatprep.subr.bf16.mxu1 %v5912_v16 }
 0xcfc   : > { %2911 = vmatpush1.bf16.msra.mxu0 %v5365_v29  ;;  %3946 = vmatpush3.bf16.msra.mxu1 %v5405_v19 }
 0xcfd   : > { %2912 = vmatprep.subr.bf16.mxu0 %v5369_v51  ;;  %3947 = vmatprep.subr.bf16.mxu1 %v5912_v16 }
 0xd00   : > { %2913 = vmatpush1.bf16.msra.mxu0 %v5371_v13  ;;  %3948 = vmatpush3.bf16.msra.mxu1 %v5409_v38 }
 0xd01   : > { %2914 = vmatprep.subr.bf16.mxu0 %v5373_v1  ;;  %3949 = vmatprep.subr.bf16.mxu1 %v5912_v16 }
 0xd04   : > { %2915 = vmatpush1.bf16.msra.mxu0 %v5377_v17  ;;  %3950 = vmatpush3.bf16.msra.mxu1 %v5413_v52 }
 0xd05   : > { %2916 = vmatprep.subr.bf16.mxu0 %v5381_v20  ;;  %3951 = vmatprep.subr.bf16.mxu1 %v5912_v16 }
 0xd08   : > { %2917 = vmatpush1.bf16.msra.mxu0 %v5385_v4  ;;  %3952 = vmatpush3.bf16.msra.mxu1 %v5417_v39 }
 0xd09   : > { %2918 = vmatprep.subr.bf16.mxu0 %v5387_v34  ;;  %3953 = vmatprep.subr.bf16.mxu1 %v5912_v16 }
 0xd0c   : > { %2919 = vmatpush1.bf16.msra.mxu0 %v5395_v10  ;;  %3954 = vmatpush3.bf16.msra.mxu1 %v5421_v41 }
 0xd0d   : > { %3012 = vmatprep.subr.bf16.mxu0 %v5345_v63  ;;  %3959 = vmatprep.subr.bf16.mxu1 %v5912_v16 }
 0xdc2   : > { %v2830_v59 = vpop.f32.mrb[80].mxu0  ;;  %v2871_v40 = vpop.f32.mrb[64].mxu1 }
 0xdc3   : > { %v2877_v31 = vadd.f32 %v2830_v59, %v2118_v5  ;;  %v2832_v30 = vpop.f32.mrb[81].mxu0  ;;  %v3937_v44 = vpop.f32.mrb[65].mxu1  ;;  %v2891_v12 = vadd.f32 %v5547_v60, %v2871_v40 }
 0xdc4   : > { %v2884_v47 = vadd.f32 %v2832_v30, %v2120_v36  ;;  %v2834_v53 = vpop.f32.mrb[82].mxu0  ;;  %v2874_v25 = vpop.f32.mrb[66].mxu1 }
 0xdc5   : > { %v3462_v7 = vmul.f32 -1.442695, %v2877_v31  ;;  %v2835_v18 = vpop.f32.mrb[83].mxu0  ;;  %v3938_v33 = vpop.f32.mrb[67].mxu1 }
 0xdc6   : > { %v3463_v63 = vmul.f32 -1.442695, %v2884_v47  ;;  %v4359_v18 = vld [vmem:[#allocation11] ss:$12 sps:$4 sm:$0xff]   ;;  %v4360_v33 = vld [vmem:[#allocation11 + $0x8] ss:$12 sps:$4 sm:$0xff]  }
 0xdc7   : > { %4293 = vpow2.f32 %v3462_v7 }
 0xdc8   : > { %4295 = vpow2.f32 %v3463_v63  ;;  %v4361_v63 = vld [vmem:[#allocation11 + $0x1c] ss:$12 sps:$4 sm:$0xff]  }
 0xdd1   : > { %v4294_v24 = vpop.eup %4293 }
 0xdd2   : > { %v2881_v48 = vadd.f32 1.0, %v4294_v24  ;;  %v4296_v28 = vpop.eup %4295  ;;  %v4362_v24 = vld [vmem:[#allocation11 + $0x18] ss:$12 sps:$4 sm:$0xff]  }
 0xdd3   : > { %v2888_v45 = vadd.f32 1.0, %v4296_v28  ;;  %v4364_v28 = vld [vmem:[#allocation11 + $0x34] ss:$12 sps:$4 sm:$0xff]  }
 0xdd4   : > { %4297 = vrcp.f32 %v2881_v48  ;;  %v4363_v48 = vld [vmem:[#allocation11 + $0x20] ss:$12 sps:$4 sm:$0xff]  }
 0xdd5   : > { %4299 = vrcp.f32 %v2888_v45  ;;  %v4365_v45 = vld [vmem:[#allocation11 + $0x30] ss:$12 sps:$4 sm:$0xff]  }
 0xdde   : > { %v4298_v50 = vpop.eup %4297 }
 0xddf   : > { %v2892_v22 = vmul.f32 %v4298_v50, %v2891_v12  ;;  %v4300_v58 = vpop.eup %4299  ;;  %v4366_v12 = vld [vmem:[#allocation11 + $0x38] ss:$12 sps:$4 sm:$0xff]  }
 0xde0   : > { %v2895_v57 = vsub.f32 1.0, %v4300_v58  ;;  %v2897_v26 = vmul.f32 %v4300_v58, %v5710_v49  ;;  %v4367_v50 = vld [vmem:[#allocation11 + $0x4c] ss:$12 sps:$4 sm:$0xff]   ;;  %v4373_v58 = vld [vmem:[#allocation11 + $0x7c] ss:$12 sps:$4 sm:$0xff]  }
 0xde1   : > { %v2893_v35 = vadd.f32 %v2892_v22, %v2187_v23  ;;  %v4370_v23 = vld [vmem:[#allocation11 + $0x64] ss:$12 sps:$4 sm:$0xff]   ;;  %v4371_v22 = vld [vmem:[#allocation11 + $0x60] ss:$12 sps:$4 sm:$0xff]  }
 0xde3   : > { %4301 = vtanh.f32 %v2893_v35  ;;  %v4372_v35 = vld [vmem:[#allocation11 + $0x68] ss:$12 sps:$4 sm:$0xff]  }
 0xded   : > { %v4302_v42 = vpop.eup %4301 }
 0xdee   : > { %v2896_v54 = vmul.f32 %v4302_v42, %v2895_v57  ;;  %v4374_v57 = vld [vmem:[#allocation11 + $0x78] ss:$12 sps:$4 sm:$0xff]   ;;  %v4375_v42 = vld [vmem:[#allocation11 + $0x80] ss:$12 sps:$4 sm:$0xff]  }
 0xdf0   : > { %v2898_v61 = vadd.f32 %v2897_v26, %v2896_v54  ;;  %v4376_v26 = vld [vmem:[#allocation11 + $0x94] ss:$12 sps:$4 sm:$0xff]   ;;  %v4377_v54 = vld [vmem:[#allocation11 + $0x90] ss:$12 sps:$4 sm:$0xff]  }
 0xdf2   : > { %v5760_v2 = vsel %vm1458_vm14, %v2898_v61, %v5710_v49  ;;  %v5944_v49 = vld [vmem:[#allocation30_spill] sm:$0xff] }
 0xdf3   : > { %v2903_v62 = vpack.c.bf16 %v5760_v2, %v5760_v2  ;;  %v2190_v5 = vadd.f32 %v5944_v49, %v5551_v55  ;;  %v4378_v61 = vld [vmem:[#allocation11 + $0x98] ss:$12 sps:$4 sm:$0xff]  }
 0xdf5   : > { %2937 = vmatmul.mubr.bf16.vlgmr.msra.gmra.mrb[84].mxu0 %v2903_v62  ;;  %3956 = vmatmul.mubr.bf16.vlgmr.msra.gmra.mrb[68].mxu1 %v2903_v62  ;;  %v4381_v62 = vld [vmem:[#allocation11 + $0xb0] ss:$12 sps:$4 sm:$0xff]  }
 0xdf6   : > { %3013 = vmatpush1.bf16.msra.mxu0 %v5347_v37  ;;  %3960 = vmatpush3.bf16.msra.mxu1 %v5383_v3  ;;  %v4358_v37 = vld [vmem:[#allocation11 + $0x4] ss:$12 sps:$4 sm:$0xff]  }
 0xdf7   : > { %3014 = vmatprep.subr.bf16.mxu0 %v5351_v6  ;;  %3961 = vmatprep.subr.bf16.mxu1 %v5912_v16  ;;  %v5942_v6 = vld [vmem:[#allocation22_spill] sm:$0xff] }
 0xdf8   : > { %3044 = vmatprep.mubr.bf16.mxu0 %v5913_v11  ;;  %3975 = vmatprep.mubr.msk.bf16.mxu1 %vm4524_vm5, %v5912_v16 }
 0xdfa   : > { %3015 = vmatpush1.bf16.msra.mxu0 %v5353_v0  ;;  %3962 = vmatpush3.bf16.msra.mxu1 %v5391_v8  ;;  %v2122_v0 = vadd.f32 %v5942_v6, %v5530_v27 }
 0xdfb   : > { %3016 = vmatprep.subr.bf16.mxu0 %v5357_v14  ;;  %3963 = vmatprep.subr.bf16.mxu1 %v5912_v16  ;;  %v5943_v14 = vld [vmem:[#allocation18_spill] sm:$0xff] }
 0xdfe   : > { %3017 = vmatpush1.bf16.msra.mxu0 %v5359_v9  ;;  %3964 = vmatpush3.bf16.msra.mxu1 %v5401_v56  ;;  %v2124_v9 = vadd.f32 %v5943_v14, %v5538_v15 }
 0xdff   : > { %3018 = vmatprep.subr.bf16.mxu0 %v5363_v21  ;;  %3965 = vmatprep.subr.bf16.mxu1 %v5912_v16 }
 0xe02   : > { %3019 = vmatpush1.bf16.msra.mxu0 %v5365_v29  ;;  %3966 = vmatpush3.bf16.msra.mxu1 %v5405_v19 }
 0xe03   : > { %3020 = vmatprep.subr.bf16.mxu0 %v5369_v51  ;;  %3967 = vmatprep.subr.bf16.mxu1 %v5912_v16 }
 0xe06   : > { %3021 = vmatpush1.bf16.msra.mxu0 %v5371_v13  ;;  %3968 = vmatpush3.bf16.msra.mxu1 %v5409_v38 }
 0xe07   : > { %3022 = vmatprep.subr.bf16.mxu0 %v5373_v1  ;;  %3969 = vmatprep.subr.bf16.mxu1 %v5912_v16 }
 0xe0a   : > { %3023 = vmatpush1.bf16.msra.mxu0 %v5377_v17  ;;  %3970 = vmatpush3.bf16.msra.mxu1 %v5413_v52 }
 0xe0b   : > { %3024 = vmatprep.subr.bf16.mxu0 %v5381_v20  ;;  %3971 = vmatprep.subr.bf16.mxu1 %v5912_v16 }
 0xe0e   : > { %3025 = vmatpush1.bf16.msra.mxu0 %v5385_v4  ;;  %3972 = vmatpush3.bf16.msra.mxu1 %v5417_v39 }
 0xe0f   : > { %3026 = vmatprep.subr.bf16.mxu0 %v5387_v34  ;;  %3973 = vmatprep.subr.bf16.mxu1 %v5912_v16 }
 0xe12   : > { %3027 = vmatpush1.bf16.msra.mxu0 %v5395_v10  ;;  %3974 = vmatpush3.bf16.msra.mxu1 %v5421_v41 }
 0xe13   : > { %3120 = vmatprep.subr.bf16.mxu0 %v4358_v37  ;;  %3979 = vmatprep.subr.bf16.mxu1 %v5912_v16  ;;  %v5946_v37 = vld [vmem:[#allocation24_spill] sm:$0xff] }
 0xe14   : > { %v2128_v6 = vadd.f32 %v5946_v37, %v5530_v27 }
 0xec8   : > { %v2938_v21 = vpop.f32.mrb[84].mxu0  ;;  %v2979_v29 = vpop.f32.mrb[68].mxu1 }
 0xec9   : > { %v2985_v51 = vadd.f32 %v2938_v21, %v2122_v0  ;;  %v2940_v13 = vpop.f32.mrb[85].mxu0  ;;  %v3957_v1 = vpop.f32.mrb[69].mxu1  ;;  %v2999_v39 = vadd.f32 %v5547_v60, %v2979_v29  ;;  %v5947_v0 = vld [vmem:[#allocation26_spill] sm:$0xff] }
 0xeca   : > { %v2992_v17 = vadd.f32 %v2940_v13, %v2124_v9  ;;  %v2942_v20 = vpop.f32.mrb[86].mxu0  ;;  %v2982_v3 = vpop.f32.mrb[70].mxu1  ;;  %v2130_v14 = vadd.f32 %v5947_v0, %v5538_v15 }
 0xecb   : > { %v3464_v4 = vmul.f32 -1.442695, %v2985_v51  ;;  %v2943_v34 = vpop.f32.mrb[87].mxu0  ;;  %v3958_v8 = vpop.f32.mrb[71].mxu1 }
 0xecc   : > { %v3465_v10 = vmul.f32 -1.442695, %v2992_v17 }
 0xecd   : > { %4303 = vpow2.f32 %v3464_v4 }
 0xece   : > { %4305 = vpow2.f32 %v3465_v10 }
 0xed7   : > { %v4304_v56 = vpop.eup %4303 }
 0xed8   : > { %v2989_v19 = vadd.f32 1.0, %v4304_v56  ;;  %v4306_v38 = vpop.eup %4305 }
 0xed9   : > { %v2996_v52 = vadd.f32 1.0, %v4306_v38 }
 0xeda   : > { %4307 = vrcp.f32 %v2989_v19 }
 0xedb   : > { %4309 = vrcp.f32 %v2996_v52 }
 0xee4   : > { %v4308_v41 = vpop.eup %4307 }
 0xee5   : > { %v3000_v32 = vmul.f32 %v4308_v41, %v2999_v39  ;;  %v4310_v59 = vpop.eup %4309  ;;  %v5948_v39 = vld [vmem:[#allocation25_spill] sm:$0xff] }
 0xee6   : > { %v3003_v40 = vsub.f32 1.0, %v4310_v59  ;;  %v3005_v30 = vmul.f32 %v4310_v59, %v5760_v2  ;;  %v2195_v41 = vadd.f32 %v5948_v39, %v5551_v55 }
 0xee7   : > { %v3001_v36 = vadd.f32 %v3000_v32, %v2190_v5 }
 0xee9   : > { %4311 = vtanh.f32 %v3001_v36 }
 0xef3   : > { %v4312_v31 = vpop.eup %4311 }
 0xef4   : > { %v3004_v44 = vmul.f32 %v4312_v31, %v3003_v40 }
 0xef6   : > { %v3006_v47 = vadd.f32 %v3005_v30, %v3004_v44 }
 0xef8   : > { %v5809_v25 = vsel %vm1577_vm15, %v3006_v47, %v5760_v2  ;;  %v4380_v2 = vld [vmem:[#allocation11 + $0xa8] ss:$12 sps:$4 sm:$0xff]  }
 0xef9   : > { %v3011_v7 = vpack.c.bf16 %v5809_v25, %v5809_v25 }
 0xefb   : > { %3045 = vmatmul.mubr.bf16.vlgmr.msra.gmra.mrb[88].mxu0 %v3011_v7  ;;  %3976 = vmatmul.mubr.bf16.vlgmr.msra.gmra.mrb[72].mxu1 %v3011_v7  ;;  %v5950_v7 = vld [vmem:[#allocation28_spill] sm:$0xff] }
 0xefc   : > { %3121 = vmatpush1.bf16.msra.mxu0 %v4359_v18  ;;  %3980 = vmatpush3.bf16.msra.mxu1 %v4360_v33  ;;  %v2132_v18 = vadd.f32 %v5950_v7, %v5530_v27  ;;  %v5951_v33 = vld [vmem:[#allocation16_spill] sm:$0xff] }
 0xefd   : > { %3122 = vmatprep.subr.bf16.mxu0 %v4361_v63  ;;  %3981 = vmatprep.subr.bf16.mxu1 %v5912_v16  ;;  %v2134_v63 = vadd.f32 %v5951_v33, %v5538_v15 }
 0xefe   : > { %3152 = vmatprep.mubr.bf16.mxu0 %v5913_v11  ;;  %3995 = vmatprep.mubr.msk.bf16.mxu1 %vm4524_vm5, %v5912_v16  ;;  %v4368_v11 = vld [vmem:[#allocation11 + $0x48] ss:$12 sps:$4 sm:$0xff]  }
 0xf00   : > { %3123 = vmatpush1.bf16.msra.mxu0 %v4362_v24  ;;  %3982 = vmatpush3.bf16.msra.mxu1 %v4363_v48 }
 0xf01   : > { %3124 = vmatprep.subr.bf16.mxu0 %v4364_v28  ;;  %3983 = vmatprep.subr.bf16.mxu1 %v5912_v16 }
 0xf04   : > { %3125 = vmatpush1.bf16.msra.mxu0 %v4365_v45  ;;  %3984 = vmatpush3.bf16.msra.mxu1 %v4366_v12 }
 0xf05   : > { %3126 = vmatprep.subr.bf16.mxu0 %v4367_v50  ;;  %3985 = vmatprep.subr.bf16.mxu1 %v5912_v16 }
 0xf08   : > { %3127 = vmatpush1.bf16.msra.mxu0 %v4368_v11  ;;  %3986 = vmatpush3.bf16.msra.mxu1 %v4369_v46 }
 0xf09   : > { %3128 = vmatprep.subr.bf16.mxu0 %v4370_v23  ;;  %3987 = vmatprep.subr.bf16.mxu1 %v5912_v16 }
 0xf0c   : > { %3129 = vmatpush1.bf16.msra.mxu0 %v4371_v22  ;;  %3988 = vmatpush3.bf16.msra.mxu1 %v4372_v35 }
 0xf0d   : > { %3130 = vmatprep.subr.bf16.mxu0 %v4373_v58  ;;  %3989 = vmatprep.subr.bf16.mxu1 %v5912_v16 }
 0xf10   : > { %3131 = vmatpush1.bf16.msra.mxu0 %v4374_v57  ;;  %3990 = vmatpush3.bf16.msra.mxu1 %v4375_v42 }
 0xf11   : > { %3132 = vmatprep.subr.bf16.mxu0 %v4376_v26  ;;  %3991 = vmatprep.subr.bf16.mxu1 %v5912_v16 }
 0xf14   : > { %3133 = vmatpush1.bf16.msra.mxu0 %v4377_v54  ;;  %3992 = vmatpush3.bf16.msra.mxu1 %v4378_v61  ;;  %v5952_v54 = vld [vmem:[#allocation29_spill] sm:$0xff] }
 0xf15   : > { %3134 = vmatprep.subr.bf16.mxu0 %v4379_v43  ;;  %3993 = vmatprep.subr.bf16.mxu1 %v5912_v16  ;;  %v2198_v61 = vadd.f32 %v5952_v54, %v5551_v55 }
 0xf18   : > { %3135 = vmatpush1.bf16.msra.mxu0 %v4380_v2  ;;  %3994 = vmatpush3.bf16.msra.mxu1 %v4381_v62 }
 0xfce   : > { %v3046_v9 = vpop.f32.mrb[88].mxu0  ;;  %v3087_v21 = vpop.f32.mrb[72].mxu1 }
 0xfcf   : > { %v3093_v29 = vadd.f32 %v3046_v9, %v2128_v6  ;;  %v3048_v51 = vpop.f32.mrb[89].mxu0  ;;  %v3977_v13 = vpop.f32.mrb[73].mxu1  ;;  %v3107_v38 = vadd.f32 %v5547_v60, %v3087_v21 }
 0xfd0   : > { %v3100_v1 = vadd.f32 %v3048_v51, %v2130_v14  ;;  %v3050_v17 = vpop.f32.mrb[90].mxu0  ;;  %v3090_v20 = vpop.f32.mrb[74].mxu1 }
 0xfd1   : > { %v3466_v3 = vmul.f32 -1.442695, %v3093_v29  ;;  %v3051_v16 = vpop.f32.mrb[91].mxu0  ;;  %v3978_v4 = vpop.f32.mrb[75].mxu1 }
 0xfd2   : > { %v3467_v34 = vmul.f32 -1.442695, %v3100_v1 }
 0xfd3   : > { %4313 = vpow2.f32 %v3466_v3 }
 0xfd4   : > { %4315 = vpow2.f32 %v3467_v34 }
 0xfdd   : > { %v4314_v8 = vpop.eup %4313 }
 0xfde   : > { %v3097_v10 = vadd.f32 1.0, %v4314_v8  ;;  %v4316_v56 = vpop.eup %4315 }
 0xfdf   : > { %v3104_v19 = vadd.f32 1.0, %v4316_v56 }
 0xfe0   : > { %4317 = vrcp.f32 %v3097_v10 }
 0xfe1   : > { %4319 = vrcp.f32 %v3104_v19 }
 0xfea   : > { %v4318_v52 = vpop.eup %4317 }
 0xfeb   : > { %v3108_v49 = vmul.f32 %v4318_v52, %v3107_v38  ;;  %v4320_v32 = vpop.eup %4319 }
 0xfec   : > { %v3111_v36 = vsub.f32 1.0, %v4320_v32  ;;  %v3113_v40 = vmul.f32 %v4320_v32, %v5809_v25 }
 0xfed   : > { %v3109_v5 = vadd.f32 %v3108_v49, %v2195_v41 }
 0xfef   : > { %4321 = vtanh.f32 %v3109_v5 }
 0xff9   : > { %v4322_v59 = vpop.eup %4321 }
 0xffa   : > { %v3112_v31 = vmul.f32 %v4322_v59, %v3111_v36 }
 0xffc   : > { %v3114_v30 = vadd.f32 %v3113_v40, %v3112_v31 }
 0xffe   : > { %v3115_v47 = vsel %vm1696_vm0, %v3114_v30, %v5809_v25 }
 0xfff   : > { %v3119_v53 = vpack.c.bf16 %v3115_v47, %v3115_v47 }
0x1001   : > { %3153 = vmatmul.mubr.bf16.vlgmr.msra.gmra.mrb[92].mxu0 %v3119_v53  ;;  %3996 = vmatmul.mubr.bf16.vlgmr.msra.gmra.mrb[76].mxu1 %v3119_v53 }
0x10d4   : > { %v3154_v24 = vpop.f32.mrb[92].mxu0  ;;  %v3195_v48 = vpop.f32.mrb[76].mxu1 }
0x10d5   : > { %v3201_v28 = vadd.f32 %v3154_v24, %v2132_v18  ;;  %v3156_v45 = vpop.f32.mrb[93].mxu0  ;;  %v3997_v12 = vpop.f32.mrb[77].mxu1  ;;  %v3215_v15 = vadd.f32 %v5547_v60, %v3195_v48 }
0x10d6   : > { %v3208_v50 = vadd.f32 %v3156_v45, %v2134_v63  ;;  %v3158_v11 = vpop.f32.mrb[94].mxu0  ;;  %v3198_v46 = vpop.f32.mrb[78].mxu1 }
0x10d7   : > { %v3468_v23 = vmul.f32 -1.442695, %v3201_v28  ;;  %v3159_v22 = vpop.f32.mrb[95].mxu0  ;;  %v3998_v25 = vpop.f32.mrb[79].mxu1 }
0x10d8   : > { %v3469_v35 = vmul.f32 -1.442695, %v3208_v50 }
0x10d9   : > { %4323 = vpow2.f32 %v3468_v23 }
0x10da   : > { %4325 = vpow2.f32 %v3469_v35 }
0x10e3   : > { %v4324_v58 = vpop.eup %4323 }
0x10e4   : > { %v3205_v57 = vadd.f32 1.0, %v4324_v58  ;;  %v4326_v27 = vpop.eup %4325 }
0x10e5   : > { %v3212_v42 = vadd.f32 1.0, %v4326_v27 }
0x10e6   : > { %4327 = vrcp.f32 %v3205_v57 }
0x10e7   : > { %4329 = vrcp.f32 %v3212_v42 }
0x10f0   : > { %v4328_v26 = vpop.eup %4327 }
0x10f1   : > { %v3216_v43 = vmul.f32 %v4328_v26, %v3215_v15  ;;  %v4330_v62 = vpop.eup %4329 }
0x10f2   : > { %v3219_v37 = vsub.f32 1.0, %v4330_v62  ;;  %v3221_v14 = vmul.f32 %v4330_v62, %v3115_v47 }
0x10f3   : > { %v3217_v2 = vadd.f32 %v3216_v43, %v2198_v61 }
0x10f5   : > { %4331 = vtanh.f32 %v3217_v2 }
0x10ff   : > { %v4332_v6 = vpop.eup %4331  ;;  %3228 = sbr.rel (%p3470_p10) target bundleno = 4542 (0x11be), region = 80 }
0x1100   : > { %v3220_v0 = vmul.f32 %v4332_v6, %v3219_v37 }
0x1102   : > { %v3222_v9 = vadd.f32 %v3221_v14, %v3220_v0 }
0x1104   : > { %v3223_v29 = vsel %vm1815_vm1, %v3222_v9, %v3115_v47 }
0x1105   : > { %3224 = vst [vmem:[#allocation3] sm:$0xff] %v3223_v29 }
0x110c   : > { %v3229_v60 = vld [vmem:[#allocation3] sm:$0xff] }
0x110d   : > { %v3230_v51 = vmul.f32 %v3229_v60, %v3229_v60 }
0x110f   : > { %3231 = vadd.xlane.f32.xlu0 %v3230_v51 }
0x119c   : > { %v3232_v55 = vpop.xlane.xlu0 %3231 }
0x119d   : > { %4382 = vrsqrt.f32 %v3232_v55  ;;  %vm3235_vm2 = vcmp.eq.f32.partialorder %v3232_v55, inf  ;;  %v3238_v17 = vand.u32 2147483648, %v3232_v55  ;;  %vm3237_vm3 = vcmp.eq.f32.partialorder %v3232_v55, 0.0 }
0x11a7   : > { %v4383_v13 = vpop.eup %4382 }
0x11a8   : > { %v3234_v1 = vmul.f32 %v4383_v13, %v3232_v55 }
0x11aa   : > { %v3236_v20 = vsel %vm3235_vm2, %v3232_v55, %v3234_v1 }
0x11ab   : > { %v3239_v3 = vsel %vm3237_vm3, %v3238_v17, %v3236_v20 }
0x11ac   : > { %v3240_v16 = vmax.f32 %v3239_v3, 1e-12 }
0x11ae   : > { %4384 = vrcp.f32 %v3240_v16 }
0x11b8   : > { %v4385_v4 = vpop.eup %4384 }
0x11b9   : > { %v3242_v34 = vmul.f32 %v4385_v4, %v3229_v60 }
0x11bb   : > { %v3243_v8 = vand.u32 2147483647, %v3242_v34 }
0x11bd   : > { %3244 = vst [vmem:[#allocation12] sm:$0xff] %v3243_v8 }
0x11be PF: > { %p4031_p11 = scmp.eq.s32.totalorder %s4587_s14, 1  ;;  %s4525_s19 = smov [#allocation12]  }
0x11bf   : > { %s3252_s30 = sshll.u32 %s4525_s19, 4  ;;  %s3253_s30 = int_to_ptr.vmem [resolvable:$true] %s3252_s30 }
0x11c0   : > { %s4470_s17 = scalar_lea.vmem %s3253_s30, 128  ;;  %p4477_p1 = scmp.lt.s32.totalorder %s3253_s30, %s3253_s30 }
0x11c1   : > { %p4471_p12 = scmp.ne.s32.totalorder %s3253_s30, %s4470_s17  ;;  %p4478_p5 = scmp.lt.s32.totalorder %s4470_s17, %s4470_s17 }
0x11c3   : > { %p4472_p13 = pnand %p4471_p12, %p4031_p11  ;;  %p4479_p2 = por %p4478_p5, %p4477_p1 }
0x11c5   : > { %p4473_p0 = pneg %p4472_p13 }
0x11c7   : > { %p4480_p8 = pnand %p4479_p2, %p4473_p0 }
0x11c9   : > { %4483 = shalt.err (!%p4480_p8)
}
0x11ca   : > { %s4484_s22 = scalar_lea.hbm %s5880_s10, 128 }
0x11cb   : > { %p4485_p3 = scmp.ne.s32.totalorder %s5880_s10, %s4484_s22  ;;  %p4490_p6 = scmp.lt.u32.totalorder %s4484_s22, %s5880_s10 }
0x11cd   : > { %p4486_p4 = pnand %p4485_p3, %p4031_p11 }
0x11cf   : > { %p4487_p7 = pneg %p4486_p4 }
0x11d1   : > { %p4492_p9 = pnand %p4490_p6, %p4487_p7 }
0x11d3   : > { %4495 = shalt.err (!%p4492_p9)
}
0x11d4   : > { %4012 = dma.vmem_to_hbm [thread:$0]  (%p4031_p11), %s3253_s30, 128, %s5880_s10, [#allocation8]  }
0x11d5   : > { %4509 = dma.done.wait (%p4031_p11), [#allocation8], 128  }
0x11d6   : > { %4511 = vsyncadd (%p4031_p11), [#allocation8], 4294967168 }
0x11d7 PF: > { %s23_s13 = sadd.s32 1, %s4514_s13  }
0x11d8   : > { %p20_p10 = scmp.ge.s32.totalorder %s23_s13, 4  }
0x11da   :  { %22 = sbr.rel (!%p20_p10) target bundleno = 3 (0x3), region = 122 }
0x11e1   :  { %3265 = vsyncpa [#allocation7], 1 }
0x11e2   :  { %3267 = vsyncpa [#allocation7 + $0x1], 1 }
0x11e3   :  { %3268 = vsyncpa [#allocation10], 1 }
0x11e4   :  { %3269 = vsyncpa [#allocation8], 1 }
0x11e5   :  { %3271 = vsyncpa [#allocation8 + $0x1], 1 }

</bundles_post_ra>
